<compile_context>
chip_gen: v7x
topology: tpu7x:2x2x1
jax: 0.10.0
libtpu: 0.0.40
codegen_flags: <defaults>
</compile_context>

<pallas_src>
import jax
import jax.numpy as jnp
import numpy as np
from jax.experimental import pallas as pl
from jax.experimental.pallas import tpu as pltpu

OUT_PAD = 128  # lane-dense padded width of the projection output


def _make_kernel(B, T, H, L):
    H4 = 4 * H

    def kernel(x_ref, k_ref, bg_ref, *rest):
        layer_refs = rest[:3 * L]
        wproj_ref = rest[3 * L]
        bproj_ref = rest[3 * L + 1]
        out_ref = rest[3 * L + 2]

        # ---- GCN for all timesteps (non-recurrent prologue) ----
        # x_ref: [T, B, N*C] f32, k_ref: [T, N*C, N*G] bf16, bg_ref: [T, 1, N*G] f32
        gcn_seq = []
        for t in range(T):
            k_t = k_ref[t].astype(jnp.float32)          # bf16 storage -> f32 operands
            h = jnp.dot(x_ref[t], k_t, preferred_element_type=jnp.float32)
            gcn_seq.append(jnp.maximum(h + bg_ref[t], 0.0))        # [B, N*G]

        # ---- hoist all LSTM weight / bias loads out of the timestep loop ----
        w_ih = [layer_refs[3 * l + 0][...] for l in range(L)]       # [in_l or 4H, 4H]
        w_hh = [layer_refs[3 * l + 1][...] for l in range(L)]       # [4H, 4H], rows 3H:4H real
        b_ls = [layer_refs[3 * l + 2][...] for l in range(L)]       # [1, 4H]

        # Lane mask for the tanh ('g') gate quarter; built once (no per-iter broadcast).
        lane = jax.lax.broadcasted_iota(jnp.int32, (B, H4), 1)
        g_quarter = jnp.logical_and(lane >= 2 * H, lane < 3 * H)

        # State kept as full 128-lane vregs: c valid in lanes [H,2H) (aligned with the
        # f gate), h valid in lanes [3H,4H) (aligned with the o gate). Other lanes hold
        # bounded garbage that is masked by the zero rows of the padded weights.
        hs = [jnp.zeros((B, H4), jnp.float32) for _ in range(L)]
        cs = [jnp.zeros((B, H4), jnp.float32) for _ in range(L)]

        # TODO(synk): nn.LSTM inter-layer dropout is a training-only no-op; omitted (inference).
        for t in range(T):
            inp = gcn_seq[t]
            for l in range(L):
                # Two lane-dense K=128 matmuls; no per-cell concatenate.
                gates = (jnp.dot(inp, w_ih[l], preferred_element_type=jnp.float32)
                         + jnp.dot(hs[l], w_hh[l], preferred_element_type=jnp.float32)
                         + b_ls[l])                                 # [B, 4H], order i|f|g|o
                # One full-vreg activation pass (EUP), tanh only on the g quarter.
                act = jnp.where(g_quarter, jnp.tanh(gates), jax.nn.sigmoid(gates))
                # sig(i)*tanh(g) lands in quarters 0 and 2 (half-roll is direction-free).
                ig = act * pltpu.roll(act, 2 * H, axis=1)
                # sig(f)*c lands in quarter 1 (c is stored aligned with f).
                fc = act * cs[l]
                # A +-H roll puts (an identical copy of) i*g into quarter 1 either way.
                c_new = fc + pltpu.roll(ig, H, axis=1)              # valid in quarter 1
                # sig(o)*tanh(c_new) lands in quarter 3 (aligned with o).
                h_new = act * pltpu.roll(jnp.tanh(c_new), 2 * H, axis=1)
                cs[l] = c_new
                hs[l] = h_new
                inp = h_new

        # ---- lane-dense projection and unmasked full-vreg store ----
        out_ref[...] = (jnp.dot(hs[L - 1], wproj_ref[...],
                                preferred_element_type=jnp.float32)
                        + bproj_ref[...])

    return kernel


def prepare_params(a_hat, w_gcn_t, b_gcn, lstm_params, w_proj_t, b_proj):
    """Weight-only preprocessing. Call ONCE (outside the per-forward path)."""
    T, C, G = w_gcn_t.shape
    N = a_hat.shape[0]
    H = lstm_params[0][1].shape[0]
    L = len(lstm_params)
    O = w_proj_t.shape[1]
    NG, H4 = N * G, 4 * H

    # K_t = kron(A_hat^T, W_t): (A_hat @ X_t @ W_t).reshape(B, NG) == X_t.reshape(B, NC) @ K_t.
    # Stored in bf16: halves HBM->VMEM DMA and VMEM residency of the dominant operand.
    k_all = jnp.stack([jnp.kron(a_hat.T, w_gcn_t[t]) for t in range(T)]).astype(jnp.bfloat16)
    bg_all = jnp.tile(b_gcn, (1, 1, N))                             # [T, 1, NG]

    layer_args = []
    for l, (w_ih_t, w_hh_t, b_l) in enumerate(lstm_params):
        if l == 0:
            w_ih_arg = w_ih_t                                       # [NG, 4H] (dense)
        else:
            # Layer (l-1)'s h lives in lanes [3H,4H): zero-pad rows instead of slicing h.
            w_ih_arg = jnp.zeros((H4, H4), jnp.float32).at[3 * H:, :].set(w_ih_t)
        w_hh_arg = jnp.zeros((H4, H4), jnp.float32).at[3 * H:, :].set(w_hh_t)
        layer_args += [w_ih_arg, w_hh_arg, b_l]

    # Lane-dense projection: pad output columns to 128 so the final store is unmasked.
    w_proj_pad = jnp.zeros((H4, OUT_PAD), jnp.float32).at[3 * H:, :O].set(w_proj_t)
    b_proj_pad = jnp.zeros((1, OUT_PAD), jnp.float32).at[:, :O].set(b_proj)

    dims = (T, N, C, G, H, L, O)
    return (k_all, bg_all, tuple(layer_args), w_proj_pad, b_proj_pad, dims)


def gcn_lstm_forward(x, params):
    """x: [B, T, N, C] f32 -> logits [B, O] f32."""
    k_all, bg_all, layer_args, w_proj_pad, b_proj_pad, dims = params
    T, N, C, G, H, L, O = dims
    B = x.shape[0]
    NC, NG, H4 = N * C, N * G, 4 * H

    # Pad batch to a full sublane group (8) so every vreg op / store is unmasked.
    B_PAD = max(8, ((B + 7) // 8) * 8)
    x_packed = jnp.transpose(x, (1, 0, 2, 3)).reshape(T, B, NC)
    x_packed = jnp.pad(x_packed, ((0, 0), (0, B_PAD - B), (0, 0)))

    args = [x_packed, k_all, bg_all, *layer_args, w_proj_pad, b_proj_pad]
    kernel = _make_kernel(B_PAD, T, H, L)

    flops = (2 * T * B_PAD * NC * NG
             + 2 * T * L * B_PAD * (2 * H4 * H4)
             + 2 * B_PAD * H4 * OUT_PAD)
    transcendentals = 3 * T * L * B_PAD * H4
    bytes_accessed = (x_packed.size * 4 + k_all.size * 2 + bg_all.size * 4
                      + sum(a.size * 4 for a in layer_args)
                      + w_proj_pad.size * 4 + b_proj_pad.size * 4
                      + B_PAD * OUT_PAD * 4)

    # Single invocation, no grid; every operand resident in VMEM (largest is k_all,
    # T*NC*NG*2 B ~= 128 KB at these shapes — far under any VMEM limit).
    # TODO(synk): set pltpu.CompilerParams(vmem_limit_bytes=...) once k_all exceeds
    #             v5e's 16 MiB default scoped VMEM.
    out_padded = pl.pallas_call(
        kernel,
        out_shape=jax.ShapeDtypeStruct((B_PAD, OUT_PAD), jnp.float32),
        in_specs=[pl.BlockSpec(memory_space=pltpu.MemorySpace.VMEM)] * len(args),
        out_specs=pl.BlockSpec(memory_space=pltpu.MemorySpace.VMEM),
        cost_estimate=pl.CostEstimate(flops=flops,
                                      transcendentals=transcendentals,
                                      bytes_accessed=bytes_accessed),
    )(*args)
    return out_padded[:B, :O]


def _reference_forward(x, a_hat, w_gcn_t, b_gcn, lstm_params, w_proj_t, b_proj):
    """Pure-JAX f32 reference matching the PyTorch forward semantics (un-fused form)."""
    B, T, N, C = x.shape
    G = w_gcn_t.shape[-1]
    H = lstm_params[0][1].shape[0]
    L = len(lstm_params)

    seq = []
    for t in range(T):
        xw = jnp.einsum('bnc,cg->bng', x[:, t], w_gcn_t[t])
        h = jnp.einsum('nm,bmg->bng', a_hat, xw) + b_gcn[t][None]
        h = jnp.maximum(h, 0.0)
        seq.append(h.reshape(B, N * G))
    hs = [jnp.zeros((B, H), jnp.float32) for _ in range(L)]
    cs = [jnp.zeros((B, H), jnp.float32) for _ in range(L)]
    last = None
    for t in range(T):
        inp = seq[t]
        for l, (w_ih_t, w_hh_t, b_l) in enumerate(lstm_params):
            gates = inp @ w_ih_t + hs[l] @ w_hh_t + b_l
            i_g = jax.nn.sigmoid(gates[:, 0:H])
            f_g = jax.nn.sigmoid(gates[:, H:2 * H])
            g_g = jnp.tanh(gates[:, 2 * H:3 * H])
            o_g = jax.nn.sigmoid(gates[:, 3 * H:4 * H])
            cs[l] = f_g * cs[l] + i_g * g_g
            hs[l] = o_g * jnp.tanh(cs[l])
            inp = hs[l]
        last = inp
    return last @ w_proj_t + b_proj


if __name__ == "__main__":
    # Small shapes consistent with the module's forward.
    B, T, N, C = 2, 8, 16, 4          # batch, seq_len, num_nodes, in_channels
    G, H, L, O = 8, 32, 2, 4          # gcn_hidden, lstm_hidden, lstm_layers, output_dim

    key = jax.random.PRNGKey(0)
    k_adj, k_x, k_wg, k_bg, k_lstm, k_proj = jax.random.split(key, 6)

    # Dense adjacency (symmetric, no self-loops), then GCN normalization with self-loops:
    # A_hat = D^{-1/2} (A + I) D^{-1/2}   (GCNConv defaults: normalize + add_self_loops).
    a_rand = jax.random.uniform(k_adj, (N, N))
    adj = ((a_rand + a_rand.T) > 1.0).astype(jnp.float32)
    adj = adj * (1.0 - jnp.eye(N, dtype=jnp.float32))
    a_tilde = adj + jnp.eye(N, dtype=jnp.float32)
    deg = jnp.sum(a_tilde, axis=1)
    d_inv_sqrt = 1.0 / jnp.sqrt(deg)
    a_hat = d_inv_sqrt[:, None] * a_tilde * d_inv_sqrt[None, :]

    x = jax.random.normal(k_x, (B, T, N, C), dtype=jnp.float32)

    # Per-timestep GCNConv params (weight stored pre-transposed: [C, G]).
    w_gcn_t = 0.3 * jax.random.normal(k_wg, (T, C, G), dtype=jnp.float32)
    b_gcn = 0.1 * jax.random.normal(k_bg, (T, 1, G), dtype=jnp.float32)

    # LSTM params per layer, pre-transposed; combined bias = b_ih + b_hh.
    lstm_params = []
    keys = jax.random.split(k_lstm, 4 * L)
    for l in range(L):
        in_dim = N * G if l == 0 else H
        w_ih_t = 0.1 * jax.random.normal(keys[4 * l + 0], (in_dim, 4 * H), dtype=jnp.float32)
        w_hh_t = 0.1 * jax.random.normal(keys[4 * l + 1], (H, 4 * H), dtype=jnp.float32)
        b_l = (0.05 * jax.random.normal(keys[4 * l + 2], (1, 4 * H), dtype=jnp.float32)
               + 0.05 * jax.random.normal(keys[4 * l + 3], (1, 4 * H), dtype=jnp.float32))
        lstm_params.append((w_ih_t, w_hh_t, b_l))

    kp1, kp2 = jax.random.split(k_proj)
    w_proj_t = 0.2 * jax.random.normal(kp1, (H, O), dtype=jnp.float32)
    b_proj = 0.1 * jax.random.normal(kp2, (1, O), dtype=jnp.float32)

    # Weight-only preprocessing done once, outside the forward path.
    params = prepare_params(a_hat, w_gcn_t, b_gcn, lstm_params, w_proj_t, b_proj)

    out = gcn_lstm_forward(x, params)
    out = jax.block_until_ready(out)

    ref = _reference_forward(x, a_hat, w_gcn_t, b_gcn, lstm_params, w_proj_t, b_proj)
    # Tolerance loosened vs. the all-f32 version: K (GCN kron operand) is stored in bf16.
    np.testing.assert_allclose(np.asarray(out), np.asarray(ref), rtol=2e-2, atol=2e-2)

    print("KERNEL_OK")
</pallas_src>

<mosaic_0001>
module attributes {stable_mosaic.version = 11 : i64} {
  func.func @kernel(%arg0: memref<8x8x64xf32, #tpu.memory_space<vmem>>, %arg1: memref<8x64x128xbf16, #tpu.memory_space<vmem>>, %arg2: memref<8x1x128xf32, #tpu.memory_space<vmem>>, %arg3: memref<128x128xf32, #tpu.memory_space<vmem>>, %arg4: memref<128x128xf32, #tpu.memory_space<vmem>>, %arg5: memref<1x128xf32, #tpu.memory_space<vmem>>, %arg6: memref<128x128xf32, #tpu.memory_space<vmem>>, %arg7: memref<128x128xf32, #tpu.memory_space<vmem>>, %arg8: memref<1x128xf32, #tpu.memory_space<vmem>>, %arg9: memref<128x128xf32, #tpu.memory_space<vmem>>, %arg10: memref<1x128xf32, #tpu.memory_space<vmem>>, %arg11: memref<8x128xf32, #tpu.memory_space<vmem>>) attributes {dimension_semantics = [], scalar_prefetch = 0 : i64, scratch_operands = 0 : i64, tpu.core_type = #tpu.core_type<tc>} {
    %c0 = arith.constant 0 : index
    %c0_0 = arith.constant 0 : index
    %c0_1 = arith.constant 0 : index
    %0 = vector.load %arg1[%c0, %c0_0, %c0_1] : memref<8x64x128xbf16, #tpu.memory_space<vmem>>, vector<1x64x128xbf16>
    %1 = vector.shape_cast %0 : vector<1x64x128xbf16> to vector<64x128xbf16>
    %2 = arith.extf %1 : vector<64x128xbf16> to vector<64x128xf32>
    %c0_2 = arith.constant 0 : index
    %c0_3 = arith.constant 0 : index
    %c0_4 = arith.constant 0 : index
    %3 = vector.load %arg0[%c0_2, %c0_3, %c0_4] : memref<8x8x64xf32, #tpu.memory_space<vmem>>, vector<1x8x64xf32>
    %4 = vector.shape_cast %3 : vector<1x8x64xf32> to vector<8x64xf32>
    %cst = arith.constant dense<0.000000e+00> : vector<8x128xf32>
    %5 = tpu.matmul %4, %2, %cst {dimension_numbers = #tpu.dot_dimension_numbers<[1], [0], [0], [1], [0, 0, 1, 1], [], []>} : vector<8x64xf32>, vector<64x128xf32>, vector<8x128xf32> -> vector<8x128xf32>
    %c0_5 = arith.constant 0 : index
    %c0_6 = arith.constant 0 : index
    %c0_7 = arith.constant 0 : index
    %6 = vector.load %arg2[%c0_5, %c0_6, %c0_7] : memref<8x1x128xf32, #tpu.memory_space<vmem>>, vector<1x1x128xf32>
    %7 = vector.shape_cast %6 : vector<1x1x128xf32> to vector<1x128xf32>
    %8 = vector.broadcast %7 : vector<1x128xf32> to vector<8x128xf32>
    %9 = arith.addf %5, %8 : vector<8x128xf32>
    %cst_8 = arith.constant 0.000000e+00 : f32
    %10 = vector.broadcast %cst_8 : f32 to vector<8x128xf32>
    %11 = arith.maximumf %9, %10 : vector<8x128xf32>
    %c1 = arith.constant 1 : index
    %c0_9 = arith.constant 0 : index
    %c0_10 = arith.constant 0 : index
    %12 = vector.load %arg1[%c1, %c0_9, %c0_10] : memref<8x64x128xbf16, #tpu.memory_space<vmem>>, vector<1x64x128xbf16>
    %13 = vector.shape_cast %12 : vector<1x64x128xbf16> to vector<64x128xbf16>
    %14 = arith.extf %13 : vector<64x128xbf16> to vector<64x128xf32>
    %c1_11 = arith.constant 1 : index
    %c0_12 = arith.constant 0 : index
    %c0_13 = arith.constant 0 : index
    %15 = vector.load %arg0[%c1_11, %c0_12, %c0_13] : memref<8x8x64xf32, #tpu.memory_space<vmem>>, vector<1x8x64xf32>
    %16 = vector.shape_cast %15 : vector<1x8x64xf32> to vector<8x64xf32>
    %cst_14 = arith.constant dense<0.000000e+00> : vector<8x128xf32>
    %17 = tpu.matmul %16, %14, %cst_14 {dimension_numbers = #tpu.dot_dimension_numbers<[1], [0], [0], [1], [0, 0, 1, 1], [], []>} : vector<8x64xf32>, vector<64x128xf32>, vector<8x128xf32> -> vector<8x128xf32>
    %c1_15 = arith.constant 1 : index
    %c0_16 = arith.constant 0 : index
    %c0_17 = arith.constant 0 : index
    %18 = vector.load %arg2[%c1_15, %c0_16, %c0_17] : memref<8x1x128xf32, #tpu.memory_space<vmem>>, vector<1x1x128xf32>
    %19 = vector.shape_cast %18 : vector<1x1x128xf32> to vector<1x128xf32>
    %20 = vector.broadcast %19 : vector<1x128xf32> to vector<8x128xf32>
    %21 = arith.addf %17, %20 : vector<8x128xf32>
    %cst_18 = arith.constant 0.000000e+00 : f32
    %22 = vector.broadcast %cst_18 : f32 to vector<8x128xf32>
    %23 = arith.maximumf %21, %22 : vector<8x128xf32>
    %c2 = arith.constant 2 : index
    %c0_19 = arith.constant 0 : index
    %c0_20 = arith.constant 0 : index
    %24 = vector.load %arg1[%c2, %c0_19, %c0_20] : memref<8x64x128xbf16, #tpu.memory_space<vmem>>, vector<1x64x128xbf16>
    %25 = vector.shape_cast %24 : vector<1x64x128xbf16> to vector<64x128xbf16>
    %26 = arith.extf %25 : vector<64x128xbf16> to vector<64x128xf32>
    %c2_21 = arith.constant 2 : index
    %c0_22 = arith.constant 0 : index
    %c0_23 = arith.constant 0 : index
    %27 = vector.load %arg0[%c2_21, %c0_22, %c0_23] : memref<8x8x64xf32, #tpu.memory_space<vmem>>, vector<1x8x64xf32>
    %28 = vector.shape_cast %27 : vector<1x8x64xf32> to vector<8x64xf32>
    %cst_24 = arith.constant dense<0.000000e+00> : vector<8x128xf32>
    %29 = tpu.matmul %28, %26, %cst_24 {dimension_numbers = #tpu.dot_dimension_numbers<[1], [0], [0], [1], [0, 0, 1, 1], [], []>} : vector<8x64xf32>, vector<64x128xf32>, vector<8x128xf32> -> vector<8x128xf32>
    %c2_25 = arith.constant 2 : index
    %c0_26 = arith.constant 0 : index
    %c0_27 = arith.constant 0 : index
    %30 = vector.load %arg2[%c2_25, %c0_26, %c0_27] : memref<8x1x128xf32, #tpu.memory_space<vmem>>, vector<1x1x128xf32>
    %31 = vector.shape_cast %30 : vector<1x1x128xf32> to vector<1x128xf32>
    %32 = vector.broadcast %31 : vector<1x128xf32> to vector<8x128xf32>
    %33 = arith.addf %29, %32 : vector<8x128xf32>
    %cst_28 = arith.constant 0.000000e+00 : f32
    %34 = vector.broadcast %cst_28 : f32 to vector<8x128xf32>
    %35 = arith.maximumf %33, %34 : vector<8x128xf32>
    %c3 = arith.constant 3 : index
    %c0_29 = arith.constant 0 : index
    %c0_30 = arith.constant 0 : index
    %36 = vector.load %arg1[%c3, %c0_29, %c0_30] : memref<8x64x128xbf16, #tpu.memory_space<vmem>>, vector<1x64x128xbf16>
    %37 = vector.shape_cast %36 : vector<1x64x128xbf16> to vector<64x128xbf16>
    %38 = arith.extf %37 : vector<64x128xbf16> to vector<64x128xf32>
    %c3_31 = arith.constant 3 : index
    %c0_32 = arith.constant 0 : index
    %c0_33 = arith.constant 0 : index
    %39 = vector.load %arg0[%c3_31, %c0_32, %c0_33] : memref<8x8x64xf32, #tpu.memory_space<vmem>>, vector<1x8x64xf32>
    %40 = vector.shape_cast %39 : vector<1x8x64xf32> to vector<8x64xf32>
    %cst_34 = arith.constant dense<0.000000e+00> : vector<8x128xf32>
    %41 = tpu.matmul %40, %38, %cst_34 {dimension_numbers = #tpu.dot_dimension_numbers<[1], [0], [0], [1], [0, 0, 1, 1], [], []>} : vector<8x64xf32>, vector<64x128xf32>, vector<8x128xf32> -> vector<8x128xf32>
    %c3_35 = arith.constant 3 : index
    %c0_36 = arith.constant 0 : index
    %c0_37 = arith.constant 0 : index
    %42 = vector.load %arg2[%c3_35, %c0_36, %c0_37] : memref<8x1x128xf32, #tpu.memory_space<vmem>>, vector<1x1x128xf32>
    %43 = vector.shape_cast %42 : vector<1x1x128xf32> to vector<1x128xf32>
    %44 = vector.broadcast %43 : vector<1x128xf32> to vector<8x128xf32>
    %45 = arith.addf %41, %44 : vector<8x128xf32>
    %cst_38 = arith.constant 0.000000e+00 : f32
    %46 = vector.broadcast %cst_38 : f32 to vector<8x128xf32>
    %47 = arith.maximumf %45, %46 : vector<8x128xf32>
    %c4 = arith.constant 4 : index
    %c0_39 = arith.constant 0 : index
    %c0_40 = arith.constant 0 : index
    %48 = vector.load %arg1[%c4, %c0_39, %c0_40] : memref<8x64x128xbf16, #tpu.memory_space<vmem>>, vector<1x64x128xbf16>
    %49 = vector.shape_cast %48 : vector<1x64x128xbf16> to vector<64x128xbf16>
    %50 = arith.extf %49 : vector<64x128xbf16> to vector<64x128xf32>
    %c4_41 = arith.constant 4 : index
    %c0_42 = arith.constant 0 : index
    %c0_43 = arith.constant 0 : index
    %51 = vector.load %arg0[%c4_41, %c0_42, %c0_43] : memref<8x8x64xf32, #tpu.memory_space<vmem>>, vector<1x8x64xf32>
    %52 = vector.shape_cast %51 : vector<1x8x64xf32> to vector<8x64xf32>
    %cst_44 = arith.constant dense<0.000000e+00> : vector<8x128xf32>
    %53 = tpu.matmul %52, %50, %cst_44 {dimension_numbers = #tpu.dot_dimension_numbers<[1], [0], [0], [1], [0, 0, 1, 1], [], []>} : vector<8x64xf32>, vector<64x128xf32>, vector<8x128xf32> -> vector<8x128xf32>
    %c4_45 = arith.constant 4 : index
    %c0_46 = arith.constant 0 : index
    %c0_47 = arith.constant 0 : index
    %54 = vector.load %arg2[%c4_45, %c0_46, %c0_47] : memref<8x1x128xf32, #tpu.memory_space<vmem>>, vector<1x1x128xf32>
    %55 = vector.shape_cast %54 : vector<1x1x128xf32> to vector<1x128xf32>
    %56 = vector.broadcast %55 : vector<1x128xf32> to vector<8x128xf32>
    %57 = arith.addf %53, %56 : vector<8x128xf32>
    %cst_48 = arith.constant 0.000000e+00 : f32
    %58 = vector.broadcast %cst_48 : f32 to vector<8x128xf32>
    %59 = arith.maximumf %57, %58 : vector<8x128xf32>
    %c5 = arith.constant 5 : index
    %c0_49 = arith.constant 0 : index
    %c0_50 = arith.constant 0 : index
    %60 = vector.load %arg1[%c5, %c0_49, %c0_50] : memref<8x64x128xbf16, #tpu.memory_space<vmem>>, vector<1x64x128xbf16>
    %61 = vector.shape_cast %60 : vector<1x64x128xbf16> to vector<64x128xbf16>
    %62 = arith.extf %61 : vector<64x128xbf16> to vector<64x128xf32>
    %c5_51 = arith.constant 5 : index
    %c0_52 = arith.constant 0 : index
    %c0_53 = arith.constant 0 : index
    %63 = vector.load %arg0[%c5_51, %c0_52, %c0_53] : memref<8x8x64xf32, #tpu.memory_space<vmem>>, vector<1x8x64xf32>
    %64 = vector.shape_cast %63 : vector<1x8x64xf32> to vector<8x64xf32>
    %cst_54 = arith.constant dense<0.000000e+00> : vector<8x128xf32>
    %65 = tpu.matmul %64, %62, %cst_54 {dimension_numbers = #tpu.dot_dimension_numbers<[1], [0], [0], [1], [0, 0, 1, 1], [], []>} : vector<8x64xf32>, vector<64x128xf32>, vector<8x128xf32> -> vector<8x128xf32>
    %c5_55 = arith.constant 5 : index
    %c0_56 = arith.constant 0 : index
    %c0_57 = arith.constant 0 : index
    %66 = vector.load %arg2[%c5_55, %c0_56, %c0_57] : memref<8x1x128xf32, #tpu.memory_space<vmem>>, vector<1x1x128xf32>
    %67 = vector.shape_cast %66 : vector<1x1x128xf32> to vector<1x128xf32>
    %68 = vector.broadcast %67 : vector<1x128xf32> to vector<8x128xf32>
    %69 = arith.addf %65, %68 : vector<8x128xf32>
    %cst_58 = arith.constant 0.000000e+00 : f32
    %70 = vector.broadcast %cst_58 : f32 to vector<8x128xf32>
    %71 = arith.maximumf %69, %70 : vector<8x128xf32>
    %c6 = arith.constant 6 : index
    %c0_59 = arith.constant 0 : index
    %c0_60 = arith.constant 0 : index
    %72 = vector.load %arg1[%c6, %c0_59, %c0_60] : memref<8x64x128xbf16, #tpu.memory_space<vmem>>, vector<1x64x128xbf16>
    %73 = vector.shape_cast %72 : vector<1x64x128xbf16> to vector<64x128xbf16>
    %74 = arith.extf %73 : vector<64x128xbf16> to vector<64x128xf32>
    %c6_61 = arith.constant 6 : index
    %c0_62 = arith.constant 0 : index
    %c0_63 = arith.constant 0 : index
    %75 = vector.load %arg0[%c6_61, %c0_62, %c0_63] : memref<8x8x64xf32, #tpu.memory_space<vmem>>, vector<1x8x64xf32>
    %76 = vector.shape_cast %75 : vector<1x8x64xf32> to vector<8x64xf32>
    %cst_64 = arith.constant dense<0.000000e+00> : vector<8x128xf32>
    %77 = tpu.matmul %76, %74, %cst_64 {dimension_numbers = #tpu.dot_dimension_numbers<[1], [0], [0], [1], [0, 0, 1, 1], [], []>} : vector<8x64xf32>, vector<64x128xf32>, vector<8x128xf32> -> vector<8x128xf32>
    %c6_65 = arith.constant 6 : index
    %c0_66 = arith.constant 0 : index
    %c0_67 = arith.constant 0 : index
    %78 = vector.load %arg2[%c6_65, %c0_66, %c0_67] : memref<8x1x128xf32, #tpu.memory_space<vmem>>, vector<1x1x128xf32>
    %79 = vector.shape_cast %78 : vector<1x1x128xf32> to vector<1x128xf32>
    %80 = vector.broadcast %79 : vector<1x128xf32> to vector<8x128xf32>
    %81 = arith.addf %77, %80 : vector<8x128xf32>
    %cst_68 = arith.constant 0.000000e+00 : f32
    %82 = vector.broadcast %cst_68 : f32 to vector<8x128xf32>
    %83 = arith.maximumf %81, %82 : vector<8x128xf32>
    %c7 = arith.constant 7 : index
    %c0_69 = arith.constant 0 : index
    %c0_70 = arith.constant 0 : index
    %84 = vector.load %arg1[%c7, %c0_69, %c0_70] : memref<8x64x128xbf16, #tpu.memory_space<vmem>>, vector<1x64x128xbf16>
    %85 = vector.shape_cast %84 : vector<1x64x128xbf16> to vector<64x128xbf16>
    %86 = arith.extf %85 : vector<64x128xbf16> to vector<64x128xf32>
    %c7_71 = arith.constant 7 : index
    %c0_72 = arith.constant 0 : index
    %c0_73 = arith.constant 0 : index
    %87 = vector.load %arg0[%c7_71, %c0_72, %c0_73] : memref<8x8x64xf32, #tpu.memory_space<vmem>>, vector<1x8x64xf32>
    %88 = vector.shape_cast %87 : vector<1x8x64xf32> to vector<8x64xf32>
    %cst_74 = arith.constant dense<0.000000e+00> : vector<8x128xf32>
    %89 = tpu.matmul %88, %86, %cst_74 {dimension_numbers = #tpu.dot_dimension_numbers<[1], [0], [0], [1], [0, 0, 1, 1], [], []>} : vector<8x64xf32>, vector<64x128xf32>, vector<8x128xf32> -> vector<8x128xf32>
    %c7_75 = arith.constant 7 : index
    %c0_76 = arith.constant 0 : index
    %c0_77 = arith.constant 0 : index
    %90 = vector.load %arg2[%c7_75, %c0_76, %c0_77] : memref<8x1x128xf32, #tpu.memory_space<vmem>>, vector<1x1x128xf32>
    %91 = vector.shape_cast %90 : vector<1x1x128xf32> to vector<1x128xf32>
    %92 = vector.broadcast %91 : vector<1x128xf32> to vector<8x128xf32>
    %93 = arith.addf %89, %92 : vector<8x128xf32>
    %cst_78 = arith.constant 0.000000e+00 : f32
    %94 = vector.broadcast %cst_78 : f32 to vector<8x128xf32>
    %95 = arith.maximumf %93, %94 : vector<8x128xf32>
    %c0_79 = arith.constant 0 : index
    %c0_80 = arith.constant 0 : index
    %96 = vector.load %arg3[%c0_79, %c0_80] : memref<128x128xf32, #tpu.memory_space<vmem>>, vector<128x128xf32>
    %c0_81 = arith.constant 0 : index
    %c0_82 = arith.constant 0 : index
    %97 = vector.load %arg6[%c0_81, %c0_82] : memref<128x128xf32, #tpu.memory_space<vmem>>, vector<128x128xf32>
    %c0_83 = arith.constant 0 : index
    %c0_84 = arith.constant 0 : index
    %98 = vector.load %arg4[%c0_83, %c0_84] : memref<128x128xf32, #tpu.memory_space<vmem>>, vector<128x128xf32>
    %c0_85 = arith.constant 0 : index
    %c0_86 = arith.constant 0 : index
    %99 = vector.load %arg7[%c0_85, %c0_86] : memref<128x128xf32, #tpu.memory_space<vmem>>, vector<128x128xf32>
    %c0_87 = arith.constant 0 : index
    %c0_88 = arith.constant 0 : index
    %100 = vector.load %arg5[%c0_87, %c0_88] : memref<1x128xf32, #tpu.memory_space<vmem>>, vector<1x128xf32>
    %c0_89 = arith.constant 0 : index
    %c0_90 = arith.constant 0 : index
    %101 = vector.load %arg8[%c0_89, %c0_90] : memref<1x128xf32, #tpu.memory_space<vmem>>, vector<1x128xf32>
    %102 = tpu.iota {dimensions = array<i32: 1>} : vector<8x128xi32>
    %c64_i32 = arith.constant 64 : i32
    %103 = vector.broadcast %c64_i32 : i32 to vector<8x128xi32>
    %104 = arith.cmpi sge, %102, %103 : vector<8x128xi32>
    %c96_i32 = arith.constant 96 : i32
    %105 = vector.broadcast %c96_i32 : i32 to vector<8x128xi32>
    %106 = arith.cmpi slt, %102, %105 : vector<8x128xi32>
    %107 = arith.andi %104, %106 : vector<8x128xi1>
    %cst_91 = arith.constant 0.000000e+00 : f32
    %108 = vector.broadcast %cst_91 : f32 to vector<8x128xf32>
    %cst_92 = arith.constant 0.000000e+00 : f32
    %109 = vector.broadcast %cst_92 : f32 to vector<8x128xf32>
    %cst_93 = arith.constant 0.000000e+00 : f32
    %110 = vector.broadcast %cst_93 : f32 to vector<8x128xf32>
    %cst_94 = arith.constant 0.000000e+00 : f32
    %111 = vector.broadcast %cst_94 : f32 to vector<8x128xf32>
    %cst_95 = arith.constant dense<0.000000e+00> : vector<8x128xf32>
    %112 = tpu.matmul %11, %96, %cst_95 {dimension_numbers = #tpu.dot_dimension_numbers<[1], [0], [0], [1], [0, 0, 1, 1], [], []>} : vector<8x128xf32>, vector<128x128xf32>, vector<8x128xf32> -> vector<8x128xf32>
    %cst_96 = arith.constant dense<0.000000e+00> : vector<8x128xf32>
    %113 = tpu.matmul %108, %98, %cst_96 {dimension_numbers = #tpu.dot_dimension_numbers<[1], [0], [0], [1], [0, 0, 1, 1], [], []>} : vector<8x128xf32>, vector<128x128xf32>, vector<8x128xf32> -> vector<8x128xf32>
    %114 = arith.addf %112, %113 : vector<8x128xf32>
    %115 = vector.broadcast %100 : vector<1x128xf32> to vector<8x128xf32>
    %116 = arith.addf %114, %115 : vector<8x128xf32>
    %117 = math.tanh %116 : vector<8x128xf32>
    %118 = arith.negf %116 : vector<8x128xf32>
    %119 = math.exp %118 : vector<8x128xf32>
    %cst_97 = arith.constant 1.000000e+00 : f32
    %120 = vector.broadcast %cst_97 : f32 to vector<8x128xf32>
    %121 = arith.addf %120, %119 : vector<8x128xf32>
    %122 = arith.divf %120, %121 : vector<8x128xf32>
    %123 = arith.select %107, %117, %122 : vector<8x128xi1>, vector<8x128xf32>
    %c64_i32_98 = arith.constant 64 : i32
    %124 = tpu.dynamic_rotate %123 by %c64_i32_98 dim 1 : vector<8x128xf32>, i32 -> vector<8x128xf32>
    %125 = arith.mulf %123, %124 : vector<8x128xf32>
    %126 = arith.mulf %123, %110 : vector<8x128xf32>
    %c32_i32 = arith.constant 32 : i32
    %127 = tpu.dynamic_rotate %125 by %c32_i32 dim 1 : vector<8x128xf32>, i32 -> vector<8x128xf32>
    %128 = arith.addf %126, %127 : vector<8x128xf32>
    %129 = math.tanh %128 : vector<8x128xf32>
    %c64_i32_99 = arith.constant 64 : i32
    %130 = tpu.dynamic_rotate %129 by %c64_i32_99 dim 1 : vector<8x128xf32>, i32 -> vector<8x128xf32>
    %131 = arith.mulf %123, %130 : vector<8x128xf32>
    %cst_100 = arith.constant dense<0.000000e+00> : vector<8x128xf32>
    %132 = tpu.matmul %131, %97, %cst_100 {dimension_numbers = #tpu.dot_dimension_numbers<[1], [0], [0], [1], [0, 0, 1, 1], [], []>} : vector<8x128xf32>, vector<128x128xf32>, vector<8x128xf32> -> vector<8x128xf32>
    %cst_101 = arith.constant dense<0.000000e+00> : vector<8x128xf32>
    %133 = tpu.matmul %109, %99, %cst_101 {dimension_numbers = #tpu.dot_dimension_numbers<[1], [0], [0], [1], [0, 0, 1, 1], [], []>} : vector<8x128xf32>, vector<128x128xf32>, vector<8x128xf32> -> vector<8x128xf32>
    %134 = arith.addf %132, %133 : vector<8x128xf32>
    %135 = vector.broadcast %101 : vector<1x128xf32> to vector<8x128xf32>
    %136 = arith.addf %134, %135 : vector<8x128xf32>
    %137 = math.tanh %136 : vector<8x128xf32>
    %138 = arith.negf %136 : vector<8x128xf32>
    %139 = math.exp %138 : vector<8x128xf32>
    %cst_102 = arith.constant 1.000000e+00 : f32
    %140 = vector.broadcast %cst_102 : f32 to vector<8x128xf32>
    %141 = arith.addf %140, %139 : vector<8x128xf32>
    %142 = arith.divf %140, %141 : vector<8x128xf32>
    %143 = arith.select %107, %137, %142 : vector<8x128xi1>, vector<8x128xf32>
    %c64_i32_103 = arith.constant 64 : i32
    %144 = tpu.dynamic_rotate %143 by %c64_i32_103 dim 1 : vector<8x128xf32>, i32 -> vector<8x128xf32>
    %145 = arith.mulf %143, %144 : vector<8x128xf32>
    %146 = arith.mulf %143, %111 : vector<8x128xf32>
    %c32_i32_104 = arith.constant 32 : i32
    %147 = tpu.dynamic_rotate %145 by %c32_i32_104 dim 1 : vector<8x128xf32>, i32 -> vector<8x128xf32>
    %148 = arith.addf %146, %147 : vector<8x128xf32>
    %149 = math.tanh %148 : vector<8x128xf32>
    %c64_i32_105 = arith.constant 64 : i32
    %150 = tpu.dynamic_rotate %149 by %c64_i32_105 dim 1 : vector<8x128xf32>, i32 -> vector<8x128xf32>
    %151 = arith.mulf %143, %150 : vector<8x128xf32>
    %cst_106 = arith.constant dense<0.000000e+00> : vector<8x128xf32>
    %152 = tpu.matmul %23, %96, %cst_106 {dimension_numbers = #tpu.dot_dimension_numbers<[1], [0], [0], [1], [0, 0, 1, 1], [], []>} : vector<8x128xf32>, vector<128x128xf32>, vector<8x128xf32> -> vector<8x128xf32>
    %cst_107 = arith.constant dense<0.000000e+00> : vector<8x128xf32>
    %153 = tpu.matmul %131, %98, %cst_107 {dimension_numbers = #tpu.dot_dimension_numbers<[1], [0], [0], [1], [0, 0, 1, 1], [], []>} : vector<8x128xf32>, vector<128x128xf32>, vector<8x128xf32> -> vector<8x128xf32>
    %154 = arith.addf %152, %153 : vector<8x128xf32>
    %155 = vector.broadcast %100 : vector<1x128xf32> to vector<8x128xf32>
    %156 = arith.addf %154, %155 : vector<8x128xf32>
    %157 = math.tanh %156 : vector<8x128xf32>
    %158 = arith.negf %156 : vector<8x128xf32>
    %159 = math.exp %158 : vector<8x128xf32>
    %cst_108 = arith.constant 1.000000e+00 : f32
    %160 = vector.broadcast %cst_108 : f32 to vector<8x128xf32>
    %161 = arith.addf %160, %159 : vector<8x128xf32>
    %162 = arith.divf %160, %161 : vector<8x128xf32>
    %163 = arith.select %107, %157, %162 : vector<8x128xi1>, vector<8x128xf32>
    %c64_i32_109 = arith.constant 64 : i32
    %164 = tpu.dynamic_rotate %163 by %c64_i32_109 dim 1 : vector<8x128xf32>, i32 -> vector<8x128xf32>
    %165 = arith.mulf %163, %164 : vector<8x128xf32>
    %166 = arith.mulf %163, %128 : vector<8x128xf32>
    %c32_i32_110 = arith.constant 32 : i32
    %167 = tpu.dynamic_rotate %165 by %c32_i32_110 dim 1 : vector<8x128xf32>, i32 -> vector<8x128xf32>
    %168 = arith.addf %166, %167 : vector<8x128xf32>
    %169 = math.tanh %168 : vector<8x128xf32>
    %c64_i32_111 = arith.constant 64 : i32
    %170 = tpu.dynamic_rotate %169 by %c64_i32_111 dim 1 : vector<8x128xf32>, i32 -> vector<8x128xf32>
    %171 = arith.mulf %163, %170 : vector<8x128xf32>
    %cst_112 = arith.constant dense<0.000000e+00> : vector<8x128xf32>
    %172 = tpu.matmul %171, %97, %cst_112 {dimension_numbers = #tpu.dot_dimension_numbers<[1], [0], [0], [1], [0, 0, 1, 1], [], []>} : vector<8x128xf32>, vector<128x128xf32>, vector<8x128xf32> -> vector<8x128xf32>
    %cst_113 = arith.constant dense<0.000000e+00> : vector<8x128xf32>
    %173 = tpu.matmul %151, %99, %cst_113 {dimension_numbers = #tpu.dot_dimension_numbers<[1], [0], [0], [1], [0, 0, 1, 1], [], []>} : vector<8x128xf32>, vector<128x128xf32>, vector<8x128xf32> -> vector<8x128xf32>
    %174 = arith.addf %172, %173 : vector<8x128xf32>
    %175 = vector.broadcast %101 : vector<1x128xf32> to vector<8x128xf32>
    %176 = arith.addf %174, %175 : vector<8x128xf32>
    %177 = math.tanh %176 : vector<8x128xf32>
    %178 = arith.negf %176 : vector<8x128xf32>
    %179 = math.exp %178 : vector<8x128xf32>
    %cst_114 = arith.constant 1.000000e+00 : f32
    %180 = vector.broadcast %cst_114 : f32 to vector<8x128xf32>
    %181 = arith.addf %180, %179 : vector<8x128xf32>
    %182 = arith.divf %180, %181 : vector<8x128xf32>
    %183 = arith.select %107, %177, %182 : vector<8x128xi1>, vector<8x128xf32>
    %c64_i32_115 = arith.constant 64 : i32
    %184 = tpu.dynamic_rotate %183 by %c64_i32_115 dim 1 : vector<8x128xf32>, i32 -> vector<8x128xf32>
    %185 = arith.mulf %183, %184 : vector<8x128xf32>
    %186 = arith.mulf %183, %148 : vector<8x128xf32>
    %c32_i32_116 = arith.constant 32 : i32
    %187 = tpu.dynamic_rotate %185 by %c32_i32_116 dim 1 : vector<8x128xf32>, i32 -> vector<8x128xf32>
    %188 = arith.addf %186, %187 : vector<8x128xf32>
    %189 = math.tanh %188 : vector<8x128xf32>
    %c64_i32_117 = arith.constant 64 : i32
    %190 = tpu.dynamic_rotate %189 by %c64_i32_117 dim 1 : vector<8x128xf32>, i32 -> vector<8x128xf32>
    %191 = arith.mulf %183, %190 : vector<8x128xf32>
    %cst_118 = arith.constant dense<0.000000e+00> : vector<8x128xf32>
    %192 = tpu.matmul %35, %96, %cst_118 {dimension_numbers = #tpu.dot_dimension_numbers<[1], [0], [0], [1], [0, 0, 1, 1], [], []>} : vector<8x128xf32>, vector<128x128xf32>, vector<8x128xf32> -> vector<8x128xf32>
    %cst_119 = arith.constant dense<0.000000e+00> : vector<8x128xf32>
    %193 = tpu.matmul %171, %98, %cst_119 {dimension_numbers = #tpu.dot_dimension_numbers<[1], [0], [0], [1], [0, 0, 1, 1], [], []>} : vector<8x128xf32>, vector<128x128xf32>, vector<8x128xf32> -> vector<8x128xf32>
    %194 = arith.addf %192, %193 : vector<8x128xf32>
    %195 = vector.broadcast %100 : vector<1x128xf32> to vector<8x128xf32>
    %196 = arith.addf %194, %195 : vector<8x128xf32>
    %197 = math.tanh %196 : vector<8x128xf32>
    %198 = arith.negf %196 : vector<8x128xf32>
    %199 = math.exp %198 : vector<8x128xf32>
    %cst_120 = arith.constant 1.000000e+00 : f32
    %200 = vector.broadcast %cst_120 : f32 to vector<8x128xf32>
    %201 = arith.addf %200, %199 : vector<8x128xf32>
    %202 = arith.divf %200, %201 : vector<8x128xf32>
    %203 = arith.select %107, %197, %202 : vector<8x128xi1>, vector<8x128xf32>
    %c64_i32_121 = arith.constant 64 : i32
    %204 = tpu.dynamic_rotate %203 by %c64_i32_121 dim 1 : vector<8x128xf32>, i32 -> vector<8x128xf32>
    %205 = arith.mulf %203, %204 : vector<8x128xf32>
    %206 = arith.mulf %203, %168 : vector<8x128xf32>
    %c32_i32_122 = arith.constant 32 : i32
    %207 = tpu.dynamic_rotate %205 by %c32_i32_122 dim 1 : vector<8x128xf32>, i32 -> vector<8x128xf32>
    %208 = arith.addf %206, %207 : vector<8x128xf32>
    %209 = math.tanh %208 : vector<8x128xf32>
    %c64_i32_123 = arith.constant 64 : i32
    %210 = tpu.dynamic_rotate %209 by %c64_i32_123 dim 1 : vector<8x128xf32>, i32 -> vector<8x128xf32>
    %211 = arith.mulf %203, %210 : vector<8x128xf32>
    %cst_124 = arith.constant dense<0.000000e+00> : vector<8x128xf32>
    %212 = tpu.matmul %211, %97, %cst_124 {dimension_numbers = #tpu.dot_dimension_numbers<[1], [0], [0], [1], [0, 0, 1, 1], [], []>} : vector<8x128xf32>, vector<128x128xf32>, vector<8x128xf32> -> vector<8x128xf32>
    %cst_125 = arith.constant dense<0.000000e+00> : vector<8x128xf32>
    %213 = tpu.matmul %191, %99, %cst_125 {dimension_numbers = #tpu.dot_dimension_numbers<[1], [0], [0], [1], [0, 0, 1, 1], [], []>} : vector<8x128xf32>, vector<128x128xf32>, vector<8x128xf32> -> vector<8x128xf32>
    %214 = arith.addf %212, %213 : vector<8x128xf32>
    %215 = vector.broadcast %101 : vector<1x128xf32> to vector<8x128xf32>
    %216 = arith.addf %214, %215 : vector<8x128xf32>
    %217 = math.tanh %216 : vector<8x128xf32>
    %218 = arith.negf %216 : vector<8x128xf32>
    %219 = math.exp %218 : vector<8x128xf32>
    %cst_126 = arith.constant 1.000000e+00 : f32
    %220 = vector.broadcast %cst_126 : f32 to vector<8x128xf32>
    %221 = arith.addf %220, %219 : vector<8x128xf32>
    %222 = arith.divf %220, %221 : vector<8x128xf32>
    %223 = arith.select %107, %217, %222 : vector<8x128xi1>, vector<8x128xf32>
    %c64_i32_127 = arith.constant 64 : i32
    %224 = tpu.dynamic_rotate %223 by %c64_i32_127 dim 1 : vector<8x128xf32>, i32 -> vector<8x128xf32>
    %225 = arith.mulf %223, %224 : vector<8x128xf32>
    %226 = arith.mulf %223, %188 : vector<8x128xf32>
    %c32_i32_128 = arith.constant 32 : i32
    %227 = tpu.dynamic_rotate %225 by %c32_i32_128 dim 1 : vector<8x128xf32>, i32 -> vector<8x128xf32>
    %228 = arith.addf %226, %227 : vector<8x128xf32>
    %229 = math.tanh %228 : vector<8x128xf32>
    %c64_i32_129 = arith.constant 64 : i32
    %230 = tpu.dynamic_rotate %229 by %c64_i32_129 dim 1 : vector<8x128xf32>, i32 -> vector<8x128xf32>
    %231 = arith.mulf %223, %230 : vector<8x128xf32>
    %cst_130 = arith.constant dense<0.000000e+00> : vector<8x128xf32>
    %232 = tpu.matmul %47, %96, %cst_130 {dimension_numbers = #tpu.dot_dimension_numbers<[1], [0], [0], [1], [0, 0, 1, 1], [], []>} : vector<8x128xf32>, vector<128x128xf32>, vector<8x128xf32> -> vector<8x128xf32>
    %cst_131 = arith.constant dense<0.000000e+00> : vector<8x128xf32>
    %233 = tpu.matmul %211, %98, %cst_131 {dimension_numbers = #tpu.dot_dimension_numbers<[1], [0], [0], [1], [0, 0, 1, 1], [], []>} : vector<8x128xf32>, vector<128x128xf32>, vector<8x128xf32> -> vector<8x128xf32>
    %234 = arith.addf %232, %233 : vector<8x128xf32>
    %235 = vector.broadcast %100 : vector<1x128xf32> to vector<8x128xf32>
    %236 = arith.addf %234, %235 : vector<8x128xf32>
    %237 = math.tanh %236 : vector<8x128xf32>
    %238 = arith.negf %236 : vector<8x128xf32>
    %239 = math.exp %238 : vector<8x128xf32>
    %cst_132 = arith.constant 1.000000e+00 : f32
    %240 = vector.broadcast %cst_132 : f32 to vector<8x128xf32>
    %241 = arith.addf %240, %239 : vector<8x128xf32>
    %242 = arith.divf %240, %241 : vector<8x128xf32>
    %243 = arith.select %107, %237, %242 : vector<8x128xi1>, vector<8x128xf32>
    %c64_i32_133 = arith.constant 64 : i32
    %244 = tpu.dynamic_rotate %243 by %c64_i32_133 dim 1 : vector<8x128xf32>, i32 -> vector<8x128xf32>
    %245 = arith.mulf %243, %244 : vector<8x128xf32>
    %246 = arith.mulf %243, %208 : vector<8x128xf32>
    %c32_i32_134 = arith.constant 32 : i32
    %247 = tpu.dynamic_rotate %245 by %c32_i32_134 dim 1 : vector<8x128xf32>, i32 -> vector<8x128xf32>
    %248 = arith.addf %246, %247 : vector<8x128xf32>
    %249 = math.tanh %248 : vector<8x128xf32>
    %c64_i32_135 = arith.constant 64 : i32
    %250 = tpu.dynamic_rotate %249 by %c64_i32_135 dim 1 : vector<8x128xf32>, i32 -> vector<8x128xf32>
    %251 = arith.mulf %243, %250 : vector<8x128xf32>
    %cst_136 = arith.constant dense<0.000000e+00> : vector<8x128xf32>
    %252 = tpu.matmul %251, %97, %cst_136 {dimension_numbers = #tpu.dot_dimension_numbers<[1], [0], [0], [1], [0, 0, 1, 1], [], []>} : vector<8x128xf32>, vector<128x128xf32>, vector<8x128xf32> -> vector<8x128xf32>
    %cst_137 = arith.constant dense<0.000000e+00> : vector<8x128xf32>
    %253 = tpu.matmul %231, %99, %cst_137 {dimension_numbers = #tpu.dot_dimension_numbers<[1], [0], [0], [1], [0, 0, 1, 1], [], []>} : vector<8x128xf32>, vector<128x128xf32>, vector<8x128xf32> -> vector<8x128xf32>
    %254 = arith.addf %252, %253 : vector<8x128xf32>
    %255 = vector.broadcast %101 : vector<1x128xf32> to vector<8x128xf32>
    %256 = arith.addf %254, %255 : vector<8x128xf32>
    %257 = math.tanh %256 : vector<8x128xf32>
    %258 = arith.negf %256 : vector<8x128xf32>
    %259 = math.exp %258 : vector<8x128xf32>
    %cst_138 = arith.constant 1.000000e+00 : f32
    %260 = vector.broadcast %cst_138 : f32 to vector<8x128xf32>
    %261 = arith.addf %260, %259 : vector<8x128xf32>
    %262 = arith.divf %260, %261 : vector<8x128xf32>
    %263 = arith.select %107, %257, %262 : vector<8x128xi1>, vector<8x128xf32>
    %c64_i32_139 = arith.constant 64 : i32
    %264 = tpu.dynamic_rotate %263 by %c64_i32_139 dim 1 : vector<8x128xf32>, i32 -> vector<8x128xf32>
    %265 = arith.mulf %263, %264 : vector<8x128xf32>
    %266 = arith.mulf %263, %228 : vector<8x128xf32>
    %c32_i32_140 = arith.constant 32 : i32
    %267 = tpu.dynamic_rotate %265 by %c32_i32_140 dim 1 : vector<8x128xf32>, i32 -> vector<8x128xf32>
    %268 = arith.addf %266, %267 : vector<8x128xf32>
    %269 = math.tanh %268 : vector<8x128xf32>
    %c64_i32_141 = arith.constant 64 : i32
    %270 = tpu.dynamic_rotate %269 by %c64_i32_141 dim 1 : vector<8x128xf32>, i32 -> vector<8x128xf32>
    %271 = arith.mulf %263, %270 : vector<8x128xf32>
    %cst_142 = arith.constant dense<0.000000e+00> : vector<8x128xf32>
    %272 = tpu.matmul %59, %96, %cst_142 {dimension_numbers = #tpu.dot_dimension_numbers<[1], [0], [0], [1], [0, 0, 1, 1], [], []>} : vector<8x128xf32>, vector<128x128xf32>, vector<8x128xf32> -> vector<8x128xf32>
    %cst_143 = arith.constant dense<0.000000e+00> : vector<8x128xf32>
    %273 = tpu.matmul %251, %98, %cst_143 {dimension_numbers = #tpu.dot_dimension_numbers<[1], [0], [0], [1], [0, 0, 1, 1], [], []>} : vector<8x128xf32>, vector<128x128xf32>, vector<8x128xf32> -> vector<8x128xf32>
    %274 = arith.addf %272, %273 : vector<8x128xf32>
    %275 = vector.broadcast %100 : vector<1x128xf32> to vector<8x128xf32>
    %276 = arith.addf %274, %275 : vector<8x128xf32>
    %277 = math.tanh %276 : vector<8x128xf32>
    %278 = arith.negf %276 : vector<8x128xf32>
    %279 = math.exp %278 : vector<8x128xf32>
    %cst_144 = arith.constant 1.000000e+00 : f32
    %280 = vector.broadcast %cst_144 : f32 to vector<8x128xf32>
    %281 = arith.addf %280, %279 : vector<8x128xf32>
    %282 = arith.divf %280, %281 : vector<8x128xf32>
    %283 = arith.select %107, %277, %282 : vector<8x128xi1>, vector<8x128xf32>
    %c64_i32_145 = arith.constant 64 : i32
    %284 = tpu.dynamic_rotate %283 by %c64_i32_145 dim 1 : vector<8x128xf32>, i32 -> vector<8x128xf32>
    %285 = arith.mulf %283, %284 : vector<8x128xf32>
    %286 = arith.mulf %283, %248 : vector<8x128xf32>
    %c32_i32_146 = arith.constant 32 : i32
    %287 = tpu.dynamic_rotate %285 by %c32_i32_146 dim 1 : vector<8x128xf32>, i32 -> vector<8x128xf32>
    %288 = arith.addf %286, %287 : vector<8x128xf32>
    %289 = math.tanh %288 : vector<8x128xf32>
    %c64_i32_147 = arith.constant 64 : i32
    %290 = tpu.dynamic_rotate %289 by %c64_i32_147 dim 1 : vector<8x128xf32>, i32 -> vector<8x128xf32>
    %291 = arith.mulf %283, %290 : vector<8x128xf32>
    %cst_148 = arith.constant dense<0.000000e+00> : vector<8x128xf32>
    %292 = tpu.matmul %291, %97, %cst_148 {dimension_numbers = #tpu.dot_dimension_numbers<[1], [0], [0], [1], [0, 0, 1, 1], [], []>} : vector<8x128xf32>, vector<128x128xf32>, vector<8x128xf32> -> vector<8x128xf32>
    %cst_149 = arith.constant dense<0.000000e+00> : vector<8x128xf32>
    %293 = tpu.matmul %271, %99, %cst_149 {dimension_numbers = #tpu.dot_dimension_numbers<[1], [0], [0], [1], [0, 0, 1, 1], [], []>} : vector<8x128xf32>, vector<128x128xf32>, vector<8x128xf32> -> vector<8x128xf32>
    %294 = arith.addf %292, %293 : vector<8x128xf32>
    %295 = vector.broadcast %101 : vector<1x128xf32> to vector<8x128xf32>
    %296 = arith.addf %294, %295 : vector<8x128xf32>
    %297 = math.tanh %296 : vector<8x128xf32>
    %298 = arith.negf %296 : vector<8x128xf32>
    %299 = math.exp %298 : vector<8x128xf32>
    %cst_150 = arith.constant 1.000000e+00 : f32
    %300 = vector.broadcast %cst_150 : f32 to vector<8x128xf32>
    %301 = arith.addf %300, %299 : vector<8x128xf32>
    %302 = arith.divf %300, %301 : vector<8x128xf32>
    %303 = arith.select %107, %297, %302 : vector<8x128xi1>, vector<8x128xf32>
    %c64_i32_151 = arith.constant 64 : i32
    %304 = tpu.dynamic_rotate %303 by %c64_i32_151 dim 1 : vector<8x128xf32>, i32 -> vector<8x128xf32>
    %305 = arith.mulf %303, %304 : vector<8x128xf32>
    %306 = arith.mulf %303, %268 : vector<8x128xf32>
    %c32_i32_152 = arith.constant 32 : i32
    %307 = tpu.dynamic_rotate %305 by %c32_i32_152 dim 1 : vector<8x128xf32>, i32 -> vector<8x128xf32>
    %308 = arith.addf %306, %307 : vector<8x128xf32>
    %309 = math.tanh %308 : vector<8x128xf32>
    %c64_i32_153 = arith.constant 64 : i32
    %310 = tpu.dynamic_rotate %309 by %c64_i32_153 dim 1 : vector<8x128xf32>, i32 -> vector<8x128xf32>
    %311 = arith.mulf %303, %310 : vector<8x128xf32>
    %cst_154 = arith.constant dense<0.000000e+00> : vector<8x128xf32>
    %312 = tpu.matmul %71, %96, %cst_154 {dimension_numbers = #tpu.dot_dimension_numbers<[1], [0], [0], [1], [0, 0, 1, 1], [], []>} : vector<8x128xf32>, vector<128x128xf32>, vector<8x128xf32> -> vector<8x128xf32>
    %cst_155 = arith.constant dense<0.000000e+00> : vector<8x128xf32>
    %313 = tpu.matmul %291, %98, %cst_155 {dimension_numbers = #tpu.dot_dimension_numbers<[1], [0], [0], [1], [0, 0, 1, 1], [], []>} : vector<8x128xf32>, vector<128x128xf32>, vector<8x128xf32> -> vector<8x128xf32>
    %314 = arith.addf %312, %313 : vector<8x128xf32>
    %315 = vector.broadcast %100 : vector<1x128xf32> to vector<8x128xf32>
    %316 = arith.addf %314, %315 : vector<8x128xf32>
    %317 = math.tanh %316 : vector<8x128xf32>
    %318 = arith.negf %316 : vector<8x128xf32>
    %319 = math.exp %318 : vector<8x128xf32>
    %cst_156 = arith.constant 1.000000e+00 : f32
    %320 = vector.broadcast %cst_156 : f32 to vector<8x128xf32>
    %321 = arith.addf %320, %319 : vector<8x128xf32>
    %322 = arith.divf %320, %321 : vector<8x128xf32>
    %323 = arith.select %107, %317, %322 : vector<8x128xi1>, vector<8x128xf32>
    %c64_i32_157 = arith.constant 64 : i32
    %324 = tpu.dynamic_rotate %323 by %c64_i32_157 dim 1 : vector<8x128xf32>, i32 -> vector<8x128xf32>
    %325 = arith.mulf %323, %324 : vector<8x128xf32>
    %326 = arith.mulf %323, %288 : vector<8x128xf32>
    %c32_i32_158 = arith.constant 32 : i32
    %327 = tpu.dynamic_rotate %325 by %c32_i32_158 dim 1 : vector<8x128xf32>, i32 -> vector<8x128xf32>
    %328 = arith.addf %326, %327 : vector<8x128xf32>
    %329 = math.tanh %328 : vector<8x128xf32>
    %c64_i32_159 = arith.constant 64 : i32
    %330 = tpu.dynamic_rotate %329 by %c64_i32_159 dim 1 : vector<8x128xf32>, i32 -> vector<8x128xf32>
    %331 = arith.mulf %323, %330 : vector<8x128xf32>
    %cst_160 = arith.constant dense<0.000000e+00> : vector<8x128xf32>
    %332 = tpu.matmul %331, %97, %cst_160 {dimension_numbers = #tpu.dot_dimension_numbers<[1], [0], [0], [1], [0, 0, 1, 1], [], []>} : vector<8x128xf32>, vector<128x128xf32>, vector<8x128xf32> -> vector<8x128xf32>
    %cst_161 = arith.constant dense<0.000000e+00> : vector<8x128xf32>
    %333 = tpu.matmul %311, %99, %cst_161 {dimension_numbers = #tpu.dot_dimension_numbers<[1], [0], [0], [1], [0, 0, 1, 1], [], []>} : vector<8x128xf32>, vector<128x128xf32>, vector<8x128xf32> -> vector<8x128xf32>
    %334 = arith.addf %332, %333 : vector<8x128xf32>
    %335 = vector.broadcast %101 : vector<1x128xf32> to vector<8x128xf32>
    %336 = arith.addf %334, %335 : vector<8x128xf32>
    %337 = math.tanh %336 : vector<8x128xf32>
    %338 = arith.negf %336 : vector<8x128xf32>
    %339 = math.exp %338 : vector<8x128xf32>
    %cst_162 = arith.constant 1.000000e+00 : f32
    %340 = vector.broadcast %cst_162 : f32 to vector<8x128xf32>
    %341 = arith.addf %340, %339 : vector<8x128xf32>
    %342 = arith.divf %340, %341 : vector<8x128xf32>
    %343 = arith.select %107, %337, %342 : vector<8x128xi1>, vector<8x128xf32>
    %c64_i32_163 = arith.constant 64 : i32
    %344 = tpu.dynamic_rotate %343 by %c64_i32_163 dim 1 : vector<8x128xf32>, i32 -> vector<8x128xf32>
    %345 = arith.mulf %343, %344 : vector<8x128xf32>
    %346 = arith.mulf %343, %308 : vector<8x128xf32>
    %c32_i32_164 = arith.constant 32 : i32
    %347 = tpu.dynamic_rotate %345 by %c32_i32_164 dim 1 : vector<8x128xf32>, i32 -> vector<8x128xf32>
    %348 = arith.addf %346, %347 : vector<8x128xf32>
    %349 = math.tanh %348 : vector<8x128xf32>
    %c64_i32_165 = arith.constant 64 : i32
    %350 = tpu.dynamic_rotate %349 by %c64_i32_165 dim 1 : vector<8x128xf32>, i32 -> vector<8x128xf32>
    %351 = arith.mulf %343, %350 : vector<8x128xf32>
    %cst_166 = arith.constant dense<0.000000e+00> : vector<8x128xf32>
    %352 = tpu.matmul %83, %96, %cst_166 {dimension_numbers = #tpu.dot_dimension_numbers<[1], [0], [0], [1], [0, 0, 1, 1], [], []>} : vector<8x128xf32>, vector<128x128xf32>, vector<8x128xf32> -> vector<8x128xf32>
    %cst_167 = arith.constant dense<0.000000e+00> : vector<8x128xf32>
    %353 = tpu.matmul %331, %98, %cst_167 {dimension_numbers = #tpu.dot_dimension_numbers<[1], [0], [0], [1], [0, 0, 1, 1], [], []>} : vector<8x128xf32>, vector<128x128xf32>, vector<8x128xf32> -> vector<8x128xf32>
    %354 = arith.addf %352, %353 : vector<8x128xf32>
    %355 = vector.broadcast %100 : vector<1x128xf32> to vector<8x128xf32>
    %356 = arith.addf %354, %355 : vector<8x128xf32>
    %357 = math.tanh %356 : vector<8x128xf32>
    %358 = arith.negf %356 : vector<8x128xf32>
    %359 = math.exp %358 : vector<8x128xf32>
    %cst_168 = arith.constant 1.000000e+00 : f32
    %360 = vector.broadcast %cst_168 : f32 to vector<8x128xf32>
    %361 = arith.addf %360, %359 : vector<8x128xf32>
    %362 = arith.divf %360, %361 : vector<8x128xf32>
    %363 = arith.select %107, %357, %362 : vector<8x128xi1>, vector<8x128xf32>
    %c64_i32_169 = arith.constant 64 : i32
    %364 = tpu.dynamic_rotate %363 by %c64_i32_169 dim 1 : vector<8x128xf32>, i32 -> vector<8x128xf32>
    %365 = arith.mulf %363, %364 : vector<8x128xf32>
    %366 = arith.mulf %363, %328 : vector<8x128xf32>
    %c32_i32_170 = arith.constant 32 : i32
    %367 = tpu.dynamic_rotate %365 by %c32_i32_170 dim 1 : vector<8x128xf32>, i32 -> vector<8x128xf32>
    %368 = arith.addf %366, %367 : vector<8x128xf32>
    %369 = math.tanh %368 : vector<8x128xf32>
    %c64_i32_171 = arith.constant 64 : i32
    %370 = tpu.dynamic_rotate %369 by %c64_i32_171 dim 1 : vector<8x128xf32>, i32 -> vector<8x128xf32>
    %371 = arith.mulf %363, %370 : vector<8x128xf32>
    %cst_172 = arith.constant dense<0.000000e+00> : vector<8x128xf32>
    %372 = tpu.matmul %371, %97, %cst_172 {dimension_numbers = #tpu.dot_dimension_numbers<[1], [0], [0], [1], [0, 0, 1, 1], [], []>} : vector<8x128xf32>, vector<128x128xf32>, vector<8x128xf32> -> vector<8x128xf32>
    %cst_173 = arith.constant dense<0.000000e+00> : vector<8x128xf32>
    %373 = tpu.matmul %351, %99, %cst_173 {dimension_numbers = #tpu.dot_dimension_numbers<[1], [0], [0], [1], [0, 0, 1, 1], [], []>} : vector<8x128xf32>, vector<128x128xf32>, vector<8x128xf32> -> vector<8x128xf32>
    %374 = arith.addf %372, %373 : vector<8x128xf32>
    %375 = vector.broadcast %101 : vector<1x128xf32> to vector<8x128xf32>
    %376 = arith.addf %374, %375 : vector<8x128xf32>
    %377 = math.tanh %376 : vector<8x128xf32>
    %378 = arith.negf %376 : vector<8x128xf32>
    %379 = math.exp %378 : vector<8x128xf32>
    %cst_174 = arith.constant 1.000000e+00 : f32
    %380 = vector.broadcast %cst_174 : f32 to vector<8x128xf32>
    %381 = arith.addf %380, %379 : vector<8x128xf32>
    %382 = arith.divf %380, %381 : vector<8x128xf32>
    %383 = arith.select %107, %377, %382 : vector<8x128xi1>, vector<8x128xf32>
    %c64_i32_175 = arith.constant 64 : i32
    %384 = tpu.dynamic_rotate %383 by %c64_i32_175 dim 1 : vector<8x128xf32>, i32 -> vector<8x128xf32>
    %385 = arith.mulf %383, %384 : vector<8x128xf32>
    %386 = arith.mulf %383, %348 : vector<8x128xf32>
    %c32_i32_176 = arith.constant 32 : i32
    %387 = tpu.dynamic_rotate %385 by %c32_i32_176 dim 1 : vector<8x128xf32>, i32 -> vector<8x128xf32>
    %388 = arith.addf %386, %387 : vector<8x128xf32>
    %389 = math.tanh %388 : vector<8x128xf32>
    %c64_i32_177 = arith.constant 64 : i32
    %390 = tpu.dynamic_rotate %389 by %c64_i32_177 dim 1 : vector<8x128xf32>, i32 -> vector<8x128xf32>
    %391 = arith.mulf %383, %390 : vector<8x128xf32>
    %cst_178 = arith.constant dense<0.000000e+00> : vector<8x128xf32>
    %392 = tpu.matmul %95, %96, %cst_178 {dimension_numbers = #tpu.dot_dimension_numbers<[1], [0], [0], [1], [0, 0, 1, 1], [], []>} : vector<8x128xf32>, vector<128x128xf32>, vector<8x128xf32> -> vector<8x128xf32>
    %cst_179 = arith.constant dense<0.000000e+00> : vector<8x128xf32>
    %393 = tpu.matmul %371, %98, %cst_179 {dimension_numbers = #tpu.dot_dimension_numbers<[1], [0], [0], [1], [0, 0, 1, 1], [], []>} : vector<8x128xf32>, vector<128x128xf32>, vector<8x128xf32> -> vector<8x128xf32>
    %394 = arith.addf %392, %393 : vector<8x128xf32>
    %395 = vector.broadcast %100 : vector<1x128xf32> to vector<8x128xf32>
    %396 = arith.addf %394, %395 : vector<8x128xf32>
    %397 = math.tanh %396 : vector<8x128xf32>
    %398 = arith.negf %396 : vector<8x128xf32>
    %399 = math.exp %398 : vector<8x128xf32>
    %cst_180 = arith.constant 1.000000e+00 : f32
    %400 = vector.broadcast %cst_180 : f32 to vector<8x128xf32>
    %401 = arith.addf %400, %399 : vector<8x128xf32>
    %402 = arith.divf %400, %401 : vector<8x128xf32>
    %403 = arith.select %107, %397, %402 : vector<8x128xi1>, vector<8x128xf32>
    %c64_i32_181 = arith.constant 64 : i32
    %404 = tpu.dynamic_rotate %403 by %c64_i32_181 dim 1 : vector<8x128xf32>, i32 -> vector<8x128xf32>
    %405 = arith.mulf %403, %404 : vector<8x128xf32>
    %406 = arith.mulf %403, %368 : vector<8x128xf32>
    %c32_i32_182 = arith.constant 32 : i32
    %407 = tpu.dynamic_rotate %405 by %c32_i32_182 dim 1 : vector<8x128xf32>, i32 -> vector<8x128xf32>
    %408 = arith.addf %406, %407 : vector<8x128xf32>
    %409 = math.tanh %408 : vector<8x128xf32>
    %c64_i32_183 = arith.constant 64 : i32
    %410 = tpu.dynamic_rotate %409 by %c64_i32_183 dim 1 : vector<8x128xf32>, i32 -> vector<8x128xf32>
    %411 = arith.mulf %403, %410 : vector<8x128xf32>
    %cst_184 = arith.constant dense<0.000000e+00> : vector<8x128xf32>
    %412 = tpu.matmul %411, %97, %cst_184 {dimension_numbers = #tpu.dot_dimension_numbers<[1], [0], [0], [1], [0, 0, 1, 1], [], []>} : vector<8x128xf32>, vector<128x128xf32>, vector<8x128xf32> -> vector<8x128xf32>
    %cst_185 = arith.constant dense<0.000000e+00> : vector<8x128xf32>
    %413 = tpu.matmul %391, %99, %cst_185 {dimension_numbers = #tpu.dot_dimension_numbers<[1], [0], [0], [1], [0, 0, 1, 1], [], []>} : vector<8x128xf32>, vector<128x128xf32>, vector<8x128xf32> -> vector<8x128xf32>
    %414 = arith.addf %412, %413 : vector<8x128xf32>
    %415 = vector.broadcast %101 : vector<1x128xf32> to vector<8x128xf32>
    %416 = arith.addf %414, %415 : vector<8x128xf32>
    %417 = math.tanh %416 : vector<8x128xf32>
    %418 = arith.negf %416 : vector<8x128xf32>
    %419 = math.exp %418 : vector<8x128xf32>
    %cst_186 = arith.constant 1.000000e+00 : f32
    %420 = vector.broadcast %cst_186 : f32 to vector<8x128xf32>
    %421 = arith.addf %420, %419 : vector<8x128xf32>
    %422 = arith.divf %420, %421 : vector<8x128xf32>
    %423 = arith.select %107, %417, %422 : vector<8x128xi1>, vector<8x128xf32>
    %c64_i32_187 = arith.constant 64 : i32
    %424 = tpu.dynamic_rotate %423 by %c64_i32_187 dim 1 : vector<8x128xf32>, i32 -> vector<8x128xf32>
    %425 = arith.mulf %423, %424 : vector<8x128xf32>
    %426 = arith.mulf %423, %388 : vector<8x128xf32>
    %c32_i32_188 = arith.constant 32 : i32
    %427 = tpu.dynamic_rotate %425 by %c32_i32_188 dim 1 : vector<8x128xf32>, i32 -> vector<8x128xf32>
    %428 = arith.addf %426, %427 : vector<8x128xf32>
    %429 = math.tanh %428 : vector<8x128xf32>
    %c64_i32_189 = arith.constant 64 : i32
    %430 = tpu.dynamic_rotate %429 by %c64_i32_189 dim 1 : vector<8x128xf32>, i32 -> vector<8x128xf32>
    %431 = arith.mulf %423, %430 : vector<8x128xf32>
    %c0_190 = arith.constant 0 : index
    %c0_191 = arith.constant 0 : index
    %432 = vector.load %arg9[%c0_190, %c0_191] : memref<128x128xf32, #tpu.memory_space<vmem>>, vector<128x128xf32>
    %cst_192 = arith.constant dense<0.000000e+00> : vector<8x128xf32>
    %433 = tpu.matmul %431, %432, %cst_192 {dimension_numbers = #tpu.dot_dimension_numbers<[1], [0], [0], [1], [0, 0, 1, 1], [], []>} : vector<8x128xf32>, vector<128x128xf32>, vector<8x128xf32> -> vector<8x128xf32>
    %c0_193 = arith.constant 0 : index
    %c0_194 = arith.constant 0 : index
    %434 = vector.load %arg10[%c0_193, %c0_194] : memref<1x128xf32, #tpu.memory_space<vmem>>, vector<1x128xf32>
    %435 = vector.broadcast %434 : vector<1x128xf32> to vector<8x128xf32>
    %436 = arith.addf %433, %435 : vector<8x128xf32>
    %c0_195 = arith.constant 0 : index
    %c0_196 = arith.constant 0 : index
    %437 = vector.load %arg11[%c0_195, %c0_196] : memref<8x128xf32, #tpu.memory_space<vmem>>, vector<8x128xf32>
    tpu.vector_store %arg11[%c0_195, %c0_196], %436 {strides = array<i32>} : memref<8x128xf32, #tpu.memory_space<vmem>>, vector<8x128xf32>,
    return
  }
}

</mosaic_0001>

<bundles_post_ra>
// kernel: tpu_custom_call.1
= control target key start
LH: loop header
LB: loop body
LE: loop exit
PB: predicated region body
PF: predicated region fallthrough
CT: control target
= control target key end

     0   :  { %16 = vsyncpa [#allocation3], 0  ;;  %s8205_s0 = inlined_call_operand.hbm [shape: f32[8,8,64], index: 0, kind: input, shape index: {}]   ;;  %s8206_s1 = inlined_call_operand.hbm [shape: bf16[8,64,128], index: 1, kind: input, shape index: {}]   ;;  %s8207_s2 = inlined_call_operand.hbm [shape: f32[8,1,128], index: 2, kind: input, shape index: {}]   ;;  %s8208_s3 = inlined_call_operand.hbm [shape: f32[128,128], index: 3, kind: input, shape index: {}]   ;;  %s8209_s4 = inlined_call_operand.hbm [shape: f32[128,128], index: 4, kind: input, shape index: {}]   ;;  %s8210_s5 = inlined_call_operand.vmem [shape: f32[1,128], index: 5, kind: input, shape index: {}]   ;;  %s8211_s6 = inlined_call_operand.hbm [shape: f32[128,128], index: 6, kind: input, shape index: {}]   ;;  %s8212_s7 = inlined_call_operand.hbm [shape: f32[128,128], index: 7, kind: input, shape index: {}]   ;;  %s8213_s8 = inlined_call_operand.vmem [shape: f32[1,128], index: 8, kind: input, shape index: {}]   ;;  %s8214_s9 = inlined_call_operand.hbm [shape: f32[128,128], index: 9, kind: input, shape index: {}]   ;;  %s8215_s10 = inlined_call_operand.vmem [shape: f32[1,128], index: 10, kind: input, shape index: {}]   ;;  %s8216_s11 = inlined_call_operand.hbm [shape: f32[8,128], index: 11, kind: output, shape index: {}]  }
   0x1   :  { %17 = vsyncpa [#allocation6], 0 }
   0x2   :  { %18 = vsyncpa [#allocation9], 0 }
   0x3   :  { %19 = vsyncpa [#allocation12], 0 }
   0x4   :  { %20 = vsyncpa [#allocation15], 0 }
   0x5   :  { %21 = vsyncpa [#allocation4], 0  ;;  %s7084_s17 = smov [#allocation5]   ;;  %s6874_s21 = scalar_lea.hbm %s8206_s1, 4096 }
   0x6   :  { %s39_s18 = sshll.u32 %s7084_s17, 4  ;;  %p6875_p0 = scmp.ne.s32.totalorder %s8206_s1, %s6874_s21  ;;  %s40_s18 = int_to_ptr.vmem [resolvable:$true] %s39_s18 }
   0x7   :  { %p6878_p1 = scmp.lt.u32.totalorder %s6874_s21, %s8206_s1 }
   0x9   :  { %p6880_p2 = pnand %p6878_p1, %p6875_p0 }
   0xb   :  { %6883 = shalt.err (!%p6880_p2)
}
   0xc   :  { %s6884_s26 = scalar_lea.vmem %s40_s18, 4096  ;;  %p6889_p4 = scmp.lt.s32.totalorder %s40_s18, %s40_s18 }
   0xd   :  { %p6885_p3 = scmp.ne.s32.totalorder %s40_s18, %s6884_s26  ;;  %p6890_p5 = scmp.lt.s32.totalorder %s6884_s26, %s6884_s26 }
   0xf   :  { %p6891_p6 = por %p6890_p5, %p6889_p4 }
  0x11   :  { %p6892_p7 = pnand %p6891_p6, %p6885_p3 }
  0x13   :  { %6895 = shalt.err (!%p6892_p7)
}
  0x14   :  { %s7085_s27 = smov 64   ;;  %s7086_s28 = smov 4  }
  0x15   :  { %45 = dma.hbm_to_vmem [thread:$0]  %s8206_s1, 4096, %s40_s18, [#allocation6], %s7085_s27, %s7085_s27, %s7086_s28  }
  0x16   :  { %s7087_s12 = smov [#allocation8]   ;;  %s7088_s14 = smov [#allocation11]  }
  0x17   :  { %s63_s13 = sshll.u32 %s7087_s12, 4  ;;  %s89_s15 = sshll.u32 %s7088_s14, 4  ;;  %s64_s13 = int_to_ptr.vmem [resolvable:$true] %s63_s13  ;;  %s90_s15 = int_to_ptr.vmem [resolvable:$true] %s89_s15 }
  0x18   :  { %s6896_s19 = scalar_lea.hbm %s8208_s3, 2048 }
  0x19   :  { %p6897_p8 = scmp.ne.s32.totalorder %s8208_s3, %s6896_s19  ;;  %p6900_p9 = scmp.lt.u32.totalorder %s6896_s19, %s8208_s3 }
  0x1b   :  { %p6902_p10 = pnand %p6900_p9, %p6897_p8 }
  0x1d   :  { %6905 = shalt.err (!%p6902_p10)
}
  0x1e   :  { %s6906_s1 = scalar_lea.vmem %s64_s13, 2048  ;;  %p6911_p12 = scmp.lt.s32.totalorder %s64_s13, %s64_s13 }
  0x1f   :  { %p6907_p11 = scmp.ne.s32.totalorder %s64_s13, %s6906_s1  ;;  %p6912_p13 = scmp.lt.s32.totalorder %s6906_s1, %s6906_s1 }
  0x21   :  { %p6913_p0 = por %p6912_p13, %p6911_p12 }
  0x23   :  { %p6914_p1 = pnand %p6913_p0, %p6907_p11 }
  0x25   :  { %6917 = shalt.err (!%p6914_p1)
}
  0x26   :  { %s7089_s18 = smov 128   ;;  %s7090_s24 = smov 8  }
  0x27   :  { %69 = dma.hbm_to_vmem [thread:$0]  %s8208_s3, 2048, %s64_s13, [#allocation9], %s7089_s18, %s7089_s18, %s7090_s24  }
  0x28   :  { %s6918_s30 = scalar_lea.hbm %s8211_s6, 2048 }
  0x29   :  { %p6919_p2 = scmp.ne.s32.totalorder %s8211_s6, %s6918_s30  ;;  %p6922_p3 = scmp.lt.u32.totalorder %s6918_s30, %s8211_s6 }
  0x2b   :  { %p6924_p4 = pnand %p6922_p3, %p6919_p2 }
  0x2d   :  { %6927 = shalt.err (!%p6924_p4)
}
  0x2e   :  { %s6928_s19 = scalar_lea.vmem %s90_s15, 2048  ;;  %p6933_p6 = scmp.lt.s32.totalorder %s90_s15, %s90_s15 }
  0x2f   :  { %p6929_p5 = scmp.ne.s32.totalorder %s90_s15, %s6928_s19  ;;  %p6934_p7 = scmp.lt.s32.totalorder %s6928_s19, %s6928_s19 }
  0x31   :  { %p6935_p8 = por %p6934_p7, %p6933_p6 }
  0x33   :  { %p6936_p9 = pnand %p6935_p8, %p6929_p5 }
  0x35   :  { %6939 = shalt.err (!%p6936_p9)
}
  0x36   :  { %95 = dma.hbm_to_vmem [thread:$0]  %s8211_s6, 2048, %s90_s15, [#allocation12], %s7089_s18, %s7089_s18, %s7090_s24  }
  0x37   :  { %s7091_s20 = smov [#allocation2]   ;;  %s7092_s22 = smov [#allocation7]  }
  0x38   :  { %s27_s21 = sshll.u32 %s7091_s20, 4  ;;  %s51_s23 = sshll.u32 %s7092_s22, 4  ;;  %s28_s21 = int_to_ptr.vmem [resolvable:$true] %s27_s21  ;;  %s52_s23 = int_to_ptr.vmem [resolvable:$true] %s51_s23 }
  0x39   :  { %s6940_s26 = scalar_lea.hbm %s8205_s0, 1024 }
  0x3a   :  { %p6941_p10 = scmp.ne.s32.totalorder %s8205_s0, %s6940_s26  ;;  %p6944_p11 = scmp.lt.u32.totalorder %s6940_s26, %s8205_s0 }
  0x3c   :  { %p6946_p12 = pnand %p6944_p11, %p6941_p10 }
  0x3e   :  { %6949 = shalt.err (!%p6946_p12)
}
  0x3f   :  { %s6950_s6 = scalar_lea.vmem %s28_s21, 1024  ;;  %p6955_p0 = scmp.lt.s32.totalorder %s28_s21, %s28_s21 }
  0x40   :  { %p6951_p13 = scmp.ne.s32.totalorder %s28_s21, %s6950_s6  ;;  %p6956_p1 = scmp.lt.s32.totalorder %s6950_s6, %s6950_s6 }
  0x42   :  { %p6957_p2 = por %p6956_p1, %p6955_p0 }
  0x44   :  { %p6958_p3 = pnand %p6957_p2, %p6951_p13 }
  0x46   :  { %6961 = shalt.err (!%p6958_p3)
}
  0x47   :  { %33 = dma.hbm_to_vmem [thread:$0]  %s8205_s0, 1024, %s28_s21, [#allocation3], %s7089_s18, %s7089_s18, %s7090_s24  }
  0x48   :  { %s6962_s19 = scalar_lea.hbm %s8207_s2, 128 }
  0x49   :  { %p6963_p4 = scmp.ne.s32.totalorder %s8207_s2, %s6962_s19  ;;  %p6966_p5 = scmp.lt.u32.totalorder %s6962_s19, %s8207_s2 }
  0x4b   :  { %p6968_p6 = pnand %p6966_p5, %p6963_p4 }
  0x4d   :  { %6971 = shalt.err (!%p6968_p6)
}
  0x4e   :  { %s6972_s1 = scalar_lea.vmem %s52_s23, 128  ;;  %p6977_p8 = scmp.lt.s32.totalorder %s52_s23, %s52_s23 }
  0x4f   :  { %p6973_p7 = scmp.ne.s32.totalorder %s52_s23, %s6972_s1  ;;  %p6978_p9 = scmp.lt.s32.totalorder %s6972_s1, %s6972_s1 }
  0x51   :  { %p6979_p10 = por %p6978_p9, %p6977_p8 }
  0x53   :  { %p6980_p11 = pnand %p6979_p10, %p6973_p7 }
  0x55   :  { %6983 = shalt.err (!%p6980_p11)
}
  0x56   :  { %s7093_s0 = smov 16   ;;  %s7094_s21 = smov 1  }
  0x57   :  { %57 = dma.hbm_to_vmem [thread:$0]  %s8207_s2, 128, %s52_s23, [#allocation6], %s7093_s0, %s7093_s0, %s7094_s21  }
  0x58   :  { %s7095_s28 = smov [#allocation10]   ;;  %s7096_s30 = smov [#allocation13]  }
  0x59   :  { %s75_s29 = sshll.u32 %s7095_s28, 4  ;;  %s101_s12 = sshll.u32 %s7096_s30, 4  ;;  %s76_s29 = int_to_ptr.vmem [resolvable:$true] %s75_s29  ;;  %s102_s12 = int_to_ptr.vmem [resolvable:$true] %s101_s12 }
  0x5a   :  { %s6984_s14 = scalar_lea.hbm %s8209_s4, 2048 }
  0x5b   :  { %p6985_p12 = scmp.ne.s32.totalorder %s8209_s4, %s6984_s14  ;;  %p6988_p13 = scmp.lt.u32.totalorder %s6984_s14, %s8209_s4 }
  0x5d   :  { %p6990_p0 = pnand %p6988_p13, %p6985_p12 }
  0x5f   :  { %6993 = shalt.err (!%p6990_p0)
}
  0x60   :  { %s6994_s2 = scalar_lea.vmem %s76_s29, 2048  ;;  %p6999_p2 = scmp.lt.s32.totalorder %s76_s29, %s76_s29 }
  0x61   :  { %p6995_p1 = scmp.ne.s32.totalorder %s76_s29, %s6994_s2  ;;  %p7000_p3 = scmp.lt.s32.totalorder %s6994_s2, %s6994_s2 }
  0x63   :  { %p7001_p4 = por %p7000_p3, %p6999_p2 }
  0x65   :  { %p7002_p5 = pnand %p7001_p4, %p6995_p1 }
  0x67   :  { %7005 = shalt.err (!%p7002_p5)
}
  0x68   :  { %81 = dma.hbm_to_vmem [thread:$0]  %s8209_s4, 2048, %s76_s29, [#allocation9], %s7089_s18, %s7089_s18, %s7090_s24  }
  0x69   :  { %s7006_s1 = scalar_lea.hbm %s8212_s7, 2048 }
  0x6a   :  { %p7007_p6 = scmp.ne.s32.totalorder %s8212_s7, %s7006_s1  ;;  %p7010_p7 = scmp.lt.u32.totalorder %s7006_s1, %s8212_s7 }
  0x6c   :  { %p7012_p8 = pnand %p7010_p7, %p7007_p6 }
  0x6e   :  { %7015 = shalt.err (!%p7012_p8)
}
  0x6f   :  { %s7016_s28 = scalar_lea.vmem %s102_s12, 2048  ;;  %p7021_p10 = scmp.lt.s32.totalorder %s102_s12, %s102_s12 }
  0x70   :  { %p7017_p9 = scmp.ne.s32.totalorder %s102_s12, %s7016_s28  ;;  %p7022_p11 = scmp.lt.s32.totalorder %s7016_s28, %s7016_s28 }
  0x72   :  { %p7023_p12 = por %p7022_p11, %p7021_p10 }
  0x74   :  { %p7024_p13 = pnand %p7023_p12, %p7017_p9 }
  0x76   :  { %7027 = shalt.err (!%p7024_p13)
}
  0x77   :  { %107 = dma.hbm_to_vmem [thread:$0]  %s8212_s7, 2048, %s102_s12, [#allocation12], %s7089_s18, %s7089_s18, %s7090_s24  }
  0x78   :  { %s7097_s30 = smov [#allocation14]   ;;  %s7028_s16 = scalar_lea.hbm %s8214_s9, 2048 }
  0x79   :  { %s115_s6 = sshll.u32 %s7097_s30, 4  ;;  %p7029_p0 = scmp.ne.s32.totalorder %s8214_s9, %s7028_s16  ;;  %s116_s6 = int_to_ptr.vmem [resolvable:$true] %s115_s6 }
  0x7a   :  { %p7032_p1 = scmp.lt.u32.totalorder %s7028_s16, %s8214_s9 }
  0x7c   :  { %p7034_p2 = pnand %p7032_p1, %p7029_p0 }
  0x7e   :  { %7037 = shalt.err (!%p7034_p2)
}
  0x7f   :  { %s7038_s23 = scalar_lea.vmem %s116_s6, 2048  ;;  %p7043_p4 = scmp.lt.s32.totalorder %s116_s6, %s116_s6 }
  0x80   :  { %p7039_p3 = scmp.ne.s32.totalorder %s116_s6, %s7038_s23  ;;  %p7044_p5 = scmp.lt.s32.totalorder %s7038_s23, %s7038_s23 }
  0x82   :  { %p7045_p6 = por %p7044_p5, %p7043_p4 }
  0x84   :  { %p7046_p7 = pnand %p7045_p6, %p7039_p3 }
  0x86   :  { %7049 = shalt.err (!%p7046_p7)
}
  0x87   :  { %121 = dma.hbm_to_vmem [thread:$0]  %s8214_s9, 2048, %s116_s6, [#allocation15], %s7089_s18, %s7089_s18, %s7090_s24  }
  0x88   :  { %7072 = dma.done.wait [#allocation3], 1024  }
  0x89   :  { %7073 = vsyncadd [#allocation3], 4294966272 }
  0x8a   :  { %7074 = dma.done.wait [#allocation6], 4224  }
  0x8b   :  { %7075 = vsyncadd [#allocation6], 4294963072 }
  0x8c   :  { %7076 = dma.done.wait [#allocation9], 4096  }
  0x8d   :  { %7077 = vsyncadd [#allocation9], 4294963200 }
  0x8e   :  { %7078 = dma.done.wait [#allocation12], 4096  }
  0x8f   :  { %7079 = vsyncadd [#allocation12], 4294963200 }
  0x90   :  { %7080 = dma.done.wait [#allocation15], 2048  }
  0x91   :  { %7081 = vsyncadd [#allocation15], 4294965248  ;;  %v7098_v0 = vmov 0.0|0.0   ;;  %vm7099_vm0 = vmmov 0   ;;  %v7100_v1 = vmov 0.0   ;;  %v3746_v2 = vld [vmem:[#allocation5] sm:$0xff]  }
  0x92   :  { %5837 = vmatprep.subr.bf16.mxu1 %v7098_v0  ;;  %4546 = vmatprep.mubr.msk.f32.mxu1 %vm7099_vm0, %v7100_v1  ;;  %v3873_v3 = vld [vmem:[#allocation5 + $0x8] sm:$0xff]   ;;  %v3778_v4 = vld [vmem:[#allocation5 + $0x40] sm:$0xff]   ;;  %v3874_v6 = vld [vmem:[#allocation5 + $0x10] sm:$0xff]   ;;  %vm172_vm1 = vcmask 523264   ;;  %s7101_s24 = smov 32   ;;  %s7102_s25 = smov [#allocation16]  }
  0x93   :  { %5861 = vmatprep.subr.bf16.mxu0 %v7098_v0  ;;  %4584 = vmatprep.mubr.msk.f32.mxu0 %vm7099_vm0, %v7100_v1  ;;  %v3879_v5 = vld [vmem:[#allocation5 + $0x48] sm:$0xff]   ;;  %v3880_v7 = vld [vmem:[#allocation5 + $0x50] sm:$0xff]   ;;  %v3875_v8 = vld [vmem:[#allocation5 + $0x18] sm:$0xff]   ;;  %s3697_s26 = sshll.u32 %s7102_s25, 4  ;;  %s3698_s26 = int_to_ptr.vmem [resolvable:$true] %s3697_s26 }
  0x94   :  { %5839 = vmatpush3.bf16.msra.mxu1 %v3746_v2  ;;  %5863 = vmatpush3.bf16.msra.mxu0 %v3778_v4  ;;  %v164_v9 = vld [vmem:[#allocation2] sm:$0xff]  ;;  %v3881_v10 = vld [vmem:[#allocation5 + $0x58] sm:$0xff]   ;;  %v366_v12 = vld [vmem:[#allocation2 + $0x10] sm:$0xff]  ;;  %s7050_s28 = scalar_lea.vmem %s3698_s26, 128  ;;  %p7055_p9 = scmp.lt.s32.totalorder %s3698_s26, %s3698_s26 }
  0x95   :  { %5840 = vmatprep.subr.bf16.mxu1 %v7098_v0  ;;  %5864 = vmatprep.subr.bf16.mxu0 %v7098_v0  ;;  %v3762_v11 = vld [vmem:[#allocation5 + $0x20] sm:$0xff]   ;;  %v3876_v14 = vld [vmem:[#allocation5 + $0x28] sm:$0xff]   ;;  %v3877_v16 = vld [vmem:[#allocation5 + $0x30] sm:$0xff]   ;;  %p7051_p8 = scmp.ne.s32.totalorder %s3698_s26, %s7050_s28  ;;  %p7056_p10 = scmp.lt.s32.totalorder %s7050_s28, %s7050_s28 }
  0x96   :  { %v3810_v13 = vld [vmem:[#allocation5 + $0x80] sm:$0xff]   ;;  %v3885_v15 = vld [vmem:[#allocation5 + $0x88] sm:$0xff]   ;;  %v3886_v17 = vld [vmem:[#allocation5 + $0x90] sm:$0xff]  }
  0x97   :  { %v3878_v18 = vld [vmem:[#allocation5 + $0x38] sm:$0xff]   ;;  %v265_v19 = vld [vmem:[#allocation2 + $0x8] sm:$0xff]  ;;  %v3794_v21 = vld [vmem:[#allocation5 + $0x60] sm:$0xff]   ;;  %p7057_p11 = por %p7056_p10, %p7055_p9 }
  0x98   :  { %5842 = vmatpush3.bf16.msra.mxu1 %v3873_v3  ;;  %5866 = vmatpush3.bf16.msra.mxu0 %v3879_v5  ;;  %v3887_v20 = vld [vmem:[#allocation5 + $0x98] sm:$0xff]   ;;  %v568_v22 = vld [vmem:[#allocation2 + $0x20] sm:$0xff]  ;;  %v3882_v24 = vld [vmem:[#allocation5 + $0x68] sm:$0xff]  }
  0x99   :  { %5843 = vmatprep.subr.bf16.mxu1 %v7098_v0  ;;  %5867 = vmatprep.subr.bf16.mxu0 %v7098_v0  ;;  %v3842_v23 = vld [vmem:[#allocation5 + $0xc0] sm:$0xff]   ;;  %v3891_v25 = vld [vmem:[#allocation5 + $0xc8] sm:$0xff]   ;;  %v3883_v26 = vld [vmem:[#allocation5 + $0x70] sm:$0xff]   ;;  %p7058_p12 = pnand %p7057_p11, %p7051_p8 }
  0x9a   :  { %v3892_v27 = vld [vmem:[#allocation5 + $0xd0] sm:$0xff]   ;;  %v3884_v28 = vld [vmem:[#allocation5 + $0x78] sm:$0xff]   ;;  %v986_v31 = vld [vmem:[#allocation10] sm:$0xff] }
  0x9b   :  { %v467_v29 = vld [vmem:[#allocation2 + $0x18] sm:$0xff]  ;;  %v987_v32 = vld [vmem:[#allocation10 + $0x8] sm:$0xff]  ;;  %v3826_v33 = vld [vmem:[#allocation5 + $0xa0] sm:$0xff]  }
  0x9c   :  { %5845 = vmatpush3.bf16.msra.mxu1 %v3874_v6  ;;  %5869 = vmatpush3.bf16.msra.mxu0 %v3880_v7  ;;  %v3893_v30 = vld [vmem:[#allocation5 + $0xd8] sm:$0xff]   ;;  %v770_v34 = vld [vmem:[#allocation2 + $0x30] sm:$0xff]  ;;  %v7321_v35 = vpack.c.bf16 %v987_v32, %v986_v31  ;;  %v989_v37 = vld [vmem:[#allocation10 + $0x18] sm:$0xff] }
  0x9d   :  { %5846 = vmatprep.subr.bf16.mxu1 %v7098_v0  ;;  %5870 = vmatprep.subr.bf16.mxu0 %v7098_v0  ;;  %v988_v36 = vld [vmem:[#allocation10 + $0x10] sm:$0xff]  ;;  %v3888_v38 = vld [vmem:[#allocation5 + $0xa8] sm:$0xff]   ;;  %v991_v41 = vld [vmem:[#allocation10 + $0x28] sm:$0xff] }
  0x9e   :  { %v7329_v39 = vpack.c.bf16 %v989_v37, %v988_v36  ;;  %v990_v40 = vld [vmem:[#allocation10 + $0x20] sm:$0xff]  ;;  %v3889_v42 = vld [vmem:[#allocation5 + $0xb0] sm:$0xff]   ;;  %v992_v44 = vld [vmem:[#allocation10 + $0x30] sm:$0xff] }
  0x9f   :  { %v7336_v43 = vpack.c.bf16 %v991_v41, %v990_v40  ;;  %v993_v45 = vld [vmem:[#allocation10 + $0x38] sm:$0xff]  ;;  %v3890_v46 = vld [vmem:[#allocation5 + $0xb8] sm:$0xff]   ;;  %v669_v48 = vld [vmem:[#allocation2 + $0x28] sm:$0xff] }
  0xa0   :  { %5848 = vmatpush3.bf16.msra.mxu1 %v3875_v8  ;;  %5872 = vmatpush3.bf16.msra.mxu0 %v3881_v10  ;;  %v7341_v47 = vpack.c.bf16 %v993_v45, %v992_v44  ;;  %v994_v49 = vld [vmem:[#allocation10 + $0x40] sm:$0xff]  ;;  %v995_v50 = vld [vmem:[#allocation10 + $0x48] sm:$0xff]  ;;  %v3858_v51 = vld [vmem:[#allocation5 + $0xe0] sm:$0xff]  }
  0xa1   :  { %5849 = vmatprep.subr.bf16.mxu1 %v7098_v0  ;;  %5885 = vmatprep.subr.bf16.mxu0 %v7098_v0  ;;  %v7347_v52 = vpack.c.bf16 %v995_v50, %v994_v49  ;;  %v996_v53 = vld [vmem:[#allocation10 + $0x50] sm:$0xff]  ;;  %v997_v54 = vld [vmem:[#allocation10 + $0x58] sm:$0xff]  ;;  %v3894_v55 = vld [vmem:[#allocation5 + $0xe8] sm:$0xff]  }
  0xa2   :  { %v7354_v56 = vpack.c.bf16 %v997_v54, %v996_v53  ;;  %v998_v57 = vld [vmem:[#allocation10 + $0x60] sm:$0xff]  ;;  %v999_v58 = vld [vmem:[#allocation10 + $0x68] sm:$0xff]  ;;  %v3896_v61 = vld [vmem:[#allocation5 + $0xf8] sm:$0xff]  }
  0xa3   :  { %4547 = vmatmul.mubr.msk.f32.vlgmr.msra.gmra.mrb[0].mxu1 %vm172_vm1, %v164_v9  ;;  %4585 = vmatmul.mubr.msk.f32.vlgmr.msra.gmra.mrb[0].mxu0 %vm172_vm1, %v366_v12  ;;  %v3895_v59 = vld [vmem:[#allocation5 + $0xf0] sm:$0xff]   ;;  %v7359_v60 = vpack.c.bf16 %v999_v58, %v998_v57  ;;  %v954_v62 = vld [vmem:[#allocation8] sm:$0xff]  ;;  %v871_v2 = vld [vmem:[#allocation2 + $0x38] sm:$0xff] }
  0xa4   :  { %5851 = vmatpush3.bf16.msra.mxu1 %v3762_v11  ;;  %4565 = vmatprep.mubr.msk.f32.mxu1 %vm7099_vm0, %v7100_v1  ;;  %v955_v63 = vld [vmem:[#allocation8 + $0x8] sm:$0xff]  ;;  %v956_v4 = vld [vmem:[#allocation8 + $0x10] sm:$0xff]  ;;  %v957_v5 = vld [vmem:[#allocation8 + $0x18] sm:$0xff] }
  0xa5   :  { %5852 = vmatprep.subr.bf16.mxu1 %v7098_v0  ;;  %5887 = vmatpush3.bf16.msra.mxu0 %v3810_v13  ;;  %v7364_v3 = vpack.c.bf16 %v955_v63, %v954_v62  ;;  %v7370_v6 = vpack.c.bf16 %v957_v5, %v956_v4  ;;  %v958_v7 = vld [vmem:[#allocation8 + $0x20] sm:$0xff]  ;;  %v959_v8 = vld [vmem:[#allocation8 + $0x28] sm:$0xff]  ;;  %v960_v10 = vld [vmem:[#allocation8 + $0x30] sm:$0xff]  ;;  %v1020_v63 = vlaneseq }
  0xa6   :  { %4622 = vmatprep.mubr.msk.f32.mxu0 %vm7099_vm0, %v7100_v1  ;;  %5888 = vmatprep.subr.bf16.mxu0 %v7098_v0  ;;  %v7376_v9 = vpack.c.bf16 %v959_v8, %v958_v7  ;;  %v961_v11 = vld [vmem:[#allocation8 + $0x38] sm:$0xff]  ;;  %v962_v13 = vld [vmem:[#allocation8 + $0x40] sm:$0xff] }
  0xa7   :  { %v7380_v12 = vpack.c.bf16 %v961_v11, %v960_v10  ;;  %v7427_v54 = vld [vmem:[%s8210_s5] ss:$0 sm:$0xff]  ;;  %v1021_v4 = vand.u32 127, %v1020_v63  ;;  %v978_v63 = vld [vmem:[#allocation11 + $0x40] sm:$0xff] }
  0xa8   :  { %5854 = vmatpush3.bf16.msra.mxu1 %v3876_v14  ;;  %v963_v14 = vld [vmem:[#allocation8 + $0x48] sm:$0xff] }
  0xa9   :  { %5855 = vmatprep.subr.bf16.mxu1 %v7098_v0  ;;  %5890 = vmatpush3.bf16.msra.mxu0 %v3885_v15  ;;  %v7384_v15 = vpack.c.bf16 %v963_v14, %v962_v13  ;;  %vm1022_vm2 = vcmp.ge.s32.totalorder %v1021_v4, 64  ;;  %vm1023_vm3 = vcmp.lt.s32.totalorder %v1021_v4, 96  ;;  %v1002_v14 = vld [vmem:[#allocation13] sm:$0xff] }
  0xaa   :  { %5891 = vmatprep.subr.bf16.mxu0 %v7098_v0  ;;  %vm7430_vm4 = vmand %vm1022_vm2, %vm1023_vm3 }
  0xac   :  { %5857 = vmatpush3.bf16.msra.mxu1 %v3877_v16  ;;  %v964_v16 = vld [vmem:[#allocation8 + $0x50] sm:$0xff] }
  0xad   :  { %5858 = vmatprep.subr.bf16.mxu1 %v7098_v0  ;;  %5893 = vmatpush3.bf16.msra.mxu0 %v3886_v17  ;;  %v965_v17 = vld [vmem:[#allocation8 + $0x58] sm:$0xff] }
  0xae   :  { %5894 = vmatprep.subr.bf16.mxu0 %v7098_v0 }
  0xb0   :  { %5860 = vmatpush3.bf16.msra.mxu1 %v3878_v18  ;;  %v7388_v18 = vpack.c.bf16 %v965_v17, %v964_v16  ;;  %v1003_v16 = vld [vmem:[#allocation13 + $0x8] sm:$0xff]  ;;  %v1004_v17 = vld [vmem:[#allocation13 + $0x10] sm:$0xff] }
  0xb1   :  { %5873 = vmatprep.subr.bf16.mxu1 %v7098_v0  ;;  %5896 = vmatpush3.bf16.msra.mxu0 %v3887_v20  ;;  %v1001_v20 = vld [vmem:[#allocation10 + $0x78] sm:$0xff] }
  0xb2   :  { %5909 = vmatprep.subr.bf16.mxu0 %v7098_v0 }
  0xb3   :  { %4566 = vmatmul.mubr.msk.f32.vlgmr.msra.gmra.mrb[2].mxu1 %vm172_vm1, %v265_v19  ;;  %v1000_v19 = vld [vmem:[#allocation10 + $0x70] sm:$0xff] }
  0xb4   :  { %5875 = vmatpush3.bf16.msra.mxu1 %v3794_v21  ;;  %4603 = vmatprep.mubr.msk.f32.mxu1 %vm7099_vm0, %v7100_v1  ;;  %v966_v21 = vld [vmem:[#allocation8 + $0x60] sm:$0xff] }
  0xb5   :  { %5876 = vmatprep.subr.bf16.mxu1 %v7098_v0  ;;  %4623 = vmatmul.mubr.msk.f32.vlgmr.msra.gmra.mrb[2].mxu0 %vm172_vm1, %v568_v22  ;;  %v967_v22 = vld [vmem:[#allocation8 + $0x68] sm:$0xff] }
  0xb6   :  { %5911 = vmatpush3.bf16.msra.mxu0 %v3842_v23  ;;  %4660 = vmatprep.mubr.msk.f32.mxu0 %vm7099_vm0, %v7100_v1  ;;  %v7391_v23 = vpack.c.bf16 %v1001_v20, %v1000_v19  ;;  %v7442_v19 = vpack.c.bf16 %v1003_v16, %v1002_v14  ;;  %v1005_v20 = vld [vmem:[#allocation13 + $0x18] sm:$0xff] }
  0xb7   :  { %5912 = vmatprep.subr.bf16.mxu0 %v7098_v0  ;;  %v981_v14 = vld [vmem:[#allocation11 + $0x58] sm:$0xff] }
  0xb8   :  { %5878 = vmatpush3.bf16.msra.mxu1 %v3882_v24  ;;  %v7395_v24 = vpack.c.bf16 %v967_v22, %v966_v21  ;;  %v7445_v21 = vpack.c.bf16 %v1005_v20, %v1004_v17  ;;  %v1006_v22 = vld [vmem:[#allocation13 + $0x20] sm:$0xff]  ;;  %v1016_v17 = vld [vmem:[#allocation13 + $0x70] sm:$0xff]  ;;  %v1017_v20 = vld [vmem:[#allocation13 + $0x78] sm:$0xff] }
  0xb9   :  { %5879 = vmatprep.subr.bf16.mxu1 %v7098_v0 }
  0xba   :  { %5914 = vmatpush3.bf16.msra.mxu0 %v3891_v25  ;;  %v968_v25 = vld [vmem:[#allocation8 + $0x70] sm:$0xff] }
  0xbb   :  { %5915 = vmatprep.subr.bf16.mxu0 %v7098_v0 }
  0xbc   :  { %5881 = vmatpush3.bf16.msra.mxu1 %v3883_v26  ;;  %v969_v26 = vld [vmem:[#allocation8 + $0x78] sm:$0xff] }
  0xbd   :  { %5882 = vmatprep.subr.bf16.mxu1 %v7098_v0 }
  0xbe   :  { %5917 = vmatpush3.bf16.msra.mxu0 %v3892_v27  ;;  %v7403_v27 = vpack.c.bf16 %v969_v26, %v968_v25  ;;  %v1007_v25 = vld [vmem:[#allocation13 + $0x28] sm:$0xff]  ;;  %v970_v26 = vld [vmem:[#allocation11] sm:$0xff] }
  0xbf   :  { %5918 = vmatprep.subr.bf16.mxu0 %v7098_v0 }
  0xc0   :  { %5884 = vmatpush3.bf16.msra.mxu1 %v3884_v28  ;;  %v3710_v28 = vld [vmem:[#allocation7] ss:$0 sm:$0xff] }
  0xc1   :  { %5897 = vmatprep.subr.bf16.mxu1 %v7098_v0 }
  0xc2   :  { %5920 = vmatpush3.bf16.msra.mxu0 %v3893_v30 }
  0xc3   :  { %4604 = vmatmul.mubr.msk.f32.vlgmr.msra.gmra.mrb[4].mxu1 %vm172_vm1, %v467_v29  ;;  %5933 = vmatprep.subr.bf16.mxu0 %v7098_v0 }
  0xc4   :  { %5899 = vmatpush3.bf16.msra.mxu1 %v3826_v33  ;;  %4641 = vmatprep.mubr.msk.f32.mxu1 %vm7099_vm0, %v7100_v1 }
  0xc5   :  { %5900 = vmatprep.subr.bf16.mxu1 %v7098_v0  ;;  %4661 = vmatmul.mubr.msk.f32.vlgmr.msra.gmra.mrb[4].mxu0 %vm172_vm1, %v770_v34 }
  0xc6   :  { %5935 = vmatpush3.bf16.msra.mxu0 %v7321_v35  ;;  %4714 = vmatprep.mubr.msk.f32.mxu0 %vm7099_vm0, %v7100_v1 }
  0xc7   :  { %5936 = vmatprep.subr.bf16.mxu0 %v7098_v0 }
  0xc8   :  { %5902 = vmatpush3.bf16.msra.mxu1 %v3888_v38 }
  0xc9   :  { %5903 = vmatprep.subr.bf16.mxu1 %v7098_v0 }
  0xca   :  { %5938 = vmatpush3.bf16.msra.mxu0 %v7329_v39 }
  0xcb   :  { %5939 = vmatprep.subr.bf16.mxu0 %v7098_v0 }
  0xcc   :  { %5905 = vmatpush3.bf16.msra.mxu1 %v3889_v42 }
  0xcd   :  { %5906 = vmatprep.subr.bf16.mxu1 %v7098_v0 }
  0xce   :  { %5941 = vmatpush3.bf16.msra.mxu0 %v7336_v43 }
  0xcf   :  { %5942 = vmatprep.subr.bf16.mxu0 %v7098_v0 }
  0xd0   :  { %5908 = vmatpush3.bf16.msra.mxu1 %v3890_v46 }
  0xd1   :  { %5921 = vmatprep.subr.bf16.mxu1 %v7098_v0 }
  0xd2   :  { %5944 = vmatpush3.bf16.msra.mxu0 %v7341_v47 }
  0xd3   :  { %4642 = vmatmul.mubr.msk.f32.vlgmr.msra.gmra.mrb[6].mxu1 %vm172_vm1, %v669_v48  ;;  %5945 = vmatprep.subr.bf16.mxu0 %v7098_v0 }
  0xd4   :  { %5923 = vmatpush3.bf16.msra.mxu1 %v3858_v51  ;;  %4679 = vmatprep.mubr.msk.f32.mxu1 %vm7099_vm0, %v7100_v1 }
  0xd5   :  { %5924 = vmatprep.subr.bf16.mxu1 %v7098_v0 }
  0xd6   :  { %5947 = vmatpush3.bf16.msra.mxu0 %v7347_v52 }
  0xd7   :  { %5948 = vmatprep.subr.bf16.mxu0 %v7098_v0 }
  0xd8   :  { %5926 = vmatpush3.bf16.msra.mxu1 %v3894_v55 }
  0xd9   :  { %5927 = vmatprep.subr.bf16.mxu1 %v7098_v0 }
  0xda   :  { %5950 = vmatpush3.bf16.msra.mxu0 %v7354_v56 }
  0xdb   :  { %5951 = vmatprep.subr.bf16.mxu0 %v7098_v0 }
  0xdc   :  { %5929 = vmatpush3.bf16.msra.mxu1 %v3895_v59 }
  0xdd   :  { %5930 = vmatprep.subr.bf16.mxu1 %v7098_v0 }
  0xde   :  { %5953 = vmatpush3.bf16.msra.mxu0 %v7359_v60 }
  0xdf   :  { %5954 = vmatprep.subr.bf16.mxu0 %v7098_v0 }
  0xe0   :  { %5932 = vmatpush3.bf16.msra.mxu1 %v3896_v61 }
  0xe1   :  { %5957 = vmatprep.subr.bf16.mxu1 %v7098_v0 }
  0xe2   :  { %5956 = vmatpush3.bf16.msra.mxu0 %v7391_v23 }
  0xe3   :  { %4680 = vmatmul.mubr.msk.f32.vlgmr.msra.gmra.mrb[8].mxu1 %vm172_vm1, %v871_v2  ;;  %5981 = vmatprep.subr.bf16.mxu0 %v7098_v0 }
  0xe4   :  { %5959 = vmatpush3.bf16.msra.mxu1 %v7364_v3  ;;  %4749 = vmatprep.mubr.msk.f32.mxu1 %vm7099_vm0, %v7100_v1 }
  0xe5   :  { %5960 = vmatprep.subr.bf16.mxu1 %v7098_v0  ;;  %4715 = vmatmul.mubr.f32.vlgmr.msra.gmra.mrb[6].mxu0 %v7100_v1 }
  0xe6   :  { %4784 = vmatprep.mubr.msk.f32.mxu0 %vm7099_vm0, %v7100_v1  ;;  %5983 = vmatpush3.bf16.msra.mxu0 %v7442_v19 }
  0xe7   :  { %5984 = vmatprep.subr.bf16.mxu0 %v7098_v0 }
  0xe8   :  { %5962 = vmatpush3.bf16.msra.mxu1 %v7370_v6 }
  0xe9   :  { %5963 = vmatprep.subr.bf16.mxu1 %v7098_v0 }
  0xea   :  { %5986 = vmatpush3.bf16.msra.mxu0 %v7445_v21 }
  0xeb   :  { %5987 = vmatprep.subr.bf16.mxu0 %v7098_v0 }
  0xec   :  { %5965 = vmatpush3.bf16.msra.mxu1 %v7376_v9 }
  0xed   :  { %5966 = vmatprep.subr.bf16.mxu1 %v7098_v0 }
  0xf0   :  { %5968 = vmatpush3.bf16.msra.mxu1 %v7380_v12 }
  0xf1   :  { %5969 = vmatprep.subr.bf16.mxu1 %v7098_v0 }
  0xf4   :  { %5971 = vmatpush3.bf16.msra.mxu1 %v7384_v15 }
  0xf5   :  { %5972 = vmatprep.subr.bf16.mxu1 %v7098_v0 }
  0xf8   :  { %5974 = vmatpush3.bf16.msra.mxu1 %v7388_v18 }
  0xf9   :  { %5975 = vmatprep.subr.bf16.mxu1 %v7098_v0 }
  0xfc   :  { %5977 = vmatpush3.bf16.msra.mxu1 %v7395_v24 }
  0xfd   :  { %5978 = vmatprep.subr.bf16.mxu1 %v7098_v0 }
 0x100   :  { %5980 = vmatpush3.bf16.msra.mxu1 %v7403_v27 }
 0x101   :  { %6005 = vmatprep.subr.bf16.mxu1 %v7098_v0 }
 0x176   :  { %v242_v29 = vpop.f32.mrb[0].mxu1  ;;  %v7408_v33 = vpop.f32.mrb[0].mxu0 }
 0x177   :  { %v243_v30 = vadd.f32 %v3710_v28, %v242_v29  ;;  %v4548_v31 = vpop.f32.mrb[1].mxu1  ;;  %v4586_v34 = vpop.f32.mrb[1].mxu0  ;;  %v971_v28 = vld [vmem:[#allocation11 + $0x8] sm:$0xff] }
 0x178   :  { %v7448_v29 = vpack.c.bf16 %v971_v28, %v970_v26  ;;  %v973_v31 = vld [vmem:[#allocation11 + $0x18] sm:$0xff]  ;;  %v1008_v34 = vld [vmem:[#allocation13 + $0x30] sm:$0xff]  ;;  %v983_v26 = vld [vmem:[#allocation11 + $0x68] sm:$0xff]  ;;  %v7491_v28 = vpack.c.bf16 %v1017_v20, %v1016_v17 }
 0x179   :  { %v246_v32 = vmax.f32 %v243_v30, 0.0  ;;  %v972_v30 = vld [vmem:[#allocation11 + $0x10] sm:$0xff] }
 0x17b   :  { %4750 = vmatmul.mubr.f32.vlgmr.msra.gmra.mrb[10].mxu1 %v246_v32  ;;  %v7451_v32 = vpack.c.bf16 %v1007_v25, %v1006_v22  ;;  %v982_v25 = vld [vmem:[#allocation11 + $0x60] sm:$0xff] }
 0x17c   :  { %4819 = vmatprep.mubr.msk.f32.mxu1 %vm7099_vm0, %v7100_v1  ;;  %6007 = vmatpush3.bf16.msra.mxu1 %v7448_v29 }
 0x17d   :  { %6008 = vmatprep.subr.bf16.mxu1 %v7098_v0  ;;  %5989 = vmatpush3.bf16.msra.mxu0 %v7451_v32 }
 0x17e   :  { %5990 = vmatprep.subr.bf16.mxu0 %v7098_v0 }
 0x186   :  { %v7412_v36 = vpop.f32.mrb[2].mxu1 }
 0x187   :  { %v4567_v37 = vpop.f32.mrb[3].mxu1 }
 0x188   :  { %v7414_v38 = vpop.f32.mrb[2].mxu0  ;;  %v1009_v37 = vld [vmem:[#allocation13 + $0x38] sm:$0xff] }
 0x189   :  { %v4624_v40 = vpop.f32.mrb[3].mxu0 }
 0x18a   :  { %v7455_v40 = vpack.c.bf16 %v973_v31, %v972_v30  ;;  %v7495_v30 = vpack.c.bf16 %v983_v26, %v982_v25  ;;  %v984_v31 = vld [vmem:[#allocation11 + $0x70] sm:$0xff] }
 0x18c   :  { %6010 = vmatpush3.bf16.msra.mxu1 %v7455_v40 }
 0x18d   :  { %6011 = vmatprep.subr.bf16.mxu1 %v7098_v0 }
 0x196   :  { %v7416_v41 = vpop.f32.mrb[4].mxu1 }
 0x197   :  { %v4605_v42 = vpop.f32.mrb[5].mxu1 }
 0x198   :  { %v7418_v44 = vpop.f32.mrb[4].mxu0  ;;  %v974_v42 = vld [vmem:[#allocation11 + $0x20] sm:$0xff] }
 0x199   :  { %v4662_v45 = vpop.f32.mrb[5].mxu0 }
 0x19a   :  { %v975_v45 = vld [vmem:[#allocation11 + $0x28] sm:$0xff] }
 0x1a6   :  { %v7420_v46 = vpop.f32.mrb[6].mxu1 }
 0x1a7   :  { %v4643_v48 = vpop.f32.mrb[7].mxu1 }
 0x1a8   :  { %v7459_v48 = vpack.c.bf16 %v1009_v37, %v1008_v34  ;;  %v985_v34 = vld [vmem:[#allocation11 + $0x78] sm:$0xff] }
 0x1a9   :  { %v7501_v37 = vpack.c.bf16 %v985_v34, %v984_v31 }
 0x1aa   :  { %5992 = vmatpush3.bf16.msra.mxu0 %v7459_v48 }
 0x1ab   :  { %5993 = vmatprep.subr.bf16.mxu0 %v7098_v0 }
 0x1b6   :  { %v7422_v49 = vpop.f32.mrb[8].mxu1 }
 0x1b7   :  { %v4681_v50 = vpop.f32.mrb[9].mxu1 }
 0x1b8   :  { %v1091_v51 = vpop.f32.mrb[6].mxu0  ;;  %v1010_v50 = vld [vmem:[#allocation13 + $0x40] sm:$0xff] }
 0x1b9   :  { %v4716_v53 = vpop.f32.mrb[7].mxu0 }
 0x1ba   :  { %v7463_v53 = vpack.c.bf16 %v975_v45, %v974_v42 }
 0x1bc   :  { %6013 = vmatpush3.bf16.msra.mxu1 %v7463_v53 }
 0x1bd   :  { %6014 = vmatprep.subr.bf16.mxu1 %v7098_v0 }
 0x24e   :  { %v1161_v55 = vpop.f32.mrb[10].mxu1 }
 0x24f   :  { %v1162_v57 = vadd.f32 %v1161_v55, %v1091_v51  ;;  %v4751_v58 = vpop.f32.mrb[11].mxu1  ;;  %v1011_v51 = vld [vmem:[#allocation13 + $0x48] sm:$0xff]  ;;  %v976_v55 = vld [vmem:[#allocation11 + $0x30] sm:$0xff] }
 0x250   :  { %v7467_v58 = vpack.c.bf16 %v1011_v51, %v1010_v50 }
 0x251   :  { %v1171_v59 = vadd.f32 %v7427_v54, %v1162_v57  ;;  %v977_v57 = vld [vmem:[#allocation11 + $0x38] sm:$0xff] }
 0x252   :  { %5995 = vmatpush3.bf16.msra.mxu0 %v7467_v58 }
 0x253   :  { %v3727_v61 = vmul.f32 -1.442695, %v1171_v59  ;;  %5996 = vmatprep.subr.bf16.mxu0 %v7098_v0 }
 0x255   :  { %6744 = vpow2.f32 %v3727_v61  ;;  %v1013_v61 = vld [vmem:[#allocation13 + $0x58] sm:$0xff] }
 0x256   :  { %6746 = vtanh.f32 %v1171_v59  ;;  %v1012_v59 = vld [vmem:[#allocation13 + $0x50] sm:$0xff] }
 0x257   :  { %v7475_v4 = vpack.c.bf16 %v1013_v61, %v1012_v59 }
 0x259   :  { %5998 = vmatpush3.bf16.msra.mxu0 %v7475_v4 }
 0x25a   :  { %5999 = vmatprep.subr.bf16.mxu0 %v7098_v0 }
 0x25f   :  { %v6745_v62 = vpop.eup %6744 }
 0x260   :  { %v1176_v2 = vadd.f32 1.0, %v6745_v62  ;;  %v6747_v7 = vpop.eup %6746  ;;  %v7471_v62 = vpack.c.bf16 %v977_v57, %v976_v55 }
 0x262   :  { %6748 = vrcp.f32 %v1176_v2  ;;  %v979_v2 = vld [vmem:[#allocation11 + $0x48] sm:$0xff]  ;;  %6016 = vmatpush3.bf16.msra.mxu1 %v7471_v62 }
 0x263   :  { %6017 = vmatprep.subr.bf16.mxu1 %v7098_v0 }
 0x26c   :  { %v6749_v8 = vpop.eup %6748 }
 0x26d   :  { %v7436_v10 = vsel %vm7430_vm4, %v6747_v7, %v6749_v8  ;;  %v1014_v7 = vld [vmem:[#allocation13 + $0x60] sm:$0xff]  ;;  %v1015_v8 = vld [vmem:[#allocation13 + $0x68] sm:$0xff] }
 0x26e   :  { %1180 = vrot.lane.b32.xlu0 %v7436_v10, %s7085_s27  ;;  %v7483_v16 = vpack.c.bf16 %v1015_v8, %v1014_v7  ;;  %v1183_v42 = vmul.f32 0.0, %v7436_v10 }
 0x270   :  { %6001 = vmatpush3.bf16.msra.mxu0 %v7483_v16 }
 0x271   :  { %6002 = vmatprep.subr.bf16.mxu0 %v7098_v0 }
 0x274   :  { %6004 = vmatpush3.bf16.msra.mxu0 %v7491_v28 }
 0x275   :  { %6029 = vmatprep.subr.bf16.mxu0 %v7098_v0 }
 0x277   :  { %4785 = vmatmul.mubr.f32.vlgmr.msra.gmra.mrb[8].mxu0 %v7100_v1 }
 0x278   :  { %6031 = vmatpush3.bf16.msra.mxu0 %v7321_v35  ;;  %4854 = vmatprep.mubr.msk.f32.mxu0 %vm7099_vm0, %v7100_v1 }
 0x279   :  { %6032 = vmatprep.subr.bf16.mxu0 %v7098_v0 }
 0x27c   :  { %6034 = vmatpush3.bf16.msra.mxu0 %v7329_v39 }
 0x27d   :  { %6035 = vmatprep.subr.bf16.mxu0 %v7098_v0 }
 0x280   :  { %6037 = vmatpush3.bf16.msra.mxu0 %v7336_v43 }
 0x281   :  { %6038 = vmatprep.subr.bf16.mxu0 %v7098_v0 }
 0x284   :  { %6040 = vmatpush3.bf16.msra.mxu0 %v7341_v47 }
 0x285   :  { %6041 = vmatprep.subr.bf16.mxu0 %v7098_v0 }
 0x288   :  { %6043 = vmatpush3.bf16.msra.mxu0 %v7347_v52 }
 0x289   :  { %6044 = vmatprep.subr.bf16.mxu0 %v7098_v0 }
 0x28c   :  { %6046 = vmatpush3.bf16.msra.mxu0 %v7354_v56 }
 0x28d   :  { %6047 = vmatprep.subr.bf16.mxu0 %v7098_v0 }
 0x290   :  { %6049 = vmatpush3.bf16.msra.mxu0 %v7359_v60 }
 0x291   :  { %6050 = vmatprep.subr.bf16.mxu0 %v7098_v0 }
 0x294   :  { %6052 = vmatpush3.bf16.msra.mxu0 %v7391_v23 }
 0x295   :  { %6077 = vmatprep.subr.bf16.mxu0 %v7098_v0 }
 0x2e0   :  { %v1181_v11 = vpop.permute.xlu0 %1180 }
 0x2e1   :  { %v1182_v13 = vmul.f32 %v1181_v11, %v7436_v10  ;;  %v7479_v11 = vpack.c.bf16 %v979_v2, %v978_v63 }
 0x2e3   :  { %1184 = vrot.lane.b32.xlu0 %v1182_v13, %s7101_s24  ;;  %v980_v13 = vld [vmem:[#allocation11 + $0x50] sm:$0xff]  ;;  %6019 = vmatpush3.bf16.msra.mxu1 %v7479_v11 }
 0x2e4   :  { %v7487_v22 = vpack.c.bf16 %v981_v14, %v980_v13  ;;  %6020 = vmatprep.subr.bf16.mxu1 %v7098_v0 }
 0x2e7   :  { %6022 = vmatpush3.bf16.msra.mxu1 %v7487_v22 }
 0x2e8   :  { %6023 = vmatprep.subr.bf16.mxu1 %v7098_v0 }
 0x2eb   :  { %6025 = vmatpush3.bf16.msra.mxu1 %v7495_v30 }
 0x2ec   :  { %6026 = vmatprep.subr.bf16.mxu1 %v7098_v0 }
 0x2ef   :  { %6028 = vmatpush3.bf16.msra.mxu1 %v7501_v37 }
 0x2f0   :  { %6053 = vmatprep.subr.bf16.mxu1 %v7098_v0 }
 0x34a   :  { %v1257_v59 = vpop.f32.mrb[8].mxu0 }
 0x34b   :  { %v4786_v61 = vpop.f32.mrb[9].mxu0 }
 0x355   :  { %v1185_v45 = vpop.permute.xlu0 %1184 }
 0x356   :  { %v7526_v50 = vadd.f32 %v1185_v45, %v1183_v42 }
 0x358   :  { %6750 = vtanh.f32 %v7526_v50 }
 0x362   :  { %v6751_v51 = vpop.eup %6750 }
 0x363   :  { %1188 = vrot.lane.b32.xlu1 %v6751_v51, %s7085_s27 }
 0x3d5   :  { %v1189_v55 = vpop.permute.xlu1 %1188 }
 0x3d6   :  { %v1190_v57 = vmul.f32 %v1189_v55, %v7436_v10  ;;  %v3712_v10 = vld [vmem:[#allocation7 + $0x1] ss:$0 sm:$0xff] }
 0x3d7   :  { %v344_v63 = vadd.f32 %v3712_v10, %v7412_v36  ;;  %v7589_v36 = vld [vmem:[%s8213_s8] ss:$0 sm:$0xff] }
 0x3d8   :  { %4820 = vmatmul.mubr.f32.vlgmr.msra.gmra.mrb[12].mxu1 %v1190_v57  ;;  %4855 = vmatmul.mubr.f32.vlgmr.msra.gmra.mrb[10].mxu0 %v1190_v57 }
 0x3d9   :  { %6055 = vmatpush3.bf16.msra.mxu1 %v7364_v3  ;;  %4889 = vmatprep.mubr.msk.f32.mxu1 %vm7099_vm0, %v7100_v1  ;;  %v347_v2 = vmax.f32 %v344_v63, 0.0 }
 0x3da   :  { %6056 = vmatprep.subr.bf16.mxu1 %v7098_v0  ;;  %6079 = vmatpush3.bf16.msra.mxu0 %v7442_v19 }
 0x3db   :  { %6080 = vmatprep.subr.bf16.mxu0 %v7098_v0  ;;  %4924 = vmatprep.mubr.msk.f32.mxu0 %vm7099_vm0, %v7100_v1 }
 0x3dd   :  { %6058 = vmatpush3.bf16.msra.mxu1 %v7370_v6 }
 0x3de   :  { %6059 = vmatprep.subr.bf16.mxu1 %v7098_v0  ;;  %6082 = vmatpush3.bf16.msra.mxu0 %v7445_v21 }
 0x3df   :  { %6083 = vmatprep.subr.bf16.mxu0 %v7098_v0 }
 0x3e1   :  { %6061 = vmatpush3.bf16.msra.mxu1 %v7376_v9 }
 0x3e2   :  { %6062 = vmatprep.subr.bf16.mxu1 %v7098_v0  ;;  %6085 = vmatpush3.bf16.msra.mxu0 %v7451_v32 }
 0x3e3   :  { %6086 = vmatprep.subr.bf16.mxu0 %v7098_v0 }
 0x3e5   :  { %6064 = vmatpush3.bf16.msra.mxu1 %v7380_v12 }
 0x3e6   :  { %6065 = vmatprep.subr.bf16.mxu1 %v7098_v0  ;;  %6088 = vmatpush3.bf16.msra.mxu0 %v7459_v48 }
 0x3e7   :  { %6089 = vmatprep.subr.bf16.mxu0 %v7098_v0 }
 0x3e9   :  { %6067 = vmatpush3.bf16.msra.mxu1 %v7384_v15 }
 0x3ea   :  { %6068 = vmatprep.subr.bf16.mxu1 %v7098_v0  ;;  %6091 = vmatpush3.bf16.msra.mxu0 %v7467_v58 }
 0x3eb   :  { %6092 = vmatprep.subr.bf16.mxu0 %v7098_v0 }
 0x3ed   :  { %6070 = vmatpush3.bf16.msra.mxu1 %v7388_v18 }
 0x3ee   :  { %6071 = vmatprep.subr.bf16.mxu1 %v7098_v0  ;;  %6094 = vmatpush3.bf16.msra.mxu0 %v7475_v4 }
 0x3ef   :  { %6095 = vmatprep.subr.bf16.mxu0 %v7098_v0 }
 0x3f1   :  { %6073 = vmatpush3.bf16.msra.mxu1 %v7395_v24 }
 0x3f2   :  { %6074 = vmatprep.subr.bf16.mxu1 %v7098_v0  ;;  %6097 = vmatpush3.bf16.msra.mxu0 %v7483_v16 }
 0x3f3   :  { %6098 = vmatprep.subr.bf16.mxu0 %v7098_v0 }
 0x3f5   :  { %6076 = vmatpush3.bf16.msra.mxu1 %v7403_v27 }
 0x3f6   :  { %6100 = vmatpush3.bf16.msra.mxu0 %v7491_v28  ;;  %6101 = vmatprep.subr.bf16.mxu1 %v7098_v0 }
 0x3f7   :  { %6125 = vmatprep.subr.bf16.mxu0 %v7098_v0 }
 0x3f8   :  { %4890 = vmatmul.mubr.f32.vlgmr.msra.gmra.mrb[14].mxu1 %v347_v2 }
 0x3f9   :  { %6103 = vmatpush3.bf16.msra.mxu1 %v7448_v29  ;;  %4959 = vmatprep.mubr.msk.f32.mxu1 %vm7099_vm0, %v7100_v1 }
 0x3fa   :  { %6104 = vmatprep.subr.bf16.mxu1 %v7098_v0 }
 0x3fd   :  { %6106 = vmatpush3.bf16.msra.mxu1 %v7455_v40 }
 0x3fe   :  { %6107 = vmatprep.subr.bf16.mxu1 %v7098_v0 }
 0x401   :  { %6109 = vmatpush3.bf16.msra.mxu1 %v7463_v53 }
 0x402   :  { %6110 = vmatprep.subr.bf16.mxu1 %v7098_v0 }
 0x405   :  { %6112 = vmatpush3.bf16.msra.mxu1 %v7471_v62 }
 0x406   :  { %6113 = vmatprep.subr.bf16.mxu1 %v7098_v0 }
 0x409   :  { %6115 = vmatpush3.bf16.msra.mxu1 %v7479_v11 }
 0x40a   :  { %6116 = vmatprep.subr.bf16.mxu1 %v7098_v0 }
 0x40d   :  { %6118 = vmatpush3.bf16.msra.mxu1 %v7487_v22 }
 0x40e   :  { %6119 = vmatprep.subr.bf16.mxu1 %v7098_v0 }
 0x411   :  { %6121 = vmatpush3.bf16.msra.mxu1 %v7495_v30 }
 0x412   :  { %6122 = vmatprep.subr.bf16.mxu1 %v7098_v0 }
 0x415   :  { %6124 = vmatpush3.bf16.msra.mxu1 %v7501_v37 }
 0x416   :  { %6149 = vmatprep.subr.bf16.mxu1 %v7098_v0 }
 0x4ab   :  { %v1327_v7 = vpop.f32.mrb[12].mxu1  ;;  %v1423_v8 = vpop.f32.mrb[10].mxu0 }
 0x4ac   :  { %v1328_v13 = vadd.f32 %v1327_v7, %v1257_v59  ;;  %v4821_v14 = vpop.f32.mrb[13].mxu1  ;;  %v4856_v17 = vpop.f32.mrb[11].mxu0 }
 0x4ae   :  { %v1337_v20 = vadd.f32 %v7589_v36, %v1328_v13 }
 0x4b0   :  { %v3729_v25 = vmul.f32 -1.442695, %v1337_v20 }
 0x4b2   :  { %6752 = vpow2.f32 %v3729_v25 }
 0x4b3   :  { %6754 = vtanh.f32 %v1337_v20 }
 0x4bc   :  { %v6753_v26 = vpop.eup %6752 }
 0x4bd   :  { %v1342_v31 = vadd.f32 1.0, %v6753_v26  ;;  %v6755_v34 = vpop.eup %6754 }
 0x4bf   :  { %6756 = vrcp.f32 %v1342_v31 }
 0x4c9   :  { %v6757_v42 = vpop.eup %6756 }
 0x4ca   :  { %v1345_v45 = vsel %vm7430_vm4, %v6755_v34, %v6757_v42 }
 0x4cb   :  { %v1493_v51 = vpop.f32.mrb[14].mxu1  ;;  %1346 = vrot.lane.b32.xlu1 %v1345_v45, %s7085_s27  ;;  %v1349_v25 = vmul.f32 0.0, %v1345_v45 }
 0x4cc   :  { %v1494_v55 = vadd.f32 %v1493_v51, %v1423_v8  ;;  %v4891_v57 = vpop.f32.mrb[15].mxu1 }
 0x4ce   :  { %v1497_v59 = vadd.f32 %v7427_v54, %v1494_v55 }
 0x4d0   :  { %v3730_v61 = vmul.f32 -1.442695, %v1497_v59 }
 0x4d2   :  { %6758 = vpow2.f32 %v3730_v61 }
 0x4d3   :  { %6760 = vtanh.f32 %v1497_v59 }
 0x4dc   :  { %v6759_v10 = vpop.eup %6758 }
 0x4dd   :  { %v1502_v63 = vadd.f32 1.0, %v6759_v10  ;;  %v6761_v2 = vpop.eup %6760  ;;  %v3714_v10 = vld [vmem:[#allocation7 + $0x2] ss:$0 sm:$0xff] }
 0x4df   :  { %6762 = vrcp.f32 %v1502_v63  ;;  %v445_v63 = vadd.f32 %v3714_v10, %v7408_v33 }
 0x4e9   :  { %v6763_v7 = vpop.eup %6762 }
 0x4ea   :  { %v1505_v13 = vsel %vm7430_vm4, %v6761_v2, %v6763_v7  ;;  %v448_v2 = vmax.f32 %v445_v63, 0.0 }
 0x4eb   :  { %1506 = vrot.lane.b32.xlu0 %v1505_v13, %s7085_s27  ;;  %v1509_v42 = vmul.f32 %v1505_v13, %v7526_v50 }
 0x53d   :  { %v1347_v14 = vpop.permute.xlu1 %1346 }
 0x53e   :  { %v1348_v17 = vmul.f32 %v1347_v14, %v1345_v45 }
 0x540   :  { %1350 = vrot.lane.b32.xlu1 %v1348_v17, %s7101_s24 }
 0x55d   :  { %v1507_v8 = vpop.permute.xlu0 %1506 }
 0x55e   :  { %v1508_v20 = vmul.f32 %v1507_v8, %v1505_v13 }
 0x560   :  { %1510 = vrot.lane.b32.xlu0 %v1508_v20, %s7101_s24 }
 0x5b2   :  { %v1351_v26 = vpop.permute.xlu1 %1350 }
 0x5b3   :  { %v7601_v31 = vadd.f32 %v1351_v26, %v1349_v25 }
 0x5b5   :  { %6764 = vtanh.f32 %v7601_v31 }
 0x5bf   :  { %v6765_v34 = vpop.eup %6764 }
 0x5c0   :  { %1354 = vrot.lane.b32.xlu1 %v6765_v34, %s7085_s27 }
 0x5d2   :  { %v1511_v51 = vpop.permute.xlu0 %1510 }
 0x5d3   :  { %v7606_v55 = vadd.f32 %v1511_v51, %v1509_v42 }
 0x5d5   :  { %6766 = vtanh.f32 %v7606_v55 }
 0x5df   :  { %v6767_v57 = vpop.eup %6766 }
 0x5e0   :  { %1514 = vrot.lane.b32.xlu0 %v6767_v57, %s7085_s27 }
 0x632   :  { %v1355_v59 = vpop.permute.xlu1 %1354 }
 0x633   :  { %v1356_v61 = vmul.f32 %v1355_v59, %v1345_v45 }
 0x635   :  { %4925 = vmatmul.mubr.f32.vlgmr.msra.gmra.mrb[12].mxu0 %v1356_v61 }
 0x636   :  { %6127 = vmatpush3.bf16.msra.mxu0 %v7321_v35  ;;  %4994 = vmatprep.mubr.msk.f32.mxu0 %vm7099_vm0, %v7100_v1 }
 0x637   :  { %6128 = vmatprep.subr.bf16.mxu0 %v7098_v0 }
 0x63a   :  { %6130 = vmatpush3.bf16.msra.mxu0 %v7329_v39 }
 0x63b   :  { %6131 = vmatprep.subr.bf16.mxu0 %v7098_v0 }
 0x63e   :  { %6133 = vmatpush3.bf16.msra.mxu0 %v7336_v43 }
 0x63f   :  { %6134 = vmatprep.subr.bf16.mxu0 %v7098_v0 }
 0x642   :  { %6136 = vmatpush3.bf16.msra.mxu0 %v7341_v47 }
 0x643   :  { %6137 = vmatprep.subr.bf16.mxu0 %v7098_v0 }
 0x646   :  { %6139 = vmatpush3.bf16.msra.mxu0 %v7347_v52 }
 0x647   :  { %6140 = vmatprep.subr.bf16.mxu0 %v7098_v0 }
 0x64a   :  { %6142 = vmatpush3.bf16.msra.mxu0 %v7354_v56 }
 0x64b   :  { %6143 = vmatprep.subr.bf16.mxu0 %v7098_v0 }
 0x64e   :  { %6145 = vmatpush3.bf16.msra.mxu0 %v7359_v60 }
 0x64f   :  { %6146 = vmatprep.subr.bf16.mxu0 %v7098_v0 }
 0x652   :  { %6148 = vmatpush3.bf16.msra.mxu0 %v7391_v23  ;;  %v1515_v50 = vpop.permute.xlu0 %1514 }
 0x653   :  { %v1516_v45 = vmul.f32 %v1515_v50, %v1505_v13  ;;  %6173 = vmatprep.subr.bf16.mxu0 %v7098_v0 }
 0x655   :  { %4960 = vmatmul.mubr.f32.vlgmr.msra.gmra.mrb[16].mxu1 %v1516_v45  ;;  %4995 = vmatmul.mubr.f32.vlgmr.msra.gmra.mrb[14].mxu0 %v1516_v45 }
 0x656   :  { %6151 = vmatpush3.bf16.msra.mxu1 %v7364_v3  ;;  %5029 = vmatprep.mubr.msk.f32.mxu1 %vm7099_vm0, %v7100_v1 }
 0x657   :  { %6152 = vmatprep.subr.bf16.mxu1 %v7098_v0  ;;  %6175 = vmatpush3.bf16.msra.mxu0 %v7442_v19 }
 0x658   :  { %6176 = vmatprep.subr.bf16.mxu0 %v7098_v0  ;;  %5064 = vmatprep.mubr.msk.f32.mxu0 %vm7099_vm0, %v7100_v1 }
 0x65a   :  { %6154 = vmatpush3.bf16.msra.mxu1 %v7370_v6 }
 0x65b   :  { %6155 = vmatprep.subr.bf16.mxu1 %v7098_v0  ;;  %6178 = vmatpush3.bf16.msra.mxu0 %v7445_v21 }
 0x65c   :  { %6179 = vmatprep.subr.bf16.mxu0 %v7098_v0 }
 0x65e   :  { %6157 = vmatpush3.bf16.msra.mxu1 %v7376_v9 }
 0x65f   :  { %6158 = vmatprep.subr.bf16.mxu1 %v7098_v0  ;;  %6181 = vmatpush3.bf16.msra.mxu0 %v7451_v32 }
 0x660   :  { %6182 = vmatprep.subr.bf16.mxu0 %v7098_v0 }
 0x662   :  { %6160 = vmatpush3.bf16.msra.mxu1 %v7380_v12 }
 0x663   :  { %6161 = vmatprep.subr.bf16.mxu1 %v7098_v0  ;;  %6184 = vmatpush3.bf16.msra.mxu0 %v7459_v48 }
 0x664   :  { %6185 = vmatprep.subr.bf16.mxu0 %v7098_v0 }
 0x666   :  { %6163 = vmatpush3.bf16.msra.mxu1 %v7384_v15 }
 0x667   :  { %6164 = vmatprep.subr.bf16.mxu1 %v7098_v0  ;;  %6187 = vmatpush3.bf16.msra.mxu0 %v7467_v58 }
 0x668   :  { %6188 = vmatprep.subr.bf16.mxu0 %v7098_v0 }
 0x66a   :  { %6166 = vmatpush3.bf16.msra.mxu1 %v7388_v18 }
 0x66b   :  { %6167 = vmatprep.subr.bf16.mxu1 %v7098_v0  ;;  %6190 = vmatpush3.bf16.msra.mxu0 %v7475_v4 }
 0x66c   :  { %6191 = vmatprep.subr.bf16.mxu0 %v7098_v0 }
 0x66e   :  { %6169 = vmatpush3.bf16.msra.mxu1 %v7395_v24 }
 0x66f   :  { %6170 = vmatprep.subr.bf16.mxu1 %v7098_v0  ;;  %6193 = vmatpush3.bf16.msra.mxu0 %v7483_v16 }
 0x670   :  { %6194 = vmatprep.subr.bf16.mxu0 %v7098_v0 }
 0x672   :  { %6172 = vmatpush3.bf16.msra.mxu1 %v7403_v27 }
 0x673   :  { %6196 = vmatpush3.bf16.msra.mxu0 %v7491_v28  ;;  %6197 = vmatprep.subr.bf16.mxu1 %v7098_v0 }
 0x674   :  { %6221 = vmatprep.subr.bf16.mxu0 %v7098_v0 }
 0x675   :  { %5030 = vmatmul.mubr.f32.vlgmr.msra.gmra.mrb[18].mxu1 %v448_v2 }
 0x676   :  { %6199 = vmatpush3.bf16.msra.mxu1 %v7448_v29  ;;  %5099 = vmatprep.mubr.msk.f32.mxu1 %vm7099_vm0, %v7100_v1 }
 0x677   :  { %6200 = vmatprep.subr.bf16.mxu1 %v7098_v0 }
 0x67a   :  { %6202 = vmatpush3.bf16.msra.mxu1 %v7455_v40 }
 0x67b   :  { %6203 = vmatprep.subr.bf16.mxu1 %v7098_v0 }
 0x67e   :  { %6205 = vmatpush3.bf16.msra.mxu1 %v7463_v53 }
 0x67f   :  { %6206 = vmatprep.subr.bf16.mxu1 %v7098_v0 }
 0x682   :  { %6208 = vmatpush3.bf16.msra.mxu1 %v7471_v62 }
 0x683   :  { %6209 = vmatprep.subr.bf16.mxu1 %v7098_v0 }
 0x686   :  { %6211 = vmatpush3.bf16.msra.mxu1 %v7479_v11 }
 0x687   :  { %6212 = vmatprep.subr.bf16.mxu1 %v7098_v0 }
 0x68a   :  { %6214 = vmatpush3.bf16.msra.mxu1 %v7487_v22 }
 0x68b   :  { %6215 = vmatprep.subr.bf16.mxu1 %v7098_v0 }
 0x68e   :  { %6217 = vmatpush3.bf16.msra.mxu1 %v7495_v30 }
 0x68f   :  { %6218 = vmatprep.subr.bf16.mxu1 %v7098_v0 }
 0x692   :  { %6220 = vmatpush3.bf16.msra.mxu1 %v7501_v37 }
 0x693   :  { %6245 = vmatprep.subr.bf16.mxu1 %v7098_v0 }
 0x708   :  { %v1583_v33 = vpop.f32.mrb[12].mxu0 }
 0x709   :  { %v4926_v7 = vpop.f32.mrb[13].mxu0 }
 0x728   :  { %v1653_v13 = vpop.f32.mrb[16].mxu1  ;;  %v1743_v14 = vpop.f32.mrb[14].mxu0 }
 0x729   :  { %v1654_v17 = vadd.f32 %v1653_v13, %v1583_v33  ;;  %v4961_v8 = vpop.f32.mrb[17].mxu1  ;;  %v4996_v20 = vpop.f32.mrb[15].mxu0 }
 0x72b   :  { %v1657_v25 = vadd.f32 %v7589_v36, %v1654_v17 }
 0x72d   :  { %v3731_v26 = vmul.f32 -1.442695, %v1657_v25 }
 0x72f   :  { %6768 = vpow2.f32 %v3731_v26 }
 0x730   :  { %6770 = vtanh.f32 %v1657_v25 }
 0x739   :  { %v6769_v34 = vpop.eup %6768 }
 0x73a   :  { %v1662_v42 = vadd.f32 1.0, %v6769_v34  ;;  %v6771_v51 = vpop.eup %6770 }
 0x73c   :  { %6772 = vrcp.f32 %v1662_v42 }
 0x746   :  { %v6773_v57 = vpop.eup %6772 }
 0x747   :  { %v1665_v59 = vsel %vm7430_vm4, %v6771_v51, %v6773_v57 }
 0x748   :  { %v1813_v61 = vpop.f32.mrb[18].mxu1  ;;  %1666 = vrot.lane.b32.xlu1 %v1665_v59, %s7085_s27  ;;  %v1669_v26 = vmul.f32 %v1665_v59, %v7601_v31 }
 0x749   :  { %v1814_v50 = vadd.f32 %v1813_v61, %v1743_v14  ;;  %v5031_v45 = vpop.f32.mrb[19].mxu1 }
 0x74b   :  { %v1817_v10 = vadd.f32 %v7427_v54, %v1814_v50 }
 0x74d   :  { %v3732_v63 = vmul.f32 -1.442695, %v1817_v10 }
 0x74f   :  { %6774 = vpow2.f32 %v3732_v63  ;;  %v3716_v63 = vld [vmem:[#allocation7 + $0x3] ss:$0 sm:$0xff] }
 0x750   :  { %6776 = vtanh.f32 %v1817_v10 }
 0x759   :  { %v6775_v2 = vpop.eup %6774 }
 0x75a   :  { %v1822_v33 = vadd.f32 1.0, %v6775_v2  ;;  %v6777_v7 = vpop.eup %6776  ;;  %v546_v2 = vadd.f32 %v3716_v63, %v7416_v41 }
 0x75c   :  { %6778 = vrcp.f32 %v1822_v33  ;;  %v549_v33 = vmax.f32 %v546_v2, 0.0 }
 0x766   :  { %v6779_v13 = vpop.eup %6778 }
 0x767   :  { %v1825_v17 = vsel %vm7430_vm4, %v6777_v7, %v6779_v13 }
 0x768   :  { %1826 = vrot.lane.b32.xlu0 %v1825_v17, %s7085_s27  ;;  %v1829_v57 = vmul.f32 %v1825_v17, %v7606_v55 }
 0x7ba   :  { %v1667_v8 = vpop.permute.xlu1 %1666 }
 0x7bb   :  { %v1668_v20 = vmul.f32 %v1667_v8, %v1665_v59 }
 0x7bd   :  { %1670 = vrot.lane.b32.xlu1 %v1668_v20, %s7101_s24 }
 0x7da   :  { %v1827_v14 = vpop.permute.xlu0 %1826 }
 0x7db   :  { %v1828_v25 = vmul.f32 %v1827_v14, %v1825_v17 }
 0x7dd   :  { %1830 = vrot.lane.b32.xlu0 %v1828_v25, %s7101_s24 }
 0x82f   :  { %v1671_v34 = vpop.permute.xlu1 %1670 }
 0x830   :  { %v7694_v42 = vadd.f32 %v1671_v34, %v1669_v26 }
 0x832   :  { %6780 = vtanh.f32 %v7694_v42 }
 0x83c   :  { %v6781_v51 = vpop.eup %6780 }
 0x83d   :  { %1674 = vrot.lane.b32.xlu1 %v6781_v51, %s7085_s27 }
 0x84f   :  { %v1831_v61 = vpop.permute.xlu0 %1830 }
 0x850   :  { %v7699_v50 = vadd.f32 %v1831_v61, %v1829_v57 }
 0x852   :  { %6782 = vtanh.f32 %v7699_v50 }
 0x85c   :  { %v6783_v45 = vpop.eup %6782 }
 0x85d   :  { %1834 = vrot.lane.b32.xlu0 %v6783_v45, %s7085_s27 }
 0x8af   :  { %v1675_v10 = vpop.permute.xlu1 %1674 }
 0x8b0   :  { %v1676_v31 = vmul.f32 %v1675_v10, %v1665_v59 }
 0x8b2   :  { %5065 = vmatmul.mubr.f32.vlgmr.msra.gmra.mrb[16].mxu0 %v1676_v31 }
 0x8b3   :  { %6223 = vmatpush3.bf16.msra.mxu0 %v7321_v35  ;;  %5134 = vmatprep.mubr.msk.f32.mxu0 %vm7099_vm0, %v7100_v1 }
 0x8b4   :  { %6224 = vmatprep.subr.bf16.mxu0 %v7098_v0 }
 0x8b7   :  { %6226 = vmatpush3.bf16.msra.mxu0 %v7329_v39 }
 0x8b8   :  { %6227 = vmatprep.subr.bf16.mxu0 %v7098_v0 }
 0x8bb   :  { %6229 = vmatpush3.bf16.msra.mxu0 %v7336_v43 }
 0x8bc   :  { %6230 = vmatprep.subr.bf16.mxu0 %v7098_v0 }
 0x8bf   :  { %6232 = vmatpush3.bf16.msra.mxu0 %v7341_v47 }
 0x8c0   :  { %6233 = vmatprep.subr.bf16.mxu0 %v7098_v0 }
 0x8c3   :  { %6235 = vmatpush3.bf16.msra.mxu0 %v7347_v52 }
 0x8c4   :  { %6236 = vmatprep.subr.bf16.mxu0 %v7098_v0 }
 0x8c7   :  { %6238 = vmatpush3.bf16.msra.mxu0 %v7354_v56 }
 0x8c8   :  { %6239 = vmatprep.subr.bf16.mxu0 %v7098_v0 }
 0x8cb   :  { %6241 = vmatpush3.bf16.msra.mxu0 %v7359_v60 }
 0x8cc   :  { %6242 = vmatprep.subr.bf16.mxu0 %v7098_v0 }
 0x8cf   :  { %6244 = vmatpush3.bf16.msra.mxu0 %v7391_v23  ;;  %v1835_v55 = vpop.permute.xlu0 %1834 }
 0x8d0   :  { %v1836_v59 = vmul.f32 %v1835_v55, %v1825_v17  ;;  %6269 = vmatprep.subr.bf16.mxu0 %v7098_v0 }
 0x8d2   :  { %5100 = vmatmul.mubr.f32.vlgmr.msra.gmra.mrb[20].mxu1 %v1836_v59  ;;  %5135 = vmatmul.mubr.f32.vlgmr.msra.gmra.mrb[18].mxu0 %v1836_v59 }
 0x8d3   :  { %6247 = vmatpush3.bf16.msra.mxu1 %v7364_v3  ;;  %5169 = vmatprep.mubr.msk.f32.mxu1 %vm7099_vm0, %v7100_v1 }
 0x8d4   :  { %6248 = vmatprep.subr.bf16.mxu1 %v7098_v0  ;;  %6271 = vmatpush3.bf16.msra.mxu0 %v7442_v19 }
 0x8d5   :  { %6272 = vmatprep.subr.bf16.mxu0 %v7098_v0  ;;  %5204 = vmatprep.mubr.msk.f32.mxu0 %vm7099_vm0, %v7100_v1 }
 0x8d7   :  { %6250 = vmatpush3.bf16.msra.mxu1 %v7370_v6 }
 0x8d8   :  { %6251 = vmatprep.subr.bf16.mxu1 %v7098_v0  ;;  %6274 = vmatpush3.bf16.msra.mxu0 %v7445_v21 }
 0x8d9   :  { %6275 = vmatprep.subr.bf16.mxu0 %v7098_v0 }
 0x8db   :  { %6253 = vmatpush3.bf16.msra.mxu1 %v7376_v9 }
 0x8dc   :  { %6254 = vmatprep.subr.bf16.mxu1 %v7098_v0  ;;  %6277 = vmatpush3.bf16.msra.mxu0 %v7451_v32 }
 0x8dd   :  { %6278 = vmatprep.subr.bf16.mxu0 %v7098_v0 }
 0x8df   :  { %6256 = vmatpush3.bf16.msra.mxu1 %v7380_v12 }
 0x8e0   :  { %6257 = vmatprep.subr.bf16.mxu1 %v7098_v0  ;;  %6280 = vmatpush3.bf16.msra.mxu0 %v7459_v48 }
 0x8e1   :  { %6281 = vmatprep.subr.bf16.mxu0 %v7098_v0 }
 0x8e3   :  { %6259 = vmatpush3.bf16.msra.mxu1 %v7384_v15 }
 0x8e4   :  { %6260 = vmatprep.subr.bf16.mxu1 %v7098_v0  ;;  %6283 = vmatpush3.bf16.msra.mxu0 %v7467_v58 }
 0x8e5   :  { %6284 = vmatprep.subr.bf16.mxu0 %v7098_v0 }
 0x8e7   :  { %6262 = vmatpush3.bf16.msra.mxu1 %v7388_v18 }
 0x8e8   :  { %6263 = vmatprep.subr.bf16.mxu1 %v7098_v0  ;;  %6286 = vmatpush3.bf16.msra.mxu0 %v7475_v4 }
 0x8e9   :  { %6287 = vmatprep.subr.bf16.mxu0 %v7098_v0 }
 0x8eb   :  { %6265 = vmatpush3.bf16.msra.mxu1 %v7395_v24 }
 0x8ec   :  { %6266 = vmatprep.subr.bf16.mxu1 %v7098_v0  ;;  %6289 = vmatpush3.bf16.msra.mxu0 %v7483_v16 }
 0x8ed   :  { %6290 = vmatprep.subr.bf16.mxu0 %v7098_v0 }
 0x8ef   :  { %6268 = vmatpush3.bf16.msra.mxu1 %v7403_v27 }
 0x8f0   :  { %6292 = vmatpush3.bf16.msra.mxu0 %v7491_v28  ;;  %6293 = vmatprep.subr.bf16.mxu1 %v7098_v0 }
 0x8f1   :  { %6317 = vmatprep.subr.bf16.mxu0 %v7098_v0 }
 0x8f2   :  { %5170 = vmatmul.mubr.f32.vlgmr.msra.gmra.mrb[22].mxu1 %v549_v33 }
 0x8f3   :  { %6295 = vmatpush3.bf16.msra.mxu1 %v7448_v29  ;;  %5239 = vmatprep.mubr.msk.f32.mxu1 %vm7099_vm0, %v7100_v1 }
 0x8f4   :  { %6296 = vmatprep.subr.bf16.mxu1 %v7098_v0 }
 0x8f7   :  { %6298 = vmatpush3.bf16.msra.mxu1 %v7455_v40 }
 0x8f8   :  { %6299 = vmatprep.subr.bf16.mxu1 %v7098_v0 }
 0x8fb   :  { %6301 = vmatpush3.bf16.msra.mxu1 %v7463_v53 }
 0x8fc   :  { %6302 = vmatprep.subr.bf16.mxu1 %v7098_v0 }
 0x8ff   :  { %6304 = vmatpush3.bf16.msra.mxu1 %v7471_v62 }
 0x900   :  { %6305 = vmatprep.subr.bf16.mxu1 %v7098_v0 }
 0x903   :  { %6307 = vmatpush3.bf16.msra.mxu1 %v7479_v11 }
 0x904   :  { %6308 = vmatprep.subr.bf16.mxu1 %v7098_v0 }
 0x907   :  { %6310 = vmatpush3.bf16.msra.mxu1 %v7487_v22 }
 0x908   :  { %6311 = vmatprep.subr.bf16.mxu1 %v7098_v0 }
 0x90b   :  { %6313 = vmatpush3.bf16.msra.mxu1 %v7495_v30 }
 0x90c   :  { %6314 = vmatprep.subr.bf16.mxu1 %v7098_v0 }
 0x90f   :  { %6316 = vmatpush3.bf16.msra.mxu1 %v7501_v37 }
 0x910   :  { %6341 = vmatprep.subr.bf16.mxu1 %v7098_v0 }
 0x985   :  { %v1903_v41 = vpop.f32.mrb[16].mxu0 }
 0x986   :  { %v5066_v7 = vpop.f32.mrb[17].mxu0 }
 0x9a5   :  { %v1973_v13 = vpop.f32.mrb[20].mxu1  ;;  %v2063_v17 = vpop.f32.mrb[18].mxu0 }
 0x9a6   :  { %v1974_v8 = vadd.f32 %v1973_v13, %v1903_v41  ;;  %v5101_v20 = vpop.f32.mrb[21].mxu1  ;;  %v5136_v14 = vpop.f32.mrb[19].mxu0 }
 0x9a8   :  { %v1977_v25 = vadd.f32 %v7589_v36, %v1974_v8 }
 0x9aa   :  { %v3733_v26 = vmul.f32 -1.442695, %v1977_v25 }
 0x9ac   :  { %6784 = vpow2.f32 %v3733_v26 }
 0x9ad   :  { %6786 = vtanh.f32 %v1977_v25 }
 0x9b6   :  { %v6785_v34 = vpop.eup %6784 }
 0x9b7   :  { %v1982_v51 = vadd.f32 1.0, %v6785_v34  ;;  %v6787_v57 = vpop.eup %6786 }
 0x9b9   :  { %6788 = vrcp.f32 %v1982_v51 }
 0x9c3   :  { %v6789_v61 = vpop.eup %6788 }
 0x9c4   :  { %v1985_v45 = vsel %vm7430_vm4, %v6787_v57, %v6789_v61 }
 0x9c5   :  { %v2133_v10 = vpop.f32.mrb[22].mxu1  ;;  %1986 = vrot.lane.b32.xlu1 %v1985_v45, %s7085_s27 }
 0x9c6   :  { %v2134_v31 = vadd.f32 %v2133_v10, %v2063_v17  ;;  %v5171_v55 = vpop.f32.mrb[23].mxu1 }
 0x9c7   :  { %v3718_v55 = vld [vmem:[#allocation7 + $0x4] ss:$0 sm:$0xff] }
 0x9c8   :  { %v2137_v59 = vadd.f32 %v7427_v54, %v2134_v31  ;;  %v1989_v54 = vmul.f32 %v1985_v45, %v7694_v42 }
 0x9ca   :  { %v3734_v63 = vmul.f32 -1.442695, %v2137_v59 }
 0x9cc   :  { %6790 = vpow2.f32 %v3734_v63 }
 0x9cd   :  { %6792 = vtanh.f32 %v2137_v59  ;;  %v647_v59 = vadd.f32 %v3718_v55, %v7414_v38 }
 0x9cf   :  { %v650_v63 = vmax.f32 %v647_v59, 0.0 }
 0x9d6   :  { %v6791_v2 = vpop.eup %6790 }
 0x9d7   :  { %v2142_v33 = vadd.f32 1.0, %v6791_v2  ;;  %v6793_v41 = vpop.eup %6792 }
 0x9d9   :  { %6794 = vrcp.f32 %v2142_v33 }
 0x9e3   :  { %v6795_v7 = vpop.eup %6794 }
 0x9e4   :  { %v2145_v13 = vsel %vm7430_vm4, %v6793_v41, %v6795_v7 }
 0x9e5   :  { %2146 = vrot.lane.b32.xlu0 %v2145_v13, %s7085_s27  ;;  %v2149_v51 = vmul.f32 %v2145_v13, %v7699_v50 }
 0xa37   :  { %v1987_v8 = vpop.permute.xlu1 %1986 }
 0xa38   :  { %v1988_v20 = vmul.f32 %v1987_v8, %v1985_v45 }
 0xa3a   :  { %1990 = vrot.lane.b32.xlu1 %v1988_v20, %s7101_s24 }
 0xa57   :  { %v2147_v17 = vpop.permute.xlu0 %2146 }
 0xa58   :  { %v2148_v14 = vmul.f32 %v2147_v17, %v2145_v13 }
 0xa5a   :  { %2150 = vrot.lane.b32.xlu0 %v2148_v14, %s7101_s24 }
 0xaac   :  { %v1991_v25 = vpop.permute.xlu1 %1990 }
 0xaad   :  { %v7787_v26 = vadd.f32 %v1991_v25, %v1989_v54 }
 0xaaf   :  { %6796 = vtanh.f32 %v7787_v26 }
 0xab9   :  { %v6797_v34 = vpop.eup %6796 }
 0xaba   :  { %1994 = vrot.lane.b32.xlu1 %v6797_v34, %s7085_s27 }
 0xacc   :  { %v2151_v57 = vpop.permute.xlu0 %2150 }
 0xacd   :  { %v7792_v61 = vadd.f32 %v2151_v57, %v2149_v51 }
 0xacf   :  { %6798 = vtanh.f32 %v7792_v61 }
 0xad9   :  { %v6799_v10 = vpop.eup %6798 }
 0xada   :  { %2154 = vrot.lane.b32.xlu0 %v6799_v10, %s7085_s27 }
 0xb2c   :  { %v1995_v31 = vpop.permute.xlu1 %1994 }
 0xb2d   :  { %v1996_v42 = vmul.f32 %v1995_v31, %v1985_v45 }
 0xb2f   :  { %5205 = vmatmul.mubr.f32.vlgmr.msra.gmra.mrb[20].mxu0 %v1996_v42 }
 0xb30   :  { %6319 = vmatpush3.bf16.msra.mxu0 %v7321_v35  ;;  %5274 = vmatprep.mubr.msk.f32.mxu0 %vm7099_vm0, %v7100_v1 }
 0xb31   :  { %6320 = vmatprep.subr.bf16.mxu0 %v7098_v0 }
 0xb34   :  { %6322 = vmatpush3.bf16.msra.mxu0 %v7329_v39 }
 0xb35   :  { %6323 = vmatprep.subr.bf16.mxu0 %v7098_v0 }
 0xb38   :  { %6325 = vmatpush3.bf16.msra.mxu0 %v7336_v43 }
 0xb39   :  { %6326 = vmatprep.subr.bf16.mxu0 %v7098_v0 }
 0xb3c   :  { %6328 = vmatpush3.bf16.msra.mxu0 %v7341_v47 }
 0xb3d   :  { %6329 = vmatprep.subr.bf16.mxu0 %v7098_v0 }
 0xb40   :  { %6331 = vmatpush3.bf16.msra.mxu0 %v7347_v52 }
 0xb41   :  { %6332 = vmatprep.subr.bf16.mxu0 %v7098_v0 }
 0xb44   :  { %6334 = vmatpush3.bf16.msra.mxu0 %v7354_v56 }
 0xb45   :  { %6335 = vmatprep.subr.bf16.mxu0 %v7098_v0 }
 0xb48   :  { %6337 = vmatpush3.bf16.msra.mxu0 %v7359_v60 }
 0xb49   :  { %6338 = vmatprep.subr.bf16.mxu0 %v7098_v0 }
 0xb4c   :  { %6340 = vmatpush3.bf16.msra.mxu0 %v7391_v23  ;;  %v2155_v50 = vpop.permute.xlu0 %2154 }
 0xb4d   :  { %v2156_v45 = vmul.f32 %v2155_v50, %v2145_v13  ;;  %6365 = vmatprep.subr.bf16.mxu0 %v7098_v0 }
 0xb4f   :  { %5240 = vmatmul.mubr.f32.vlgmr.msra.gmra.mrb[24].mxu1 %v2156_v45  ;;  %5275 = vmatmul.mubr.f32.vlgmr.msra.gmra.mrb[22].mxu0 %v2156_v45 }
 0xb50   :  { %6343 = vmatpush3.bf16.msra.mxu1 %v7364_v3  ;;  %5309 = vmatprep.mubr.msk.f32.mxu1 %vm7099_vm0, %v7100_v1 }
 0xb51   :  { %6344 = vmatprep.subr.bf16.mxu1 %v7098_v0  ;;  %6367 = vmatpush3.bf16.msra.mxu0 %v7442_v19 }
 0xb52   :  { %6368 = vmatprep.subr.bf16.mxu0 %v7098_v0  ;;  %5344 = vmatprep.mubr.msk.f32.mxu0 %vm7099_vm0, %v7100_v1 }
 0xb54   :  { %6346 = vmatpush3.bf16.msra.mxu1 %v7370_v6 }
 0xb55   :  { %6347 = vmatprep.subr.bf16.mxu1 %v7098_v0  ;;  %6370 = vmatpush3.bf16.msra.mxu0 %v7445_v21 }
 0xb56   :  { %6371 = vmatprep.subr.bf16.mxu0 %v7098_v0 }
 0xb58   :  { %6349 = vmatpush3.bf16.msra.mxu1 %v7376_v9 }
 0xb59   :  { %6350 = vmatprep.subr.bf16.mxu1 %v7098_v0  ;;  %6373 = vmatpush3.bf16.msra.mxu0 %v7451_v32 }
 0xb5a   :  { %6374 = vmatprep.subr.bf16.mxu0 %v7098_v0 }
 0xb5c   :  { %6352 = vmatpush3.bf16.msra.mxu1 %v7380_v12 }
 0xb5d   :  { %6353 = vmatprep.subr.bf16.mxu1 %v7098_v0  ;;  %6376 = vmatpush3.bf16.msra.mxu0 %v7459_v48 }
 0xb5e   :  { %6377 = vmatprep.subr.bf16.mxu0 %v7098_v0 }
 0xb60   :  { %6355 = vmatpush3.bf16.msra.mxu1 %v7384_v15 }
 0xb61   :  { %6356 = vmatprep.subr.bf16.mxu1 %v7098_v0  ;;  %6379 = vmatpush3.bf16.msra.mxu0 %v7467_v58 }
 0xb62   :  { %6380 = vmatprep.subr.bf16.mxu0 %v7098_v0 }
 0xb64   :  { %6358 = vmatpush3.bf16.msra.mxu1 %v7388_v18 }
 0xb65   :  { %6359 = vmatprep.subr.bf16.mxu1 %v7098_v0  ;;  %6382 = vmatpush3.bf16.msra.mxu0 %v7475_v4 }
 0xb66   :  { %6383 = vmatprep.subr.bf16.mxu0 %v7098_v0 }
 0xb68   :  { %6361 = vmatpush3.bf16.msra.mxu1 %v7395_v24 }
 0xb69   :  { %6362 = vmatprep.subr.bf16.mxu1 %v7098_v0  ;;  %6385 = vmatpush3.bf16.msra.mxu0 %v7483_v16 }
 0xb6a   :  { %6386 = vmatprep.subr.bf16.mxu0 %v7098_v0 }
 0xb6c   :  { %6364 = vmatpush3.bf16.msra.mxu1 %v7403_v27 }
 0xb6d   :  { %6388 = vmatpush3.bf16.msra.mxu0 %v7491_v28  ;;  %6389 = vmatprep.subr.bf16.mxu1 %v7098_v0 }
 0xb6e   :  { %6413 = vmatprep.subr.bf16.mxu0 %v7098_v0 }
 0xb6f   :  { %5310 = vmatmul.mubr.f32.vlgmr.msra.gmra.mrb[26].mxu1 %v650_v63 }
 0xb70   :  { %6391 = vmatpush3.bf16.msra.mxu1 %v7448_v29  ;;  %5379 = vmatprep.mubr.msk.f32.mxu1 %vm7099_vm0, %v7100_v1 }
 0xb71   :  { %6392 = vmatprep.subr.bf16.mxu1 %v7098_v0 }
 0xb74   :  { %6394 = vmatpush3.bf16.msra.mxu1 %v7455_v40 }
 0xb75   :  { %6395 = vmatprep.subr.bf16.mxu1 %v7098_v0 }
 0xb78   :  { %6397 = vmatpush3.bf16.msra.mxu1 %v7463_v53 }
 0xb79   :  { %6398 = vmatprep.subr.bf16.mxu1 %v7098_v0 }
 0xb7c   :  { %6400 = vmatpush3.bf16.msra.mxu1 %v7471_v62 }
 0xb7d   :  { %6401 = vmatprep.subr.bf16.mxu1 %v7098_v0 }
 0xb80   :  { %6403 = vmatpush3.bf16.msra.mxu1 %v7479_v11 }
 0xb81   :  { %6404 = vmatprep.subr.bf16.mxu1 %v7098_v0 }
 0xb84   :  { %6406 = vmatpush3.bf16.msra.mxu1 %v7487_v22 }
 0xb85   :  { %6407 = vmatprep.subr.bf16.mxu1 %v7098_v0 }
 0xb88   :  { %6409 = vmatpush3.bf16.msra.mxu1 %v7495_v30 }
 0xb89   :  { %6410 = vmatprep.subr.bf16.mxu1 %v7098_v0 }
 0xb8c   :  { %6412 = vmatpush3.bf16.msra.mxu1 %v7501_v37 }
 0xb8d   :  { %6437 = vmatprep.subr.bf16.mxu1 %v7098_v0 }
 0xc02   :  { %v2223_v38 = vpop.f32.mrb[20].mxu0 }
 0xc03   :  { %v5206_v2 = vpop.f32.mrb[21].mxu0 }
 0xc22   :  { %v2293_v33 = vpop.f32.mrb[24].mxu1  ;;  %v2383_v41 = vpop.f32.mrb[22].mxu0 }
 0xc23   :  { %v2294_v7 = vadd.f32 %v2293_v33, %v2223_v38  ;;  %v5241_v13 = vpop.f32.mrb[25].mxu1  ;;  %v5276_v8 = vpop.f32.mrb[23].mxu0 }
 0xc25   :  { %v2297_v20 = vadd.f32 %v7589_v36, %v2294_v7  ;;  %v7876_v36 = vld [vmem:[%s8210_s5] ss:$0 sm:$0xff] }
 0xc27   :  { %v3735_v17 = vmul.f32 -1.442695, %v2297_v20 }
 0xc29   :  { %6800 = vpow2.f32 %v3735_v17 }
 0xc2a   :  { %6802 = vtanh.f32 %v2297_v20 }
 0xc33   :  { %v6801_v14 = vpop.eup %6800 }
 0xc34   :  { %v2302_v54 = vadd.f32 1.0, %v6801_v14  ;;  %v6803_v25 = vpop.eup %6802 }
 0xc36   :  { %6804 = vrcp.f32 %v2302_v54 }
 0xc40   :  { %v6805_v34 = vpop.eup %6804 }
 0xc41   :  { %v2305_v51 = vsel %vm7430_vm4, %v6803_v25, %v6805_v34 }
 0xc42   :  { %v2453_v57 = vpop.f32.mrb[26].mxu1  ;;  %2306 = vrot.lane.b32.xlu1 %v2305_v51, %s7085_s27  ;;  %v2309_v13 = vmul.f32 %v2305_v51, %v7787_v26 }
 0xc43   :  { %v2454_v10 = vadd.f32 %v2453_v57, %v2383_v41  ;;  %v5311_v31 = vpop.f32.mrb[27].mxu1 }
 0xc45   :  { %v2457_v42 = vadd.f32 %v7876_v36, %v2454_v10  ;;  %v3720_v10 = vld [vmem:[#allocation7 + $0x5] ss:$0 sm:$0xff] }
 0xc46   :  { %v748_v31 = vadd.f32 %v3720_v10, %v7420_v46 }
 0xc47   :  { %v3736_v50 = vmul.f32 -1.442695, %v2457_v42 }
 0xc49   :  { %6806 = vpow2.f32 %v3736_v50 }
 0xc4a   :  { %6808 = vtanh.f32 %v2457_v42  ;;  %v751_v42 = vmax.f32 %v748_v31, 0.0 }
 0xc53   :  { %v6807_v45 = vpop.eup %6806 }
 0xc54   :  { %v2462_v55 = vadd.f32 1.0, %v6807_v45  ;;  %v6809_v59 = vpop.eup %6808 }
 0xc56   :  { %6810 = vrcp.f32 %v2462_v55 }
 0xc60   :  { %v6811_v63 = vpop.eup %6810 }
 0xc61   :  { %v2465_v38 = vsel %vm7430_vm4, %v6809_v59, %v6811_v63 }
 0xc62   :  { %2466 = vrot.lane.b32.xlu0 %v2465_v38, %s7085_s27  ;;  %v2469_v14 = vmul.f32 %v2465_v38, %v7792_v61 }
 0xcb4   :  { %v2307_v2 = vpop.permute.xlu1 %2306 }
 0xcb5   :  { %v2308_v33 = vmul.f32 %v2307_v2, %v2305_v51  ;;  %v7970_v2 = vld [vmem:[%s8213_s8] ss:$0 sm:$0xff] }
 0xcb7   :  { %2310 = vrot.lane.b32.xlu1 %v2308_v33, %s7101_s24 }
 0xcd4   :  { %v2467_v41 = vpop.permute.xlu0 %2466 }
 0xcd5   :  { %v2468_v7 = vmul.f32 %v2467_v41, %v2465_v38 }
 0xcd7   :  { %2470 = vrot.lane.b32.xlu0 %v2468_v7, %s7101_s24 }
 0xd29   :  { %v2311_v8 = vpop.permute.xlu1 %2310 }
 0xd2a   :  { %v7885_v20 = vadd.f32 %v2311_v8, %v2309_v13 }
 0xd2c   :  { %6812 = vtanh.f32 %v7885_v20 }
 0xd36   :  { %v6813_v17 = vpop.eup %6812 }
 0xd37   :  { %2314 = vrot.lane.b32.xlu1 %v6813_v17, %s7085_s27 }
 0xd49   :  { %v2471_v54 = vpop.permute.xlu0 %2470 }
 0xd4a   :  { %v7890_v25 = vadd.f32 %v2471_v54, %v2469_v14 }
 0xd4c   :  { %6814 = vtanh.f32 %v7890_v25 }
 0xd56   :  { %v6815_v34 = vpop.eup %6814 }
 0xd57   :  { %2474 = vrot.lane.b32.xlu0 %v6815_v34, %s7085_s27 }
 0xda9   :  { %v2315_v57 = vpop.permute.xlu1 %2314 }
 0xdaa   :  { %v2316_v26 = vmul.f32 %v2315_v57, %v2305_v51 }
 0xdac   :  { %5345 = vmatmul.mubr.f32.vlgmr.msra.gmra.mrb[24].mxu0 %v2316_v26 }
 0xdad   :  { %6415 = vmatpush3.bf16.msra.mxu0 %v7321_v35  ;;  %5414 = vmatprep.mubr.msk.f32.mxu0 %vm7099_vm0, %v7100_v1 }
 0xdae   :  { %6416 = vmatprep.subr.bf16.mxu0 %v7098_v0 }
 0xdb1   :  { %6418 = vmatpush3.bf16.msra.mxu0 %v7329_v39 }
 0xdb2   :  { %6419 = vmatprep.subr.bf16.mxu0 %v7098_v0 }
 0xdb5   :  { %6421 = vmatpush3.bf16.msra.mxu0 %v7336_v43 }
 0xdb6   :  { %6422 = vmatprep.subr.bf16.mxu0 %v7098_v0 }
 0xdb9   :  { %6424 = vmatpush3.bf16.msra.mxu0 %v7341_v47 }
 0xdba   :  { %6425 = vmatprep.subr.bf16.mxu0 %v7098_v0 }
 0xdbd   :  { %6427 = vmatpush3.bf16.msra.mxu0 %v7347_v52 }
 0xdbe   :  { %6428 = vmatprep.subr.bf16.mxu0 %v7098_v0 }
 0xdc1   :  { %6430 = vmatpush3.bf16.msra.mxu0 %v7354_v56 }
 0xdc2   :  { %6431 = vmatprep.subr.bf16.mxu0 %v7098_v0 }
 0xdc5   :  { %6433 = vmatpush3.bf16.msra.mxu0 %v7359_v60 }
 0xdc6   :  { %6434 = vmatprep.subr.bf16.mxu0 %v7098_v0 }
 0xdc9   :  { %6436 = vmatpush3.bf16.msra.mxu0 %v7391_v23  ;;  %v2475_v61 = vpop.permute.xlu0 %2474 }
 0xdca   :  { %v2476_v51 = vmul.f32 %v2475_v61, %v2465_v38  ;;  %6461 = vmatprep.subr.bf16.mxu0 %v7098_v0 }
 0xdcc   :  { %5380 = vmatmul.mubr.f32.vlgmr.msra.gmra.mrb[28].mxu1 %v2476_v51  ;;  %5415 = vmatmul.mubr.f32.vlgmr.msra.gmra.mrb[26].mxu0 %v2476_v51 }
 0xdcd   :  { %6439 = vmatpush3.bf16.msra.mxu1 %v7364_v3  ;;  %5449 = vmatprep.mubr.msk.f32.mxu1 %vm7099_vm0, %v7100_v1 }
 0xdce   :  { %6440 = vmatprep.subr.bf16.mxu1 %v7098_v0  ;;  %6463 = vmatpush3.bf16.msra.mxu0 %v7442_v19 }
 0xdcf   :  { %6464 = vmatprep.subr.bf16.mxu0 %v7098_v0  ;;  %5484 = vmatprep.mubr.msk.f32.mxu0 %vm7099_vm0, %v7100_v1 }
 0xdd1   :  { %6442 = vmatpush3.bf16.msra.mxu1 %v7370_v6 }
 0xdd2   :  { %6443 = vmatprep.subr.bf16.mxu1 %v7098_v0  ;;  %6466 = vmatpush3.bf16.msra.mxu0 %v7445_v21 }
 0xdd3   :  { %6467 = vmatprep.subr.bf16.mxu0 %v7098_v0 }
 0xdd5   :  { %6445 = vmatpush3.bf16.msra.mxu1 %v7376_v9 }
 0xdd6   :  { %6446 = vmatprep.subr.bf16.mxu1 %v7098_v0  ;;  %6469 = vmatpush3.bf16.msra.mxu0 %v7451_v32 }
 0xdd7   :  { %6470 = vmatprep.subr.bf16.mxu0 %v7098_v0 }
 0xdd9   :  { %6448 = vmatpush3.bf16.msra.mxu1 %v7380_v12 }
 0xdda   :  { %6449 = vmatprep.subr.bf16.mxu1 %v7098_v0  ;;  %6472 = vmatpush3.bf16.msra.mxu0 %v7459_v48 }
 0xddb   :  { %6473 = vmatprep.subr.bf16.mxu0 %v7098_v0 }
 0xddd   :  { %6451 = vmatpush3.bf16.msra.mxu1 %v7384_v15 }
 0xdde   :  { %6452 = vmatprep.subr.bf16.mxu1 %v7098_v0  ;;  %6475 = vmatpush3.bf16.msra.mxu0 %v7467_v58 }
 0xddf   :  { %6476 = vmatprep.subr.bf16.mxu0 %v7098_v0 }
 0xde1   :  { %6454 = vmatpush3.bf16.msra.mxu1 %v7388_v18 }
 0xde2   :  { %6455 = vmatprep.subr.bf16.mxu1 %v7098_v0  ;;  %6478 = vmatpush3.bf16.msra.mxu0 %v7475_v4 }
 0xde3   :  { %6479 = vmatprep.subr.bf16.mxu0 %v7098_v0 }
 0xde5   :  { %6457 = vmatpush3.bf16.msra.mxu1 %v7395_v24 }
 0xde6   :  { %6458 = vmatprep.subr.bf16.mxu1 %v7098_v0  ;;  %6481 = vmatpush3.bf16.msra.mxu0 %v7483_v16 }
 0xde7   :  { %6482 = vmatprep.subr.bf16.mxu0 %v7098_v0 }
 0xde9   :  { %6460 = vmatpush3.bf16.msra.mxu1 %v7403_v27 }
 0xdea   :  { %6484 = vmatpush3.bf16.msra.mxu0 %v7491_v28  ;;  %6485 = vmatprep.subr.bf16.mxu1 %v7098_v0 }
 0xdeb   :  { %6509 = vmatprep.subr.bf16.mxu0 %v7098_v0 }
 0xdec   :  { %5450 = vmatmul.mubr.f32.vlgmr.msra.gmra.mrb[30].mxu1 %v751_v42 }
 0xded   :  { %6487 = vmatpush3.bf16.msra.mxu1 %v7448_v29  ;;  %5519 = vmatprep.mubr.msk.f32.mxu1 %vm7099_vm0, %v7100_v1 }
 0xdee   :  { %6488 = vmatprep.subr.bf16.mxu1 %v7098_v0 }
 0xdf1   :  { %6490 = vmatpush3.bf16.msra.mxu1 %v7455_v40 }
 0xdf2   :  { %6491 = vmatprep.subr.bf16.mxu1 %v7098_v0 }
 0xdf5   :  { %6493 = vmatpush3.bf16.msra.mxu1 %v7463_v53 }
 0xdf6   :  { %6494 = vmatprep.subr.bf16.mxu1 %v7098_v0 }
 0xdf9   :  { %6496 = vmatpush3.bf16.msra.mxu1 %v7471_v62 }
 0xdfa   :  { %6497 = vmatprep.subr.bf16.mxu1 %v7098_v0 }
 0xdfd   :  { %6499 = vmatpush3.bf16.msra.mxu1 %v7479_v11 }
 0xdfe   :  { %6500 = vmatprep.subr.bf16.mxu1 %v7098_v0 }
 0xe01   :  { %6502 = vmatpush3.bf16.msra.mxu1 %v7487_v22 }
 0xe02   :  { %6503 = vmatprep.subr.bf16.mxu1 %v7098_v0 }
 0xe05   :  { %6505 = vmatpush3.bf16.msra.mxu1 %v7495_v30 }
 0xe06   :  { %6506 = vmatprep.subr.bf16.mxu1 %v7098_v0 }
 0xe09   :  { %6508 = vmatpush3.bf16.msra.mxu1 %v7501_v37 }
 0xe0a   :  { %6533 = vmatprep.subr.bf16.mxu1 %v7098_v0 }
 0xe7f   :  { %v2543_v46 = vpop.f32.mrb[24].mxu0 }
 0xe80   :  { %v5346_v50 = vpop.f32.mrb[25].mxu0 }
 0xe9f   :  { %v2613_v45 = vpop.f32.mrb[28].mxu1  ;;  %v2703_v55 = vpop.f32.mrb[26].mxu0 }
 0xea0   :  { %v2614_v59 = vadd.f32 %v2613_v45, %v2543_v46  ;;  %v5381_v63 = vpop.f32.mrb[29].mxu1  ;;  %v5416_v38 = vpop.f32.mrb[27].mxu0 }
 0xea2   :  { %v2617_v33 = vadd.f32 %v7970_v2, %v2614_v59 }
 0xea4   :  { %v3737_v41 = vmul.f32 -1.442695, %v2617_v33 }
 0xea6   :  { %6816 = vpow2.f32 %v3737_v41 }
 0xea7   :  { %6818 = vtanh.f32 %v2617_v33 }
 0xeb0   :  { %v6817_v7 = vpop.eup %6816 }
 0xeb1   :  { %v2622_v13 = vadd.f32 1.0, %v6817_v7  ;;  %v6819_v8 = vpop.eup %6818 }
 0xeb3   :  { %6820 = vrcp.f32 %v2622_v13 }
 0xebd   :  { %v6821_v17 = vpop.eup %6820 }
 0xebe   :  { %v2625_v14 = vsel %vm7430_vm4, %v6819_v8, %v6821_v17 }
 0xebf   :  { %v2773_v54 = vpop.f32.mrb[30].mxu1  ;;  %2626 = vrot.lane.b32.xlu1 %v2625_v14, %s7085_s27  ;;  %v2629_v63 = vmul.f32 %v2625_v14, %v7885_v20 }
 0xec0   :  { %v2774_v34 = vadd.f32 %v2773_v54, %v2703_v55  ;;  %v5451_v57 = vpop.f32.mrb[31].mxu1 }
 0xec2   :  { %v2777_v26 = vadd.f32 %v7876_v36, %v2774_v34  ;;  %v3722_v34 = vld [vmem:[#allocation7 + $0x6] ss:$0 sm:$0xff] }
 0xec3   :  { %v849_v57 = vadd.f32 %v3722_v34, %v7418_v44 }
 0xec4   :  { %v3738_v61 = vmul.f32 -1.442695, %v2777_v26 }
 0xec6   :  { %6822 = vpow2.f32 %v3738_v61 }
 0xec7   :  { %6824 = vtanh.f32 %v2777_v26  ;;  %v852_v26 = vmax.f32 %v849_v57, 0.0 }
 0xed0   :  { %v6823_v51 = vpop.eup %6822 }
 0xed1   :  { %v2782_v10 = vadd.f32 1.0, %v6823_v51  ;;  %v6825_v31 = vpop.eup %6824 }
 0xed3   :  { %6826 = vrcp.f32 %v2782_v10 }
 0xedd   :  { %v6827_v42 = vpop.eup %6826 }
 0xede   :  { %v2785_v46 = vsel %vm7430_vm4, %v6825_v31, %v6827_v42 }
 0xedf   :  { %2786 = vrot.lane.b32.xlu0 %v2785_v46, %s7085_s27  ;;  %v2789_v7 = vmul.f32 %v2785_v46, %v7890_v25 }
 0xf31   :  { %v2627_v50 = vpop.permute.xlu1 %2626 }
 0xf32   :  { %v2628_v45 = vmul.f32 %v2627_v50, %v2625_v14 }
 0xf34   :  { %2630 = vrot.lane.b32.xlu1 %v2628_v45, %s7101_s24 }
 0xf51   :  { %v2787_v55 = vpop.permute.xlu0 %2786 }
 0xf52   :  { %v2788_v59 = vmul.f32 %v2787_v55, %v2785_v46 }
 0xf54   :  { %2790 = vrot.lane.b32.xlu0 %v2788_v59, %s7101_s24 }
 0xfa6   :  { %v2631_v38 = vpop.permute.xlu1 %2630 }
 0xfa7   :  { %v7983_v33 = vadd.f32 %v2631_v38, %v2629_v63 }
 0xfa9   :  { %6828 = vtanh.f32 %v7983_v33 }
 0xfb3   :  { %v6829_v41 = vpop.eup %6828 }
 0xfb4   :  { %2634 = vrot.lane.b32.xlu1 %v6829_v41, %s7085_s27 }
 0xfc6   :  { %v2791_v13 = vpop.permute.xlu0 %2790 }
 0xfc7   :  { %v7988_v8 = vadd.f32 %v2791_v13, %v2789_v7 }
 0xfc9   :  { %6830 = vtanh.f32 %v7988_v8 }
 0xfd3   :  { %v6831_v17 = vpop.eup %6830 }
 0xfd4   :  { %2794 = vrot.lane.b32.xlu0 %v6831_v17, %s7085_s27 }
0x1026   :  { %v2635_v54 = vpop.permute.xlu1 %2634 }
0x1027   :  { %v2636_v20 = vmul.f32 %v2635_v54, %v2625_v14 }
0x1029   :  { %5485 = vmatmul.mubr.f32.vlgmr.msra.gmra.mrb[28].mxu0 %v2636_v20 }
0x102a   :  { %6511 = vmatpush3.bf16.msra.mxu0 %v7321_v35  ;;  %5554 = vmatprep.mubr.msk.f32.mxu0 %vm7099_vm0, %v7100_v1 }
0x102b   :  { %6512 = vmatprep.subr.bf16.mxu0 %v7098_v0 }
0x102e   :  { %6514 = vmatpush3.bf16.msra.mxu0 %v7329_v39 }
0x102f   :  { %6515 = vmatprep.subr.bf16.mxu0 %v7098_v0 }
0x1032   :  { %6517 = vmatpush3.bf16.msra.mxu0 %v7336_v43 }
0x1033   :  { %6518 = vmatprep.subr.bf16.mxu0 %v7098_v0 }
0x1036   :  { %6520 = vmatpush3.bf16.msra.mxu0 %v7341_v47 }
0x1037   :  { %6521 = vmatprep.subr.bf16.mxu0 %v7098_v0 }
0x103a   :  { %6523 = vmatpush3.bf16.msra.mxu0 %v7347_v52 }
0x103b   :  { %6524 = vmatprep.subr.bf16.mxu0 %v7098_v0 }
0x103e   :  { %6526 = vmatpush3.bf16.msra.mxu0 %v7354_v56 }
0x103f   :  { %6527 = vmatprep.subr.bf16.mxu0 %v7098_v0 }
0x1042   :  { %6529 = vmatpush3.bf16.msra.mxu0 %v7359_v60 }
0x1043   :  { %6530 = vmatprep.subr.bf16.mxu0 %v7098_v0 }
0x1046   :  { %6532 = vmatpush3.bf16.msra.mxu0 %v7391_v23  ;;  %v2795_v25 = vpop.permute.xlu0 %2794 }
0x1047   :  { %v2796_v14 = vmul.f32 %v2795_v25, %v2785_v46  ;;  %6557 = vmatprep.subr.bf16.mxu0 %v7098_v0 }
0x1049   :  { %5520 = vmatmul.mubr.f32.vlgmr.msra.gmra.mrb[32].mxu1 %v2796_v14  ;;  %5555 = vmatmul.mubr.f32.vlgmr.msra.gmra.mrb[30].mxu0 %v2796_v14 }
0x104a   :  { %6535 = vmatpush3.bf16.msra.mxu1 %v7364_v3  ;;  %5589 = vmatprep.mubr.msk.f32.mxu1 %vm7099_vm0, %v7100_v1 }
0x104b   :  { %6536 = vmatprep.subr.bf16.mxu1 %v7098_v0  ;;  %6559 = vmatpush3.bf16.msra.mxu0 %v7442_v19 }
0x104c   :  { %6560 = vmatprep.subr.bf16.mxu0 %v7098_v0  ;;  %5624 = vmatprep.mubr.msk.f32.mxu0 %vm7099_vm0, %v7100_v1 }
0x104e   :  { %6538 = vmatpush3.bf16.msra.mxu1 %v7370_v6 }
0x104f   :  { %6539 = vmatprep.subr.bf16.mxu1 %v7098_v0  ;;  %6562 = vmatpush3.bf16.msra.mxu0 %v7445_v21 }
0x1050   :  { %6563 = vmatprep.subr.bf16.mxu0 %v7098_v0 }
0x1052   :  { %6541 = vmatpush3.bf16.msra.mxu1 %v7376_v9 }
0x1053   :  { %6542 = vmatprep.subr.bf16.mxu1 %v7098_v0  ;;  %6565 = vmatpush3.bf16.msra.mxu0 %v7451_v32 }
0x1054   :  { %6566 = vmatprep.subr.bf16.mxu0 %v7098_v0 }
0x1056   :  { %6544 = vmatpush3.bf16.msra.mxu1 %v7380_v12 }
0x1057   :  { %6545 = vmatprep.subr.bf16.mxu1 %v7098_v0  ;;  %6568 = vmatpush3.bf16.msra.mxu0 %v7459_v48 }
0x1058   :  { %6569 = vmatprep.subr.bf16.mxu0 %v7098_v0 }
0x105a   :  { %6547 = vmatpush3.bf16.msra.mxu1 %v7384_v15 }
0x105b   :  { %6548 = vmatprep.subr.bf16.mxu1 %v7098_v0  ;;  %6571 = vmatpush3.bf16.msra.mxu0 %v7467_v58 }
0x105c   :  { %6572 = vmatprep.subr.bf16.mxu0 %v7098_v0 }
0x105e   :  { %6550 = vmatpush3.bf16.msra.mxu1 %v7388_v18 }
0x105f   :  { %6551 = vmatprep.subr.bf16.mxu1 %v7098_v0  ;;  %6574 = vmatpush3.bf16.msra.mxu0 %v7475_v4 }
0x1060   :  { %6575 = vmatprep.subr.bf16.mxu0 %v7098_v0 }
0x1062   :  { %6553 = vmatpush3.bf16.msra.mxu1 %v7395_v24 }
0x1063   :  { %6554 = vmatprep.subr.bf16.mxu1 %v7098_v0  ;;  %6577 = vmatpush3.bf16.msra.mxu0 %v7483_v16 }
0x1064   :  { %6578 = vmatprep.subr.bf16.mxu0 %v7098_v0 }
0x1066   :  { %6556 = vmatpush3.bf16.msra.mxu1 %v7403_v27 }
0x1067   :  { %6580 = vmatpush3.bf16.msra.mxu0 %v7491_v28  ;;  %6581 = vmatprep.subr.bf16.mxu1 %v7098_v0 }
0x1068   :  { %6605 = vmatprep.subr.bf16.mxu0 %v7098_v0 }
0x1069   :  { %5590 = vmatmul.mubr.f32.vlgmr.msra.gmra.mrb[34].mxu1 %v852_v26 }
0x106a   :  { %6583 = vmatpush3.bf16.msra.mxu1 %v7448_v29  ;;  %5659 = vmatprep.mubr.msk.f32.mxu1 %vm7099_vm0, %v7100_v1 }
0x106b   :  { %6584 = vmatprep.subr.bf16.mxu1 %v7098_v0 }
0x106e   :  { %6586 = vmatpush3.bf16.msra.mxu1 %v7455_v40 }
0x106f   :  { %6587 = vmatprep.subr.bf16.mxu1 %v7098_v0 }
0x1072   :  { %6589 = vmatpush3.bf16.msra.mxu1 %v7463_v53 }
0x1073   :  { %6590 = vmatprep.subr.bf16.mxu1 %v7098_v0 }
0x1076   :  { %6592 = vmatpush3.bf16.msra.mxu1 %v7471_v62 }
0x1077   :  { %6593 = vmatprep.subr.bf16.mxu1 %v7098_v0 }
0x107a   :  { %6595 = vmatpush3.bf16.msra.mxu1 %v7479_v11 }
0x107b   :  { %6596 = vmatprep.subr.bf16.mxu1 %v7098_v0 }
0x107e   :  { %6598 = vmatpush3.bf16.msra.mxu1 %v7487_v22 }
0x107f   :  { %6599 = vmatprep.subr.bf16.mxu1 %v7098_v0 }
0x1082   :  { %6601 = vmatpush3.bf16.msra.mxu1 %v7495_v30 }
0x1083   :  { %6602 = vmatprep.subr.bf16.mxu1 %v7098_v0 }
0x1086   :  { %6604 = vmatpush3.bf16.msra.mxu1 %v7501_v37 }
0x1087   :  { %6629 = vmatprep.subr.bf16.mxu1 %v7098_v0 }
0x10fc   :  { %v2863_v44 = vpop.f32.mrb[28].mxu0 }
0x10fd   :  { %v5486_v61 = vpop.f32.mrb[29].mxu0 }
0x111c   :  { %v2933_v51 = vpop.f32.mrb[32].mxu1  ;;  %v3023_v10 = vpop.f32.mrb[30].mxu0 }
0x111d   :  { %v2934_v31 = vadd.f32 %v2933_v51, %v2863_v44  ;;  %v5521_v42 = vpop.f32.mrb[33].mxu1  ;;  %v5556_v46 = vpop.f32.mrb[31].mxu0 }
0x111f   :  { %v2937_v50 = vadd.f32 %v7970_v2, %v2934_v31 }
0x1121   :  { %v3739_v45 = vmul.f32 -1.442695, %v2937_v50 }
0x1123   :  { %6832 = vpow2.f32 %v3739_v45 }
0x1124   :  { %6834 = vtanh.f32 %v2937_v50 }
0x112d   :  { %v6833_v55 = vpop.eup %6832 }
0x112e   :  { %v2942_v59 = vadd.f32 1.0, %v6833_v55  ;;  %v6835_v63 = vpop.eup %6834 }
0x1130   :  { %6836 = vrcp.f32 %v2942_v59 }
0x113a   :  { %v6837_v38 = vpop.eup %6836 }
0x113b   :  { %v2945_v41 = vsel %vm7430_vm4, %v6835_v63, %v6837_v38 }
0x113c   :  { %v3093_v7 = vpop.f32.mrb[34].mxu1  ;;  %2946 = vrot.lane.b32.xlu1 %v2945_v41, %s7085_s27  ;;  %v2949_v31 = vmul.f32 %v2945_v41, %v7983_v33 }
0x113d   :  { %v3094_v13 = vadd.f32 %v3093_v7, %v3023_v10  ;;  %v5591_v17 = vpop.f32.mrb[35].mxu1 }
0x113f   :  { %v3097_v54 = vadd.f32 %v7876_v36, %v3094_v13 }
0x1141   :  { %v3740_v20 = vmul.f32 -1.442695, %v3097_v54 }
0x1143   :  { %6838 = vpow2.f32 %v3740_v20 }
0x1144   :  { %6840 = vtanh.f32 %v3097_v54 }
0x114d   :  { %v6839_v25 = vpop.eup %6838 }
0x114e   :  { %v3102_v14 = vadd.f32 1.0, %v6839_v25  ;;  %v6841_v34 = vpop.eup %6840 }
0x1150   :  { %6842 = vrcp.f32 %v3102_v14 }
0x115a   :  { %v6843_v57 = vpop.eup %6842 }
0x115b   :  { %v3105_v26 = vsel %vm7430_vm4, %v6841_v34, %v6843_v57 }
0x115c   :  { %3106 = vrot.lane.b32.xlu0 %v3105_v26, %s7085_s27  ;;  %v3109_v45 = vmul.f32 %v3105_v26, %v7988_v8 }
0x11ae   :  { %v2947_v44 = vpop.permute.xlu1 %2946 }
0x11af   :  { %v2948_v61 = vmul.f32 %v2947_v44, %v2945_v41 }
0x11b1   :  { %2950 = vrot.lane.b32.xlu1 %v2948_v61, %s7101_s24 }
0x11ce   :  { %v3107_v51 = vpop.permute.xlu0 %3106 }
0x11cf   :  { %v3108_v10 = vmul.f32 %v3107_v51, %v3105_v26 }
0x11d1   :  { %3110 = vrot.lane.b32.xlu0 %v3108_v10, %s7101_s24 }
0x1223   :  { %v2951_v42 = vpop.permute.xlu1 %2950 }
0x1224   :  { %v8076_v46 = vadd.f32 %v2951_v42, %v2949_v31 }
0x1226   :  { %6844 = vtanh.f32 %v8076_v46 }
0x1230   :  { %v6845_v50 = vpop.eup %6844 }
0x1231   :  { %2954 = vrot.lane.b32.xlu1 %v6845_v50, %s7085_s27 }
0x1243   :  { %v3111_v55 = vpop.permute.xlu0 %3110 }
0x1244   :  { %v8081_v59 = vadd.f32 %v3111_v55, %v3109_v45 }
0x1246   :  { %6846 = vtanh.f32 %v8081_v59 }
0x1250   :  { %v6847_v63 = vpop.eup %6846 }
0x1251   :  { %3114 = vrot.lane.b32.xlu0 %v6847_v63, %s7085_s27 }
0x12a3   :  { %v2955_v38 = vpop.permute.xlu1 %2954 }
0x12a4   :  { %v2956_v33 = vmul.f32 %v2955_v38, %v2945_v41  ;;  %v3597_v38 = vld [vmem:[#allocation14] sm:$0xff] }
0x12a6   :  { %5625 = vmatmul.mubr.f32.vlgmr.msra.gmra.mrb[32].mxu0 %v2956_v33  ;;  %v3598_v33 = vld [vmem:[#allocation14 + $0x8] sm:$0xff] }
0x12a7   :  { %6607 = vmatpush3.bf16.msra.mxu0 %v7321_v35  ;;  %5694 = vmatprep.mubr.msk.f32.mxu0 %vm7099_vm0, %v7100_v1 }
0x12a8   :  { %6608 = vmatprep.subr.bf16.mxu0 %v7098_v0 }
0x12ab   :  { %6610 = vmatpush3.bf16.msra.mxu0 %v7329_v39 }
0x12ac   :  { %6611 = vmatprep.subr.bf16.mxu0 %v7098_v0 }
0x12af   :  { %6613 = vmatpush3.bf16.msra.mxu0 %v7336_v43  ;;  %v3724_v43 = vld [vmem:[#allocation7 + $0x7] ss:$0 sm:$0xff] }
0x12b0   :  { %6614 = vmatprep.subr.bf16.mxu0 %v7098_v0 }
0x12b3   :  { %6616 = vmatpush3.bf16.msra.mxu0 %v7341_v47  ;;  %v950_v47 = vadd.f32 %v3724_v43, %v7422_v49 }
0x12b4   :  { %6617 = vmatprep.subr.bf16.mxu0 %v7098_v0 }
0x12b7   :  { %6619 = vmatpush3.bf16.msra.mxu0 %v7347_v52  ;;  %v953_v52 = vmax.f32 %v950_v47, 0.0  ;;  %v3601_v47 = vld [vmem:[#allocation14 + $0x20] sm:$0xff] }
0x12b8   :  { %6620 = vmatprep.subr.bf16.mxu0 %v7098_v0 }
0x12bb   :  { %6622 = vmatpush3.bf16.msra.mxu0 %v7354_v56 }
0x12bc   :  { %6623 = vmatprep.subr.bf16.mxu0 %v7098_v0 }
0x12bf   :  { %6625 = vmatpush3.bf16.msra.mxu0 %v7359_v60 }
0x12c0   :  { %6626 = vmatprep.subr.bf16.mxu0 %v7098_v0 }
0x12c3   :  { %6628 = vmatpush3.bf16.msra.mxu0 %v7391_v23  ;;  %v3115_v35 = vpop.permute.xlu0 %3114 }
0x12c4   :  { %v3116_v39 = vmul.f32 %v3115_v35, %v3105_v26  ;;  %6653 = vmatprep.subr.bf16.mxu0 %v7098_v0  ;;  %v6702_v35 = vpack.c.bf16 %v3598_v33, %v3597_v38 }
0x12c6   :  { %5660 = vmatmul.mubr.f32.vlgmr.msra.gmra.mrb[36].mxu1 %v3116_v39  ;;  %5695 = vmatmul.mubr.f32.vlgmr.msra.gmra.mrb[34].mxu0 %v3116_v39  ;;  %v3600_v39 = vld [vmem:[#allocation14 + $0x18] sm:$0xff] }
0x12c7   :  { %6631 = vmatpush3.bf16.msra.mxu1 %v7364_v3  ;;  %5729 = vmatprep.mubr.msk.f32.mxu1 %vm7099_vm0, %v7100_v1 }
0x12c8   :  { %6632 = vmatprep.subr.bf16.mxu1 %v7098_v0  ;;  %6655 = vmatpush3.bf16.msra.mxu0 %v7442_v19 }
0x12c9   :  { %6656 = vmatprep.subr.bf16.mxu0 %v7098_v0  ;;  %5764 = vmatprep.mubr.msk.f32.mxu0 %vm7099_vm0, %v7100_v1 }
0x12cb   :  { %6634 = vmatpush3.bf16.msra.mxu1 %v7370_v6 }
0x12cc   :  { %6635 = vmatprep.subr.bf16.mxu1 %v7098_v0  ;;  %6658 = vmatpush3.bf16.msra.mxu0 %v7445_v21 }
0x12cd   :  { %6659 = vmatprep.subr.bf16.mxu0 %v7098_v0 }
0x12cf   :  { %6637 = vmatpush3.bf16.msra.mxu1 %v7376_v9 }
0x12d0   :  { %6638 = vmatprep.subr.bf16.mxu1 %v7098_v0  ;;  %6661 = vmatpush3.bf16.msra.mxu0 %v7451_v32 }
0x12d1   :  { %6662 = vmatprep.subr.bf16.mxu0 %v7098_v0 }
0x12d3   :  { %6640 = vmatpush3.bf16.msra.mxu1 %v7380_v12 }
0x12d4   :  { %6641 = vmatprep.subr.bf16.mxu1 %v7098_v0  ;;  %6664 = vmatpush3.bf16.msra.mxu0 %v7459_v48 }
0x12d5   :  { %6665 = vmatprep.subr.bf16.mxu0 %v7098_v0 }
0x12d7   :  { %6643 = vmatpush3.bf16.msra.mxu1 %v7384_v15 }
0x12d8   :  { %6644 = vmatprep.subr.bf16.mxu1 %v7098_v0  ;;  %6667 = vmatpush3.bf16.msra.mxu0 %v7467_v58 }
0x12d9   :  { %6668 = vmatprep.subr.bf16.mxu0 %v7098_v0 }
0x12db   :  { %6646 = vmatpush3.bf16.msra.mxu1 %v7388_v18 }
0x12dc   :  { %6647 = vmatprep.subr.bf16.mxu1 %v7098_v0  ;;  %6670 = vmatpush3.bf16.msra.mxu0 %v7475_v4 }
0x12dd   :  { %6671 = vmatprep.subr.bf16.mxu0 %v7098_v0 }
0x12df   :  { %6649 = vmatpush3.bf16.msra.mxu1 %v7395_v24 }
0x12e0   :  { %6650 = vmatprep.subr.bf16.mxu1 %v7098_v0  ;;  %6673 = vmatpush3.bf16.msra.mxu0 %v7483_v16 }
0x12e1   :  { %6674 = vmatprep.subr.bf16.mxu0 %v7098_v0 }
0x12e3   :  { %6652 = vmatpush3.bf16.msra.mxu1 %v7403_v27 }
0x12e4   :  { %6676 = vmatpush3.bf16.msra.mxu0 %v7491_v28  ;;  %6677 = vmatprep.subr.bf16.mxu1 %v7098_v0 }
0x12e5   :  { %6701 = vmatprep.subr.bf16.mxu0 %v7098_v0 }
0x12e6   :  { %5730 = vmatmul.mubr.f32.vlgmr.msra.gmra.mrb[38].mxu1 %v953_v52  ;;  %v3602_v52 = vld [vmem:[#allocation14 + $0x28] sm:$0xff] }
0x12e7   :  { %6679 = vmatpush3.bf16.msra.mxu1 %v7448_v29  ;;  %5799 = vmatprep.mubr.msk.f32.mxu1 %vm7099_vm0, %v7100_v1  ;;  %v6708_v5 = vpack.c.bf16 %v3602_v52, %v3601_v47 }
0x12e8   :  { %6680 = vmatprep.subr.bf16.mxu1 %v7098_v0 }
0x12eb   :  { %6682 = vmatpush3.bf16.msra.mxu1 %v7455_v40 }
0x12ec   :  { %6683 = vmatprep.subr.bf16.mxu1 %v7098_v0 }
0x12ef   :  { %6685 = vmatpush3.bf16.msra.mxu1 %v7463_v53 }
0x12f0   :  { %6686 = vmatprep.subr.bf16.mxu1 %v7098_v0 }
0x12f3   :  { %6688 = vmatpush3.bf16.msra.mxu1 %v7471_v62 }
0x12f4   :  { %6689 = vmatprep.subr.bf16.mxu1 %v7098_v0 }
0x12f7   :  { %6691 = vmatpush3.bf16.msra.mxu1 %v7479_v11 }
0x12f8   :  { %6692 = vmatprep.subr.bf16.mxu1 %v7098_v0 }
0x12fb   :  { %6694 = vmatpush3.bf16.msra.mxu1 %v7487_v22 }
0x12fc   :  { %6695 = vmatprep.subr.bf16.mxu1 %v7098_v0 }
0x12ff   :  { %6697 = vmatpush3.bf16.msra.mxu1 %v7495_v30 }
0x1300   :  { %6698 = vmatprep.subr.bf16.mxu1 %v7098_v0 }
0x1303   :  { %6700 = vmatpush3.bf16.msra.mxu1 %v7501_v37 }
0x1379   :  { %v3183_v56 = vpop.f32.mrb[32].mxu0 }
0x137a   :  { %v5626_v60 = vpop.f32.mrb[33].mxu0 }
0x137b   :  { %v3604_v60 = vld [vmem:[#allocation14 + $0x38] sm:$0xff] }
0x1399   :  { %v3253_v3 = vpop.f32.mrb[36].mxu1  ;;  %v3343_v6 = vpop.f32.mrb[34].mxu0 }
0x139a   :  { %v3254_v9 = vadd.f32 %v3253_v3, %v3183_v56  ;;  %v5661_v12 = vpop.f32.mrb[37].mxu1  ;;  %v5696_v15 = vpop.f32.mrb[35].mxu0  ;;  %v3603_v56 = vld [vmem:[#allocation14 + $0x30] sm:$0xff] }
0x139b   :  { %v6711_v3 = vpack.c.bf16 %v3604_v60, %v3603_v56  ;;  %v3607_v15 = vld [vmem:[#allocation14 + $0x50] sm:$0xff] }
0x139c   :  { %v3257_v18 = vadd.f32 %v7970_v2, %v3254_v9  ;;  %v3606_v9 = vld [vmem:[#allocation14 + $0x48] sm:$0xff] }
0x139e   :  { %v3741_v23 = vmul.f32 -1.442695, %v3257_v18 }
0x13a0   :  { %6848 = vpow2.f32 %v3741_v23 }
0x13a1   :  { %6850 = vtanh.f32 %v3257_v18  ;;  %v3608_v18 = vld [vmem:[#allocation14 + $0x58] sm:$0xff] }
0x13a2   :  { %v6717_v23 = vpack.c.bf16 %v3608_v18, %v3607_v15 }
0x13aa   :  { %v6849_v24 = vpop.eup %6848 }
0x13ab   :  { %v3262_v27 = vadd.f32 1.0, %v6849_v24  ;;  %v6851_v49 = vpop.eup %6850  ;;  %v3609_v24 = vld [vmem:[#allocation14 + $0x60] sm:$0xff] }
0x13ad   :  { %6852 = vrcp.f32 %v3262_v27  ;;  %v3610_v27 = vld [vmem:[#allocation14 + $0x68] sm:$0xff] }
0x13b7   :  { %v6853_v19 = vpop.eup %6852 }
0x13b8   :  { %v3265_v21 = vsel %vm7430_vm4, %v6851_v49, %v6853_v19  ;;  %v6720_v49 = vpack.c.bf16 %v3610_v27, %v3609_v24  ;;  %v3611_v19 = vld [vmem:[#allocation14 + $0x70] sm:$0xff] }
0x13b9   :  { %v3413_v29 = vpop.f32.mrb[38].mxu1  ;;  %3266 = vrot.lane.b32.xlu1 %v3265_v21, %s7085_s27 }
0x13ba   :  { %v3414_v32 = vadd.f32 %v3413_v29, %v3343_v6  ;;  %v5731_v40 = vpop.f32.mrb[39].mxu1  ;;  %v3605_v6 = vld [vmem:[#allocation14 + $0x40] sm:$0xff] }
0x13bb   :  { %v6714_v12 = vpack.c.bf16 %v3606_v9, %v3605_v6 }
0x13bc   :  { %v3417_v48 = vadd.f32 %v7876_v36, %v3414_v32  ;;  %v3269_v36 = vmul.f32 %v3265_v21, %v8076_v46 }
0x13be   :  { %v3742_v53 = vmul.f32 -1.442695, %v3417_v48 }
0x13c0   :  { %6854 = vpow2.f32 %v3742_v53 }
0x13c1   :  { %6856 = vtanh.f32 %v3417_v48 }
0x13ca   :  { %v6855_v58 = vpop.eup %6854 }
0x13cb   :  { %v3422_v62 = vadd.f32 1.0, %v6855_v58  ;;  %v6857_v4 = vpop.eup %6856 }
0x13cd   :  { %6858 = vrcp.f32 %v3422_v62 }
0x13d7   :  { %v6859_v11 = vpop.eup %6858 }
0x13d8   :  { %v3425_v16 = vsel %vm7430_vm4, %v6857_v4, %v6859_v11  ;;  %v3744_v4 = vld [vmem:[%s8215_s10] ss:$0 sm:$0xff] }
0x13d9   :  { %3426 = vrot.lane.b32.xlu0 %v3425_v16, %s7085_s27  ;;  %v3429_v13 = vmul.f32 %v3425_v16, %v8081_v59 }
0x142b   :  { %v3267_v22 = vpop.permute.xlu1 %3266 }
0x142c   :  { %v3268_v28 = vmul.f32 %v3267_v22, %v3265_v21 }
0x142e   :  { %3270 = vrot.lane.b32.xlu1 %v3268_v28, %s7101_s24 }
0x144b   :  { %v3427_v30 = vpop.permute.xlu0 %3426 }
0x144c   :  { %v3428_v37 = vmul.f32 %v3427_v30, %v3425_v16 }
0x144e   :  { %3430 = vrot.lane.b32.xlu0 %v3428_v37, %s7101_s24 }
0x14a0   :  { %v3271_v8 = vpop.permute.xlu1 %3270 }
0x14a1   :  { %v8168_v41 = vadd.f32 %v3271_v8, %v3269_v36 }
0x14a3   :  { %6860 = vtanh.f32 %v8168_v41 }
0x14ad   :  { %v6861_v7 = vpop.eup %6860 }
0x14ae   :  { %3274 = vrot.lane.b32.xlu1 %v6861_v7, %s7085_s27 }
0x14c0   :  { %v3431_v17 = vpop.permute.xlu0 %3430 }
0x14c1   :  { %v3432_v54 = vadd.f32 %v3431_v17, %v3429_v13 }
0x14c3   :  { %6862 = vtanh.f32 %v3432_v54 }
0x14cd   :  { %v6863_v20 = vpop.eup %6862 }
0x14ce   :  { %3434 = vrot.lane.b32.xlu0 %v6863_v20, %s7085_s27 }
0x1520   :  { %v3275_v25 = vpop.permute.xlu1 %3274 }
0x1521   :  { %v3276_v14 = vmul.f32 %v3275_v25, %v3265_v21  ;;  %v3612_v21 = vld [vmem:[#allocation14 + $0x78] sm:$0xff] }
0x1522   :  { %v6723_v29 = vpack.c.bf16 %v3612_v21, %v3611_v19 }
0x1523   :  { %5765 = vmatmul.mubr.f32.vlgmr.msra.gmra.mrb[36].mxu0 %v3276_v14 }
0x1524   :  { %5834 = vmatprep.mubr.msk.f32.mxu0 %vm7099_vm0, %v7100_v1  ;;  %6703 = vmatpush3.bf16.msra.mxu0 %v6702_v35 }
0x1525   :  { %6704 = vmatprep.subr.bf16.mxu0 %v7098_v0 }
0x1540   :  { %v3435_v34 = vpop.permute.xlu0 %3434 }
0x1541   :  { %v3436_v57 = vmul.f32 %v3435_v34, %v3425_v16 }
0x1543   :  { %5800 = vmatmul.mubr.f32.vlgmr.msra.gmra.mrb[40].mxu1 %v3436_v57 }
0x15f6   :  { %v3503_v26 = vpop.f32.mrb[36].mxu0 }
0x15f7   :  { %v5766_v44 = vpop.f32.mrb[37].mxu0 }
0x1616   :  { %v3573_v61 = vpop.f32.mrb[40].mxu1 }
0x1617   :  { %v3574_v51 = vadd.f32 %v3573_v61, %v3503_v26  ;;  %v5801_v10 = vpop.f32.mrb[41].mxu1 }
0x1619   :  { %v3577_v31 = vadd.f32 %v7970_v2, %v3574_v51  ;;  %v3599_v2 = vld [vmem:[#allocation14 + $0x10] sm:$0xff] }
0x161a   :  { %v6705_v43 = vpack.c.bf16 %v3600_v39, %v3599_v2 }
0x161b   :  { %v3743_v42 = vmul.f32 -1.442695, %v3577_v31 }
0x161c   :  { %6706 = vmatpush3.bf16.msra.mxu0 %v6705_v43 }
0x161d   :  { %6864 = vpow2.f32 %v3743_v42  ;;  %6707 = vmatprep.subr.bf16.mxu0 %v7098_v0 }
0x161e   :  { %6866 = vtanh.f32 %v3577_v31 }
0x1620   :  { %6709 = vmatpush3.bf16.msra.mxu0 %v6708_v5 }
0x1621   :  { %6710 = vmatprep.subr.bf16.mxu0 %v7098_v0 }
0x1624   :  { %6712 = vmatpush3.bf16.msra.mxu0 %v6711_v3 }
0x1625   :  { %6713 = vmatprep.subr.bf16.mxu0 %v7098_v0 }
0x1627   :  { %v6865_v46 = vpop.eup %6864 }
0x1628   :  { %v3582_v50 = vadd.f32 1.0, %v6865_v46  ;;  %v6867_v45 = vpop.eup %6866  ;;  %6715 = vmatpush3.bf16.msra.mxu0 %v6714_v12 }
0x1629   :  { %6716 = vmatprep.subr.bf16.mxu0 %v7098_v0 }
0x162a   :  { %6868 = vrcp.f32 %v3582_v50 }
0x162c   :  { %6718 = vmatpush3.bf16.msra.mxu0 %v6717_v23 }
0x162d   :  { %6719 = vmatprep.subr.bf16.mxu0 %v7098_v0 }
0x1630   :  { %6721 = vmatpush3.bf16.msra.mxu0 %v6720_v49 }
0x1631   :  { %6722 = vmatprep.subr.bf16.mxu0 %v7098_v0 }
0x1634   :  { %v6869_v55 = vpop.eup %6868  ;;  %6724 = vmatpush3.bf16.msra.mxu0 %v6723_v29 }
0x1635   :  { %v3585_v1 = vsel %vm7430_vm4, %v6867_v45, %v6869_v55 }
0x1636   :  { %3586 = vrot.lane.b32.xlu1 %v3585_v1, %s7085_s27  ;;  %v3589_v32 = vmul.f32 %v3585_v1, %v8168_v41 }
0x16a8   :  { %v3587_v59 = vpop.permute.xlu1 %3586 }
0x16a9   :  { %v3588_v63 = vmul.f32 %v3587_v59, %v3585_v1 }
0x16ab   :  { %3590 = vrot.lane.b32.xlu0 %v3588_v63, %s7101_s24 }
0x171d   :  { %v3591_v40 = vpop.permute.xlu0 %3590 }
0x171e   :  { %v3592_v48 = vadd.f32 %v3591_v40, %v3589_v32 }
0x1720   :  { %6870 = vtanh.f32 %v3592_v48 }
0x172a   :  { %v6871_v53 = vpop.eup %6870 }
0x172b   :  { %3594 = vrot.lane.b32.xlu1 %v6871_v53, %s7085_s27 }
0x179d   :  { %v3595_v58 = vpop.permute.xlu1 %3594 }
0x179e   :  { %v3596_v62 = vmul.f32 %v3595_v58, %v3585_v1 }
0x17a0   :  { %5835 = vmatmul.mubr.f32.vlgmr.msra.gmra.mrb[38].mxu0 %v3596_v62 }
0x1873   :  { %v3686_v11 = vpop.f32.mrb[38].mxu0 }
0x1874   :  { %v3687_v0 = vadd.f32 %v3744_v4, %v3686_v11  ;;  %v5836_v16 = vpop.f32.mrb[39].mxu0 }
0x1876   :  { %3690 = vst [vmem:[#allocation16] sm:$0xff] %v3687_v0 }
0x1877   :  { %7061 = shalt.err (!%p7058_p12)
}
0x1878   :  { %s7062_s29 = scalar_lea.hbm %s8216_s11, 128 }
0x1879   :  { %p7063_p13 = scmp.ne.s32.totalorder %s8216_s11, %s7062_s29  ;;  %p7066_p0 = scmp.lt.u32.totalorder %s7062_s29, %s8216_s11 }
0x187b   :  { %p7068_p1 = pnand %p7066_p0, %p7063_p13 }
0x187d   :  { %7071 = shalt.err (!%p7068_p1)
}
0x187e   :  { %3700 = dma.vmem_to_hbm [thread:$0]  %s3698_s26, 128, %s8216_s11, [#allocation4]  }
0x187f   :  { %7082 = dma.done.wait [#allocation4], 128  }
0x1880   :  { %7083 = vsyncadd [#allocation4], 4294967168 }
0x1881   :  { %3704 = vsyncpa [#allocation3], 1 }
0x1882   :  { %3705 = vsyncpa [#allocation6], 1 }
0x1883   :  { %3706 = vsyncpa [#allocation9], 1 }
0x1884   :  { %3707 = vsyncpa [#allocation12], 1 }
0x1885   :  { %3708 = vsyncpa [#allocation15], 1 }
0x1886   :  { %3709 = vsyncpa [#allocation4], 1 }

</bundles_post_ra>
